<compile_context>
chip_gen: v7x
topology: tpu7x:2x2x1
jax: 0.10.0
libtpu: 0.0.40
codegen_flags: <defaults>
</compile_context>

<pallas_src>
import math

import jax
import jax.numpy as jnp
from jax.experimental import pallas as pl
from jax.experimental.pallas import tpu as pltpu


# ----------------------------------------------------------------------------
# small helpers
# ----------------------------------------------------------------------------
def _round_up(x, m):
    return ((x + m - 1) // m) * m


def _nbytes(shape, dtype_bytes=4):
    return dtype_bytes * math.prod(shape)


def _tpu_vmem_budget():
    """~80% of physical per-core VMEM (generation-aware); conservative fallback."""
    try:
        cap = pltpu.get_tpu_info().vmem_capacity_bytes
    except Exception:
        cap = 64 * 1024 * 1024          # assume the smallest (v7x) if unknown
    return int(cap * 0.8)


def _vmem_limit(static_bytes, budget):
    """Explicit scoped-VMEM limit: 2x the static footprint (pipelining headroom),
    never above ~80% of physical VMEM for this generation."""
    return int(min(budget, max(2 * static_bytes, 16 * 1024 * 1024)))


def _pick_batch_block(n, hw, target_rows=256, prefer_multi=False):
    """Divisor nb of n giving >=target_rows MXU rows (nb*hw) when possible.
    nb*hw must be sublane-aligned unless nb == n.  With prefer_multi (small-VMEM
    / 2-TensorCore parts) keep >= 2 grid steps so both cores get work."""
    divs = [d for d in range(1, n + 1)
            if n % d == 0 and (d == n or (d * hw) % 8 == 0)]
    if prefer_multi and n >= 2:
        multi = [d for d in divs if n // d >= 2]
        if multi:
            divs = multi
    for d in divs:
        if d * hw >= target_rows:
            return d
    return divs[-1]


def _choose_tk(din, tk_target):
    """K tile (multiple of 128) and padded K extent.  Prefer a tk that divides
    round_up(din,128) exactly; otherwise pad K up to a multiple of tk."""
    din128 = _round_up(din, 128)
    t = (min(tk_target, din128) // 128) * 128
    best = 128
    while t >= 128:
        if din128 % t == 0:
            best = t
            break
        t -= 128
    if best >= min(512, din128):
        return best, din128
    tk = min(tk_target, din128)
    return tk, _round_up(din, tk)


# ----------------------------------------------------------------------------
# Kernel 1: fused conv stack
#   [3x3 conv (pad=1) + bias + ReLU] * L, intermediates kept in VMEM,
#   output already NHWC-flattened with the channel axis on lanes.
# ----------------------------------------------------------------------------
def _make_fused_conv_kernel(nb, H, W, c_dims, paths, scratch_idx):
    n_layers = len(c_dims) - 1
    rows = nb * H * W

    def kernel(*refs):
        x_ref = refs[0]
        w_refs = refs[1:1 + 2 * n_layers:2]
        b_refs = refs[2:2 + 2 * n_layers:2]
        o_ref = refs[1 + 2 * n_layers]
        pad_refs = refs[2 + 2 * n_layers:]          # one halo buffer per distinct cin

        # Zero only the 1-px halo border (cheap vs. re-zeroing the whole
        # buffer), done every step so it is megacore-safe (no reliance on
        # program_id == 0 having executed on this TensorCore).
        for xp in pad_refs:
            nbp, Hp, Wp, c = xp.shape
            xp[:, 0:1, :, :] = jnp.zeros((nbp, 1, Wp, c), jnp.float32)
            xp[:, Hp - 1:Hp, :, :] = jnp.zeros((nbp, 1, Wp, c), jnp.float32)
            xp[:, :, 0:1, :] = jnp.zeros((nbp, Hp, 1, c), jnp.float32)
            xp[:, :, Wp - 1:Wp, :] = jnp.zeros((nbp, Hp, 1, c), jnp.float32)

        act = x_ref[...].astype(jnp.float32)        # (nb, H, W, C0)
        y = None
        for layer in range(n_layers):
            cin = c_dims[layer]
            cout = c_dims[layer + 1]
            xp = pad_refs[scratch_idx[layer]]
            xp[:, 1:H + 1, 1:W + 1, :] = act        # interior; halo stays 0
            w_ref = w_refs[layer]
            if paths[layer] == "wide":
                # Small cin: wide-K im2col (K = 9*cin) keeps MXU K reasonable.
                # TODO(synk): for tiny C0 (<128) lane-packing W into the lane
                # dim would remove masked-lane waste on the first layer.
                cols = []
                for ky in range(3):
                    for kx in range(3):
                        win = xp[:, ky:ky + H, kx:kx + W, :]
                        cols.append(win.reshape(rows, cin))
                patches = jnp.concatenate(cols, axis=-1).astype(jnp.bfloat16)
                y = jnp.dot(patches, w_ref[...],
                            preferred_element_type=jnp.float32)
            else:
                # Large cin: 9 accumulated dots (no (rows, 9*cin) materialization).
                y = None
                t = 0
                for ky in range(3):
                    for kx in range(3):
                        win = xp[:, ky:ky + H, kx:kx + W, :]
                        tap = win.reshape(rows, cin).astype(jnp.bfloat16)
                        contrib = jnp.dot(tap, w_ref[t],
                                          preferred_element_type=jnp.float32)
                        y = contrib if y is None else y + contrib
                        t += 1
            y = jnp.maximum(y + b_refs[layer][...], 0.0)        # bias + ReLU
            if layer + 1 < n_layers:
                act = y.reshape(nb, H, W, cout)
        o_ref[...] = y.astype(o_ref.dtype)                       # (rows, C_last)

    return kernel


def fused_conv_stack(x_nhwc, conv_ws, conv_bs, conv_paths, cfg):
    """x_nhwc: (N, H, W, C0); weights bf16 per layer, either (9*Cin, Cout)
    ('wide') or (9, Cin, Cout) ('acc'); biases (1, Cout) f32.
    Returns NHWC-flattened activations of shape (N, H*W*C_last)."""
    N, H, W, C0 = x_nhwc.shape
    c_dims = [C0] + [int(b.shape[1]) for b in conv_bs]
    c_last = c_dims[-1]
    nb = _pick_batch_block(N, H * W, prefer_multi=cfg["small_vmem"])
    rows = nb * H * W
    grid = (N // nb,)

    in_specs = [pl.BlockSpec((nb, H, W, C0), lambda n: (n, 0, 0, 0))]
    args = [x_nhwc]
    for w, b in zip(conv_ws, conv_bs):
        if w.ndim == 3:
            in_specs.append(pl.BlockSpec(w.shape, lambda n: (0, 0, 0)))
        else:
            in_specs.append(pl.BlockSpec(w.shape, lambda n: (0, 0)))
        in_specs.append(pl.BlockSpec(b.shape, lambda n: (0, 0)))
        args += [w, b]
    out_specs = pl.BlockSpec((rows, c_last), lambda n: (n, 0))

    # one halo scratch per *distinct* input channel count (not per layer)
    uniq_cin = sorted(set(c_dims[:-1]))
    scratch_idx = [uniq_cin.index(c) for c in c_dims[:-1]]
    scratch = [pltpu.VMEM((nb, H + 2, W + 2, c), jnp.float32) for c in uniq_cin]

    blk_bytes = (_nbytes((nb, H, W, C0)) + _nbytes((rows, c_last))
                 + sum(_nbytes(w.shape, 2) + _nbytes(b.shape)
                       for w, b in zip(conv_ws, conv_bs)))
    scratch_bytes = sum(_nbytes((nb, H + 2, W + 2, c)) for c in uniq_cin)

    out = pl.pallas_call(
        _make_fused_conv_kernel(nb, H, W, c_dims, conv_paths, scratch_idx),
        out_shape=jax.ShapeDtypeStruct((N * H * W, c_last), x_nhwc.dtype),
        grid=grid,
        in_specs=in_specs,
        out_specs=out_specs,
        scratch_shapes=scratch,
        compiler_params=pltpu.CompilerParams(
            dimension_semantics=("parallel",),
            vmem_limit_bytes=_vmem_limit(2 * blk_bytes + scratch_bytes,
                                         cfg["vmem_budget"])),
    )(*args)
    # free, metadata-only reshape: (N*H*W, C) -> (N, H*W*C) in NHWC order
    return out.reshape(N, H * W * c_last)


# ----------------------------------------------------------------------------
# Kernel 2: tiled  relu(fc(x)) + ChannelAttention  (MLP + sigmoid gate)
#   grid = (row tiles [parallel], K tiles [arbitrary]); f32 VMEM accumulator;
#   bf16 MXU operands; the attention MLP runs in the k == last epilogue.
# ----------------------------------------------------------------------------
def _fc_attn_kernel(x_ref, w_ref, b_ref, w1_ref, b1_ref, w2_ref, b2_ref,
                    o_ref, acc_ref):
    k = pl.program_id(1)

    @pl.when(k == 0)
    def _():
        acc_ref[...] = jnp.zeros_like(acc_ref)

    acc_ref[...] += jnp.dot(x_ref[...].astype(jnp.bfloat16), w_ref[...],
                            preferred_element_type=jnp.float32)

    @pl.when(k == pl.num_programs(1) - 1)
    def _():
        y = jnp.maximum(acc_ref[...] + b_ref[...], 0.0)          # relu(fc(x))
        h = jnp.dot(y.astype(jnp.bfloat16), w1_ref[...],
                    preferred_element_type=jnp.float32)
        h = jnp.maximum(h + b1_ref[...], 0.0)                    # mlp hidden
        att = jnp.dot(h.astype(jnp.bfloat16), w2_ref[...],
                      preferred_element_type=jnp.float32) + b2_ref[...]
        o_ref[...] = (y * jax.nn.sigmoid(att)).astype(o_ref.dtype)


def fc_relu_channel_attention(x, fp, cfg):
    n, din = x.shape
    w = fp["w"]                              # (din_pad, d) bf16
    din_pad, d = w.shape
    tk = fp["tk"]
    hp = fp["w1"].shape[1]

    # Row tile: lane/sublane-dense, and >= 2 "parallel" tiles on 64 MiB (v7x,
    # 2-TensorCore) parts so both cores are used; larger tiles on 128 MiB parts
    # so the fc weight is streamed fewer times.
    n8 = _round_up(max(n, 1), 8)
    tm = min(cfg["tm_target"], n8)
    if cfg["small_vmem"] and n8 >= 16:
        tm = min(tm, _round_up(n8 // 2, 8))
    n_pad = _round_up(n, tm)
    if n_pad != n or din_pad != din:
        x = jnp.pad(x, ((0, n_pad - n), (0, din_pad - din)))     # zeros: exact
    grid = (n_pad // tm, din_pad // tk)

    blk_bytes = (_nbytes((tm, tk)) + 2 * tk * d + _nbytes((tm, d))
                 + 2 * _nbytes((1, d)) + 2 * d * hp + _nbytes((1, hp))
                 + 2 * hp * d)
    scratch_bytes = _nbytes((tm, d))

    # NOTE: on 128 MiB parts pl.Buffered(3) on the weight spec is a further
    # knob once the kernel is HBM-bound; left at the default depth here.
    out = pl.pallas_call(
        _fc_attn_kernel,
        out_shape=jax.ShapeDtypeStruct((n_pad, d), x.dtype),
        grid=grid,
        in_specs=[
            pl.BlockSpec((tm, tk), lambda i, k: (i, k)),   # x tile (f32)
            pl.BlockSpec((tk, d), lambda i, k: (k, 0)),    # fc weight tile (bf16)
            pl.BlockSpec((1, d), lambda i, k: (0, 0)),     # fc bias
            pl.BlockSpec((d, hp), lambda i, k: (0, 0)),    # attn W1 (bf16)
            pl.BlockSpec((1, hp), lambda i, k: (0, 0)),    # attn b1
            pl.BlockSpec((hp, d), lambda i, k: (0, 0)),    # attn W2 (bf16)
            pl.BlockSpec((1, d), lambda i, k: (0, 0)),     # attn b2
        ],
        out_specs=pl.BlockSpec((tm, d), lambda i, k: (i, 0)),
        scratch_shapes=[pltpu.VMEM((tm, d), jnp.float32)],
        compiler_params=pltpu.CompilerParams(
            dimension_semantics=("parallel", "arbitrary"),
            vmem_limit_bytes=_vmem_limit(2 * blk_bytes + scratch_bytes,
                                         cfg["vmem_budget"])),
    )(x, w, fp["b"], fp["w1"], fp["b1"], fp["w2"], fp["b2"])
    return out[:n] if n_pad != n else out


# ----------------------------------------------------------------------------
# Parameters (torch layouts) and their Pallas-layout preparation
# ----------------------------------------------------------------------------
def init_params(key, in_channels, conv_dims, fc_dims, H, W, reduction_ratio=16):
    """Synthetic parameters in the PyTorch layouts: conv HWIO, linear (in, out)
    with the first linear's input axis ordered like torch.flatten on NCHW."""
    params = {"convs": [], "fcs": [], "attn": []}
    c_prev = in_channels
    for cd in conv_dims:
        key, k1, k2 = jax.random.split(key, 3)
        w = jax.random.normal(k1, (3, 3, c_prev, cd), jnp.float32) * 0.1
        b = jax.random.normal(k2, (cd,), jnp.float32) * 0.02
        params["convs"].append((w, b))
        c_prev = cd
    d_prev = c_prev * H * W
    for fd in fc_dims:
        key, k1, k2, k3, k4, k5 = jax.random.split(key, 6)
        fw = jax.random.normal(k1, (d_prev, fd), jnp.float32) * 0.05
        fb = jax.random.normal(k2, (fd,), jnp.float32) * 0.02
        params["fcs"].append((fw, fb))
        # torch's ChannelAttention hardcodes gate_channels=1024, i.e. the
        # module only runs with fc_dim == 1024; we key the gate width off
        # fc_dim and use fc_dims=[1024, 1024] in the demo so semantics match.
        hidden = max(fd // reduction_ratio, 1)
        w1 = jax.random.normal(k3, (fd, hidden), jnp.float32) * 0.1
        b1 = jax.random.normal(k4, (hidden,), jnp.float32) * 0.02
        w2 = jax.random.normal(k5, (hidden, fd), jnp.float32) * 0.1
        b2 = jnp.zeros((fd,), jnp.float32)
        params["attn"].append((w1, b1, w2, b2))
        d_prev = fd
    return params


def prepare_pallas_params(params, in_channels, H, W, acc_dot_min_cin=64):
    """Reshape / permute / pad / bf16-cast once at init so the kernels see
    TPU-friendly layouts while preserving the exact torch forward semantics."""
    budget = _tpu_vmem_budget()
    small_vmem = budget < 90 * 1024 * 1024          # v7x (64 MiB physical)
    cfg = {"vmem_budget": budget, "small_vmem": small_vmem,
           "tm_target": 256 if small_vmem else 512}
    tk_target = 1024 if small_vmem else 2048

    conv_ws, conv_bs, conv_paths = [], [], []
    c_prev = in_channels
    for (w, b) in params["convs"]:
        cout = w.shape[-1]
        if c_prev >= acc_dot_min_cin:
            # one (cin, cout) slab per tap -> 9 accumulated dots in the kernel
            conv_ws.append(w.reshape(9, c_prev, cout).astype(jnp.bfloat16))
            conv_paths.append("acc")
        else:
            # small cin: wide-K im2col (rows in (ky, kx, ci) order)
            conv_ws.append(w.reshape(9 * c_prev, cout).astype(jnp.bfloat16))
            conv_paths.append("wide")
        conv_bs.append(b.reshape(1, cout).astype(jnp.float32))
        c_prev = cout

    fcs = []
    for idx, ((fw, fb), (w1, b1, w2, b2)) in enumerate(
            zip(params["fcs"], params["attn"])):
        din, d = fw.shape
        if idx == 0 and params["convs"]:
            # the fused conv kernel emits NHWC-flattened activations; permute
            # the first fc's rows from NCHW-flatten to NHWC-flatten order so
            # the result equals torch.flatten(x, 1) on NCHW exactly.
            fw = (fw.reshape(c_prev, H, W, d)
                    .transpose(1, 2, 0, 3)
                    .reshape(H * W * c_prev, d))
        tk, din_pad = _choose_tk(din, tk_target)
        if din_pad != din:
            fw = jnp.pad(fw, ((0, din_pad - din), (0, 0)))       # zero K rows
        # pad the attention MLP hidden dim to a lane-dense multiple of 128;
        # zero padding is exact (relu(0)=0 feeds zero rows of W2).
        hidden = w1.shape[1]
        hp = max(128, _round_up(hidden, 128))
        if hp != hidden:
            w1 = jnp.pad(w1, ((0, 0), (0, hp - hidden)))
            b1 = jnp.pad(b1, (0, hp - hidden))
            w2 = jnp.pad(w2, ((0, hp - hidden), (0, 0)))
        fcs.append({
            "w": fw.astype(jnp.bfloat16),
            "b": fb.reshape(1, -1).astype(jnp.float32),
            "w1": w1.astype(jnp.bfloat16),
            "b1": b1.reshape(1, -1).astype(jnp.float32),
            "w2": w2.astype(jnp.bfloat16),
            "b2": b2.reshape(1, -1).astype(jnp.float32),
            "tk": int(tk),
        })
    return {"convs": (conv_ws, conv_bs, conv_paths), "fcs": fcs, "cfg": cfg}


# ----------------------------------------------------------------------------
# Full forward pass
# ----------------------------------------------------------------------------
def fast_rcnn_inner_attention_fc_head(x_nchw, pp):
    # TODO(synk): torch's `numel(x)==0` early-return is host-side control flow;
    # handled by the caller, not inside a kernel.
    conv_ws, conv_bs, conv_paths = pp["convs"]
    cfg = pp["cfg"]
    if conv_ws:
        x = jnp.transpose(x_nchw, (0, 2, 3, 1))        # NCHW -> NHWC (input only)
        x = fused_conv_stack(x, conv_ws, conv_bs, conv_paths, cfg)
    else:
        x = x_nchw.reshape(x_nchw.shape[0], -1)
    for fp in pp["fcs"]:
        x = fc_relu_channel_attention(x, fp, cfg)
    return x


# ----------------------------------------------------------------------------
# Pure-JAX references (torch layouts / torch semantics) for sanity checks
# ----------------------------------------------------------------------------
def reference_forward(x_nchw, params):
    """Full-f32, HIGHEST precision reference."""
    hi = jax.lax.Precision.HIGHEST
    x = x_nchw
    for (w_hwio, b) in params["convs"]:
        w_oihw = jnp.transpose(w_hwio, (3, 2, 0, 1))
        x = jax.lax.conv_general_dilated(
            x, w_oihw, window_strides=(1, 1), padding=((1, 1), (1, 1)),
            dimension_numbers=("NCHW", "OIHW", "NCHW"), precision=hi)
        x = jax.nn.relu(x + b[None, :, None, None])
    x = x.reshape(x.shape[0], -1)                      # torch.flatten on NCHW
    for (fw, fb), (w1, b1, w2, b2) in zip(params["fcs"], params["attn"]):
        y = jax.nn.relu(jnp.dot(x, fw, precision=hi) + fb)
        h = jax.nn.relu(jnp.dot(y, w1, precision=hi) + b1)
        att = jnp.dot(h, w2, precision=hi) + b2
        x = y * jax.nn.sigmoid(att)
    return x


def reference_forward_bf16(x_nchw, params):
    """Same math with bf16 matmul operands / f32 accumulation, mirroring the
    kernels' mixed precision (tight-tolerance check)."""
    bf = jnp.bfloat16
    x = x_nchw
    for (w_hwio, b) in params["convs"]:
        w_oihw = jnp.transpose(w_hwio, (3, 2, 0, 1)).astype(bf)
        x = jax.lax.conv_general_dilated(
            x.astype(bf), w_oihw, window_strides=(1, 1),
            padding=((1, 1), (1, 1)),
            dimension_numbers=("NCHW", "OIHW", "NCHW"),
            preferred_element_type=jnp.float32)
        x = jax.nn.relu(x + b[None, :, None, None])
    x = x.reshape(x.shape[0], -1)
    for (fw, fb), (w1, b1, w2, b2) in zip(params["fcs"], params["attn"]):
        y = jax.nn.relu(jnp.dot(x.astype(bf), fw.astype(bf),
                                preferred_element_type=jnp.float32) + fb)
        h = jax.nn.relu(jnp.dot(y.astype(bf), w1.astype(bf),
                                preferred_element_type=jnp.float32) + b1)
        att = jnp.dot(h.astype(bf), w2.astype(bf),
                      preferred_element_type=jnp.float32) + b2
        x = y * jax.nn.sigmoid(att)
    return x


if __name__ == "__main__":
    key = jax.random.PRNGKey(0)
    N, C, H, W = 2, 4, 8, 8
    conv_dims = [16, 16]
    fc_dims = [1024, 1024]    # ChannelAttention hardcodes gate_channels=1024

    kx, kp = jax.random.split(key)
    x = jax.random.normal(kx, (N, C, H, W), jnp.float32)
    params = init_params(kp, C, conv_dims, fc_dims, H, W, reduction_ratio=16)
    # acc_dot_min_cin=16 so BOTH conv code paths are exercised at these tiny
    # demo channel counts (cin=4 -> wide-K im2col, cin=16 -> 9 accumulated
    # dots); the default of 64 is the production threshold.
    pp = prepare_pallas_params(params, C, H, W, acc_dot_min_cin=16)

    # pp (arrays + static config) is closed over, so tile sizes / paths stay
    # Python-static under jit.
    fwd = jax.jit(lambda xx: fast_rcnn_inner_attention_fc_head(xx, pp))
    out = jax.block_until_ready(fwd(x))
    assert out.shape == (N, fc_dims[-1]), out.shape

    ref_bf16 = jax.block_until_ready(jax.jit(reference_forward_bf16)(x, params))
    ref_f32 = jax.block_until_ready(jax.jit(reference_forward)(x, params))
    err_tight = float(jnp.max(jnp.abs(out - ref_bf16)))
    err_loose = float(jnp.max(jnp.abs(out - ref_f32)))
    assert err_tight < 5e-3, f"mismatch vs bf16 reference: max|diff|={err_tight}"
    assert err_loose < 8e-2, f"bf16 drift vs f32 reference too large: {err_loose}"
    print("KERNEL_OK")
</pallas_src>

<mosaic_0001>
module attributes {stable_mosaic.version = 11 : i64} {
  func.func @kernel(%arg0: i32, %arg1: memref<1x8x8x4xf32, #tpu.memory_space<vmem>>, %arg2: memref<36x16xbf16, #tpu.memory_space<vmem>>, %arg3: memref<1x16xf32, #tpu.memory_space<vmem>>, %arg4: memref<9x16x16xbf16, #tpu.memory_space<vmem>>, %arg5: memref<1x16xf32, #tpu.memory_space<vmem>>, %arg6: memref<64x16xf32, #tpu.memory_space<vmem>>, %arg7: memref<1x10x10x4xf32, #tpu.memory_space<vmem>>, %arg8: memref<1x10x10x16xf32, #tpu.memory_space<vmem>>) attributes {dimension_semantics = [#tpu.dimension_semantics<parallel>], iteration_bounds = array<i64: 2>, scalar_prefetch = 0 : i64, scratch_operands = 2 : i64, tpu.core_type = #tpu.core_type<tc>, window_params = [{transform_indices = @transform_0, window_bounds = array<i64: 1, 8, 8, 4>}, {pipeline_mode = #tpu.pipeline_mode<synchronous>, transform_indices = @transform_1, window_bounds = array<i64: 36, 16>}, {pipeline_mode = #tpu.pipeline_mode<synchronous>, transform_indices = @transform_2, window_bounds = array<i64: 1, 16>}, {pipeline_mode = #tpu.pipeline_mode<synchronous>, transform_indices = @transform_3, window_bounds = array<i64: 9, 16, 16>}, {pipeline_mode = #tpu.pipeline_mode<synchronous>, transform_indices = @transform_4, window_bounds = array<i64: 1, 16>}, {transform_indices = @transform_5, window_bounds = array<i64: 64, 16>}]} {
    %cst = arith.constant 0.000000e+00 : f32
    %0 = vector.broadcast %cst : f32 to vector<1x1x10x4xf32>
    %c0 = arith.constant 0 : index
    %c0_0 = arith.constant 0 : index
    %c0_1 = arith.constant 0 : index
    %c0_2 = arith.constant 0 : index
    %1 = vector.load %arg7[%c0, %c0_0, %c0_1, %c0_2] : memref<1x10x10x4xf32, #tpu.memory_space<vmem>>, vector<1x1x10x4xf32>
    tpu.vector_store %arg7[%c0, %c0_0, %c0_1, %c0_2], %0 {strides = array<i32>} : memref<1x10x10x4xf32, #tpu.memory_space<vmem>>, vector<1x1x10x4xf32>,
    %cst_3 = arith.constant 0.000000e+00 : f32
    %2 = vector.broadcast %cst_3 : f32 to vector<1x1x10x4xf32>
    %c0_4 = arith.constant 0 : index
    %c9 = arith.constant 9 : index
    %c0_5 = arith.constant 0 : index
    %c0_6 = arith.constant 0 : index
    %3 = vector.load %arg7[%c0_4, %c9, %c0_5, %c0_6] : memref<1x10x10x4xf32, #tpu.memory_space<vmem>>, vector<1x1x10x4xf32>
    tpu.vector_store %arg7[%c0_4, %c9, %c0_5, %c0_6], %2 {strides = array<i32>} : memref<1x10x10x4xf32, #tpu.memory_space<vmem>>, vector<1x1x10x4xf32>,
    %cst_7 = arith.constant 0.000000e+00 : f32
    %4 = vector.broadcast %cst_7 : f32 to vector<1x10x1x4xf32>
    %c0_8 = arith.constant 0 : index
    %c0_9 = arith.constant 0 : index
    %c0_10 = arith.constant 0 : index
    %c0_11 = arith.constant 0 : index
    %5 = vector.load %arg7[%c0_8, %c0_9, %c0_10, %c0_11] : memref<1x10x10x4xf32, #tpu.memory_space<vmem>>, vector<1x10x1x4xf32>
    tpu.vector_store %arg7[%c0_8, %c0_9, %c0_10, %c0_11], %4 {strides = array<i32>} : memref<1x10x10x4xf32, #tpu.memory_space<vmem>>, vector<1x10x1x4xf32>,
    %cst_12 = arith.constant 0.000000e+00 : f32
    %6 = vector.broadcast %cst_12 : f32 to vector<1x10x1x4xf32>
    %c0_13 = arith.constant 0 : index
    %c0_14 = arith.constant 0 : index
    %c9_15 = arith.constant 9 : index
    %c0_16 = arith.constant 0 : index
    %7 = vector.load %arg7[%c0_13, %c0_14, %c9_15, %c0_16] : memref<1x10x10x4xf32, #tpu.memory_space<vmem>>, vector<1x10x1x4xf32>
    tpu.vector_store %arg7[%c0_13, %c0_14, %c9_15, %c0_16], %6 {strides = array<i32>} : memref<1x10x10x4xf32, #tpu.memory_space<vmem>>, vector<1x10x1x4xf32>,
    %cst_17 = arith.constant 0.000000e+00 : f32
    %8 = vector.broadcast %cst_17 : f32 to vector<1x1x10x16xf32>
    %c0_18 = arith.constant 0 : index
    %c0_19 = arith.constant 0 : index
    %c0_20 = arith.constant 0 : index
    %c0_21 = arith.constant 0 : index
    %9 = vector.load %arg8[%c0_18, %c0_19, %c0_20, %c0_21] : memref<1x10x10x16xf32, #tpu.memory_space<vmem>>, vector<1x1x10x16xf32>
    tpu.vector_store %arg8[%c0_18, %c0_19, %c0_20, %c0_21], %8 {strides = array<i32>} : memref<1x10x10x16xf32, #tpu.memory_space<vmem>>, vector<1x1x10x16xf32>,
    %cst_22 = arith.constant 0.000000e+00 : f32
    %10 = vector.broadcast %cst_22 : f32 to vector<1x1x10x16xf32>
    %c0_23 = arith.constant 0 : index
    %c9_24 = arith.constant 9 : index
    %c0_25 = arith.constant 0 : index
    %c0_26 = arith.constant 0 : index
    %11 = vector.load %arg8[%c0_23, %c9_24, %c0_25, %c0_26] : memref<1x10x10x16xf32, #tpu.memory_space<vmem>>, vector<1x1x10x16xf32>
    tpu.vector_store %arg8[%c0_23, %c9_24, %c0_25, %c0_26], %10 {strides = array<i32>} : memref<1x10x10x16xf32, #tpu.memory_space<vmem>>, vector<1x1x10x16xf32>,
    %cst_27 = arith.constant 0.000000e+00 : f32
    %12 = vector.broadcast %cst_27 : f32 to vector<1x10x1x16xf32>
    %c0_28 = arith.constant 0 : index
    %c0_29 = arith.constant 0 : index
    %c0_30 = arith.constant 0 : index
    %c0_31 = arith.constant 0 : index
    %13 = vector.load %arg8[%c0_28, %c0_29, %c0_30, %c0_31] : memref<1x10x10x16xf32, #tpu.memory_space<vmem>>, vector<1x10x1x16xf32>
    tpu.vector_store %arg8[%c0_28, %c0_29, %c0_30, %c0_31], %12 {strides = array<i32>} : memref<1x10x10x16xf32, #tpu.memory_space<vmem>>, vector<1x10x1x16xf32>,
    %cst_32 = arith.constant 0.000000e+00 : f32
    %14 = vector.broadcast %cst_32 : f32 to vector<1x10x1x16xf32>
    %c0_33 = arith.constant 0 : index
    %c0_34 = arith.constant 0 : index
    %c9_35 = arith.constant 9 : index
    %c0_36 = arith.constant 0 : index
    %15 = vector.load %arg8[%c0_33, %c0_34, %c9_35, %c0_36] : memref<1x10x10x16xf32, #tpu.memory_space<vmem>>, vector<1x10x1x16xf32>
    tpu.vector_store %arg8[%c0_33, %c0_34, %c9_35, %c0_36], %14 {strides = array<i32>} : memref<1x10x10x16xf32, #tpu.memory_space<vmem>>, vector<1x10x1x16xf32>,
    %c0_37 = arith.constant 0 : index
    %c0_38 = arith.constant 0 : index
    %c0_39 = arith.constant 0 : index
    %c0_40 = arith.constant 0 : index
    %16 = vector.load %arg1[%c0_37, %c0_38, %c0_39, %c0_40] : memref<1x8x8x4xf32, #tpu.memory_space<vmem>>, vector<1x8x8x4xf32>
    %c0_41 = arith.constant 0 : index
    %c1 = arith.constant 1 : index
    %c1_42 = arith.constant 1 : index
    %c0_43 = arith.constant 0 : index
    %17 = vector.load %arg7[%c0_41, %c1, %c1_42, %c0_43] : memref<1x10x10x4xf32, #tpu.memory_space<vmem>>, vector<1x8x8x4xf32>
    tpu.vector_store %arg7[%c0_41, %c1, %c1_42, %c0_43], %16 {strides = array<i32>} : memref<1x10x10x4xf32, #tpu.memory_space<vmem>>, vector<1x8x8x4xf32>,
    %c0_44 = arith.constant 0 : index
    %c0_45 = arith.constant 0 : index
    %c0_46 = arith.constant 0 : index
    %c0_47 = arith.constant 0 : index
    %18 = vector.load %arg7[%c0_44, %c0_45, %c0_46, %c0_47] : memref<1x10x10x4xf32, #tpu.memory_space<vmem>>, vector<1x8x8x4xf32>
    %19 = vector.shape_cast %18 : vector<1x8x8x4xf32> to vector<64x4xf32>
    %c0_48 = arith.constant 0 : index
    %c0_49 = arith.constant 0 : index
    %c1_50 = arith.constant 1 : index
    %c0_51 = arith.constant 0 : index
    %20 = vector.load %arg7[%c0_48, %c0_49, %c1_50, %c0_51] : memref<1x10x10x4xf32, #tpu.memory_space<vmem>>, vector<1x8x8x4xf32>
    %21 = vector.shape_cast %20 : vector<1x8x8x4xf32> to vector<64x4xf32>
    %c0_52 = arith.constant 0 : index
    %c0_53 = arith.constant 0 : index
    %c2 = arith.constant 2 : index
    %c0_54 = arith.constant 0 : index
    %22 = vector.load %arg7[%c0_52, %c0_53, %c2, %c0_54] : memref<1x10x10x4xf32, #tpu.memory_space<vmem>>, vector<1x8x8x4xf32>
    %23 = vector.shape_cast %22 : vector<1x8x8x4xf32> to vector<64x4xf32>
    %c0_55 = arith.constant 0 : index
    %c1_56 = arith.constant 1 : index
    %c0_57 = arith.constant 0 : index
    %c0_58 = arith.constant 0 : index
    %24 = vector.load %arg7[%c0_55, %c1_56, %c0_57, %c0_58] : memref<1x10x10x4xf32, #tpu.memory_space<vmem>>, vector<1x8x8x4xf32>
    %25 = vector.shape_cast %24 : vector<1x8x8x4xf32> to vector<64x4xf32>
    %c0_59 = arith.constant 0 : index
    %c1_60 = arith.constant 1 : index
    %c1_61 = arith.constant 1 : index
    %c0_62 = arith.constant 0 : index
    %26 = vector.load %arg7[%c0_59, %c1_60, %c1_61, %c0_62] : memref<1x10x10x4xf32, #tpu.memory_space<vmem>>, vector<1x8x8x4xf32>
    %27 = vector.shape_cast %26 : vector<1x8x8x4xf32> to vector<64x4xf32>
    %c0_63 = arith.constant 0 : index
    %c1_64 = arith.constant 1 : index
    %c2_65 = arith.constant 2 : index
    %c0_66 = arith.constant 0 : index
    %28 = vector.load %arg7[%c0_63, %c1_64, %c2_65, %c0_66] : memref<1x10x10x4xf32, #tpu.memory_space<vmem>>, vector<1x8x8x4xf32>
    %29 = vector.shape_cast %28 : vector<1x8x8x4xf32> to vector<64x4xf32>
    %c0_67 = arith.constant 0 : index
    %c2_68 = arith.constant 2 : index
    %c0_69 = arith.constant 0 : index
    %c0_70 = arith.constant 0 : index
    %30 = vector.load %arg7[%c0_67, %c2_68, %c0_69, %c0_70] : memref<1x10x10x4xf32, #tpu.memory_space<vmem>>, vector<1x8x8x4xf32>
    %31 = vector.shape_cast %30 : vector<1x8x8x4xf32> to vector<64x4xf32>
    %c0_71 = arith.constant 0 : index
    %c2_72 = arith.constant 2 : index
    %c1_73 = arith.constant 1 : index
    %c0_74 = arith.constant 0 : index
    %32 = vector.load %arg7[%c0_71, %c2_72, %c1_73, %c0_74] : memref<1x10x10x4xf32, #tpu.memory_space<vmem>>, vector<1x8x8x4xf32>
    %33 = vector.shape_cast %32 : vector<1x8x8x4xf32> to vector<64x4xf32>
    %c0_75 = arith.constant 0 : index
    %c2_76 = arith.constant 2 : index
    %c2_77 = arith.constant 2 : index
    %c0_78 = arith.constant 0 : index
    %34 = vector.load %arg7[%c0_75, %c2_76, %c2_77, %c0_78] : memref<1x10x10x4xf32, #tpu.memory_space<vmem>>, vector<1x8x8x4xf32>
    %35 = vector.shape_cast %34 : vector<1x8x8x4xf32> to vector<64x4xf32>
    %36 = tpu.concatenate %19, %21, %23, %25, %27, %29, %31, %33, %35 in 1 : vector<64x4xf32>, vector<64x4xf32>, vector<64x4xf32>, vector<64x4xf32>, vector<64x4xf32>, vector<64x4xf32>, vector<64x4xf32>, vector<64x4xf32>, vector<64x4xf32> -> vector<64x36xf32>
    %37 = arith.truncf %36 : vector<64x36xf32> to vector<64x36xbf16>
    %c0_79 = arith.constant 0 : index
    %c0_80 = arith.constant 0 : index
    %38 = vector.load %arg2[%c0_79, %c0_80] : memref<36x16xbf16, #tpu.memory_space<vmem>>, vector<36x16xbf16>
    %cst_81 = arith.constant dense<0.000000e+00> : vector<64x16xf32>
    %39 = tpu.matmul %37, %38, %cst_81 {dimension_numbers = #tpu.dot_dimension_numbers<[1], [0], [0], [1], [0, 0, 1, 1], [], []>} : vector<64x36xbf16>, vector<36x16xbf16>, vector<64x16xf32> -> vector<64x16xf32>
    %c0_82 = arith.constant 0 : index
    %c0_83 = arith.constant 0 : index
    %40 = vector.load %arg3[%c0_82, %c0_83] : memref<1x16xf32, #tpu.memory_space<vmem>>, vector<1x16xf32>
    %41 = vector.broadcast %40 : vector<1x16xf32> to vector<64x16xf32>
    %42 = arith.addf %39, %41 : vector<64x16xf32>
    %cst_84 = arith.constant 0.000000e+00 : f32
    %43 = vector.broadcast %cst_84 : f32 to vector<64x16xf32>
    %44 = arith.maximumf %42, %43 : vector<64x16xf32>
    %45 = vector.shape_cast %44 : vector<64x16xf32> to vector<1x8x8x16xf32>
    %c0_85 = arith.constant 0 : index
    %c1_86 = arith.constant 1 : index
    %c1_87 = arith.constant 1 : index
    %c0_88 = arith.constant 0 : index
    %46 = vector.load %arg8[%c0_85, %c1_86, %c1_87, %c0_88] : memref<1x10x10x16xf32, #tpu.memory_space<vmem>>, vector<1x8x8x16xf32>
    tpu.vector_store %arg8[%c0_85, %c1_86, %c1_87, %c0_88], %45 {strides = array<i32>} : memref<1x10x10x16xf32, #tpu.memory_space<vmem>>, vector<1x8x8x16xf32>,
    %c0_89 = arith.constant 0 : index
    %c0_90 = arith.constant 0 : index
    %c0_91 = arith.constant 0 : index
    %c0_92 = arith.constant 0 : index
    %47 = vector.load %arg8[%c0_89, %c0_90, %c0_91, %c0_92] : memref<1x10x10x16xf32, #tpu.memory_space<vmem>>, vector<1x8x8x16xf32>
    %48 = vector.shape_cast %47 : vector<1x8x8x16xf32> to vector<64x16xf32>
    %49 = arith.truncf %48 : vector<64x16xf32> to vector<64x16xbf16>
    %c0_93 = arith.constant 0 : index
    %c0_94 = arith.constant 0 : index
    %c0_95 = arith.constant 0 : index
    %50 = vector.load %arg4[%c0_93, %c0_94, %c0_95] : memref<9x16x16xbf16, #tpu.memory_space<vmem>>, vector<1x16x16xbf16>
    %51 = vector.shape_cast %50 : vector<1x16x16xbf16> to vector<16x16xbf16>
    %cst_96 = arith.constant dense<0.000000e+00> : vector<64x16xf32>
    %52 = tpu.matmul %49, %51, %cst_96 {dimension_numbers = #tpu.dot_dimension_numbers<[1], [0], [0], [1], [0, 0, 1, 1], [], []>} : vector<64x16xbf16>, vector<16x16xbf16>, vector<64x16xf32> -> vector<64x16xf32>
    %c0_97 = arith.constant 0 : index
    %c0_98 = arith.constant 0 : index
    %c1_99 = arith.constant 1 : index
    %c0_100 = arith.constant 0 : index
    %53 = vector.load %arg8[%c0_97, %c0_98, %c1_99, %c0_100] : memref<1x10x10x16xf32, #tpu.memory_space<vmem>>, vector<1x8x8x16xf32>
    %54 = vector.shape_cast %53 : vector<1x8x8x16xf32> to vector<64x16xf32>
    %55 = arith.truncf %54 : vector<64x16xf32> to vector<64x16xbf16>
    %c1_101 = arith.constant 1 : index
    %c0_102 = arith.constant 0 : index
    %c0_103 = arith.constant 0 : index
    %56 = vector.load %arg4[%c1_101, %c0_102, %c0_103] : memref<9x16x16xbf16, #tpu.memory_space<vmem>>, vector<1x16x16xbf16>
    %57 = vector.shape_cast %56 : vector<1x16x16xbf16> to vector<16x16xbf16>
    %cst_104 = arith.constant dense<0.000000e+00> : vector<64x16xf32>
    %58 = tpu.matmul %55, %57, %cst_104 {dimension_numbers = #tpu.dot_dimension_numbers<[1], [0], [0], [1], [0, 0, 1, 1], [], []>} : vector<64x16xbf16>, vector<16x16xbf16>, vector<64x16xf32> -> vector<64x16xf32>
    %59 = arith.addf %52, %58 : vector<64x16xf32>
    %c0_105 = arith.constant 0 : index
    %c0_106 = arith.constant 0 : index
    %c2_107 = arith.constant 2 : index
    %c0_108 = arith.constant 0 : index
    %60 = vector.load %arg8[%c0_105, %c0_106, %c2_107, %c0_108] : memref<1x10x10x16xf32, #tpu.memory_space<vmem>>, vector<1x8x8x16xf32>
    %61 = vector.shape_cast %60 : vector<1x8x8x16xf32> to vector<64x16xf32>
    %62 = arith.truncf %61 : vector<64x16xf32> to vector<64x16xbf16>
    %c2_109 = arith.constant 2 : index
    %c0_110 = arith.constant 0 : index
    %c0_111 = arith.constant 0 : index
    %63 = vector.load %arg4[%c2_109, %c0_110, %c0_111] : memref<9x16x16xbf16, #tpu.memory_space<vmem>>, vector<1x16x16xbf16>
    %64 = vector.shape_cast %63 : vector<1x16x16xbf16> to vector<16x16xbf16>
    %cst_112 = arith.constant dense<0.000000e+00> : vector<64x16xf32>
    %65 = tpu.matmul %62, %64, %cst_112 {dimension_numbers = #tpu.dot_dimension_numbers<[1], [0], [0], [1], [0, 0, 1, 1], [], []>} : vector<64x16xbf16>, vector<16x16xbf16>, vector<64x16xf32> -> vector<64x16xf32>
    %66 = arith.addf %59, %65 : vector<64x16xf32>
    %c0_113 = arith.constant 0 : index
    %c1_114 = arith.constant 1 : index
    %c0_115 = arith.constant 0 : index
    %c0_116 = arith.constant 0 : index
    %67 = vector.load %arg8[%c0_113, %c1_114, %c0_115, %c0_116] : memref<1x10x10x16xf32, #tpu.memory_space<vmem>>, vector<1x8x8x16xf32>
    %68 = vector.shape_cast %67 : vector<1x8x8x16xf32> to vector<64x16xf32>
    %69 = arith.truncf %68 : vector<64x16xf32> to vector<64x16xbf16>
    %c3 = arith.constant 3 : index
    %c0_117 = arith.constant 0 : index
    %c0_118 = arith.constant 0 : index
    %70 = vector.load %arg4[%c3, %c0_117, %c0_118] : memref<9x16x16xbf16, #tpu.memory_space<vmem>>, vector<1x16x16xbf16>
    %71 = vector.shape_cast %70 : vector<1x16x16xbf16> to vector<16x16xbf16>
    %cst_119 = arith.constant dense<0.000000e+00> : vector<64x16xf32>
    %72 = tpu.matmul %69, %71, %cst_119 {dimension_numbers = #tpu.dot_dimension_numbers<[1], [0], [0], [1], [0, 0, 1, 1], [], []>} : vector<64x16xbf16>, vector<16x16xbf16>, vector<64x16xf32> -> vector<64x16xf32>
    %73 = arith.addf %66, %72 : vector<64x16xf32>
    %c0_120 = arith.constant 0 : index
    %c1_121 = arith.constant 1 : index
    %c1_122 = arith.constant 1 : index
    %c0_123 = arith.constant 0 : index
    %74 = vector.load %arg8[%c0_120, %c1_121, %c1_122, %c0_123] : memref<1x10x10x16xf32, #tpu.memory_space<vmem>>, vector<1x8x8x16xf32>
    %75 = vector.shape_cast %74 : vector<1x8x8x16xf32> to vector<64x16xf32>
    %76 = arith.truncf %75 : vector<64x16xf32> to vector<64x16xbf16>
    %c4 = arith.constant 4 : index
    %c0_124 = arith.constant 0 : index
    %c0_125 = arith.constant 0 : index
    %77 = vector.load %arg4[%c4, %c0_124, %c0_125] : memref<9x16x16xbf16, #tpu.memory_space<vmem>>, vector<1x16x16xbf16>
    %78 = vector.shape_cast %77 : vector<1x16x16xbf16> to vector<16x16xbf16>
    %cst_126 = arith.constant dense<0.000000e+00> : vector<64x16xf32>
    %79 = tpu.matmul %76, %78, %cst_126 {dimension_numbers = #tpu.dot_dimension_numbers<[1], [0], [0], [1], [0, 0, 1, 1], [], []>} : vector<64x16xbf16>, vector<16x16xbf16>, vector<64x16xf32> -> vector<64x16xf32>
    %80 = arith.addf %73, %79 : vector<64x16xf32>
    %c0_127 = arith.constant 0 : index
    %c1_128 = arith.constant 1 : index
    %c2_129 = arith.constant 2 : index
    %c0_130 = arith.constant 0 : index
    %81 = vector.load %arg8[%c0_127, %c1_128, %c2_129, %c0_130] : memref<1x10x10x16xf32, #tpu.memory_space<vmem>>, vector<1x8x8x16xf32>
    %82 = vector.shape_cast %81 : vector<1x8x8x16xf32> to vector<64x16xf32>
    %83 = arith.truncf %82 : vector<64x16xf32> to vector<64x16xbf16>
    %c5 = arith.constant 5 : index
    %c0_131 = arith.constant 0 : index
    %c0_132 = arith.constant 0 : index
    %84 = vector.load %arg4[%c5, %c0_131, %c0_132] : memref<9x16x16xbf16, #tpu.memory_space<vmem>>, vector<1x16x16xbf16>
    %85 = vector.shape_cast %84 : vector<1x16x16xbf16> to vector<16x16xbf16>
    %cst_133 = arith.constant dense<0.000000e+00> : vector<64x16xf32>
    %86 = tpu.matmul %83, %85, %cst_133 {dimension_numbers = #tpu.dot_dimension_numbers<[1], [0], [0], [1], [0, 0, 1, 1], [], []>} : vector<64x16xbf16>, vector<16x16xbf16>, vector<64x16xf32> -> vector<64x16xf32>
    %87 = arith.addf %80, %86 : vector<64x16xf32>
    %c0_134 = arith.constant 0 : index
    %c2_135 = arith.constant 2 : index
    %c0_136 = arith.constant 0 : index
    %c0_137 = arith.constant 0 : index
    %88 = vector.load %arg8[%c0_134, %c2_135, %c0_136, %c0_137] : memref<1x10x10x16xf32, #tpu.memory_space<vmem>>, vector<1x8x8x16xf32>
    %89 = vector.shape_cast %88 : vector<1x8x8x16xf32> to vector<64x16xf32>
    %90 = arith.truncf %89 : vector<64x16xf32> to vector<64x16xbf16>
    %c6 = arith.constant 6 : index
    %c0_138 = arith.constant 0 : index
    %c0_139 = arith.constant 0 : index
    %91 = vector.load %arg4[%c6, %c0_138, %c0_139] : memref<9x16x16xbf16, #tpu.memory_space<vmem>>, vector<1x16x16xbf16>
    %92 = vector.shape_cast %91 : vector<1x16x16xbf16> to vector<16x16xbf16>
    %cst_140 = arith.constant dense<0.000000e+00> : vector<64x16xf32>
    %93 = tpu.matmul %90, %92, %cst_140 {dimension_numbers = #tpu.dot_dimension_numbers<[1], [0], [0], [1], [0, 0, 1, 1], [], []>} : vector<64x16xbf16>, vector<16x16xbf16>, vector<64x16xf32> -> vector<64x16xf32>
    %94 = arith.addf %87, %93 : vector<64x16xf32>
    %c0_141 = arith.constant 0 : index
    %c2_142 = arith.constant 2 : index
    %c1_143 = arith.constant 1 : index
    %c0_144 = arith.constant 0 : index
    %95 = vector.load %arg8[%c0_141, %c2_142, %c1_143, %c0_144] : memref<1x10x10x16xf32, #tpu.memory_space<vmem>>, vector<1x8x8x16xf32>
    %96 = vector.shape_cast %95 : vector<1x8x8x16xf32> to vector<64x16xf32>
    %97 = arith.truncf %96 : vector<64x16xf32> to vector<64x16xbf16>
    %c7 = arith.constant 7 : index
    %c0_145 = arith.constant 0 : index
    %c0_146 = arith.constant 0 : index
    %98 = vector.load %arg4[%c7, %c0_145, %c0_146] : memref<9x16x16xbf16, #tpu.memory_space<vmem>>, vector<1x16x16xbf16>
    %99 = vector.shape_cast %98 : vector<1x16x16xbf16> to vector<16x16xbf16>
    %cst_147 = arith.constant dense<0.000000e+00> : vector<64x16xf32>
    %100 = tpu.matmul %97, %99, %cst_147 {dimension_numbers = #tpu.dot_dimension_numbers<[1], [0], [0], [1], [0, 0, 1, 1], [], []>} : vector<64x16xbf16>, vector<16x16xbf16>, vector<64x16xf32> -> vector<64x16xf32>
    %101 = arith.addf %94, %100 : vector<64x16xf32>
    %c0_148 = arith.constant 0 : index
    %c2_149 = arith.constant 2 : index
    %c2_150 = arith.constant 2 : index
    %c0_151 = arith.constant 0 : index
    %102 = vector.load %arg8[%c0_148, %c2_149, %c2_150, %c0_151] : memref<1x10x10x16xf32, #tpu.memory_space<vmem>>, vector<1x8x8x16xf32>
    %103 = vector.shape_cast %102 : vector<1x8x8x16xf32> to vector<64x16xf32>
    %104 = arith.truncf %103 : vector<64x16xf32> to vector<64x16xbf16>
    %c8 = arith.constant 8 : index
    %c0_152 = arith.constant 0 : index
    %c0_153 = arith.constant 0 : index
    %105 = vector.load %arg4[%c8, %c0_152, %c0_153] : memref<9x16x16xbf16, #tpu.memory_space<vmem>>, vector<1x16x16xbf16>
    %106 = vector.shape_cast %105 : vector<1x16x16xbf16> to vector<16x16xbf16>
    %cst_154 = arith.constant dense<0.000000e+00> : vector<64x16xf32>
    %107 = tpu.matmul %104, %106, %cst_154 {dimension_numbers = #tpu.dot_dimension_numbers<[1], [0], [0], [1], [0, 0, 1, 1], [], []>} : vector<64x16xbf16>, vector<16x16xbf16>, vector<64x16xf32> -> vector<64x16xf32>
    %108 = arith.addf %101, %107 : vector<64x16xf32>
    %c0_155 = arith.constant 0 : index
    %c0_156 = arith.constant 0 : index
    %109 = vector.load %arg5[%c0_155, %c0_156] : memref<1x16xf32, #tpu.memory_space<vmem>>, vector<1x16xf32>
    %110 = vector.broadcast %109 : vector<1x16xf32> to vector<64x16xf32>
    %111 = arith.addf %108, %110 : vector<64x16xf32>
    %cst_157 = arith.constant 0.000000e+00 : f32
    %112 = vector.broadcast %cst_157 : f32 to vector<64x16xf32>
    %113 = arith.maximumf %111, %112 : vector<64x16xf32>
    %c0_158 = arith.constant 0 : index
    %c0_159 = arith.constant 0 : index
    %114 = vector.load %arg6[%c0_158, %c0_159] : memref<64x16xf32, #tpu.memory_space<vmem>>, vector<64x16xf32>
    tpu.vector_store %arg6[%c0_158, %c0_159], %113 {strides = array<i32>} : memref<64x16xf32, #tpu.memory_space<vmem>>, vector<64x16xf32>,
    return
  }
  func.func @transform_0(%arg0: i32) -> (i32, i32, i32, i32) {
    %c0_i32 = arith.constant 0 : i32
    %c0_i32_0 = arith.constant 0 : i32
    %c0_i32_1 = arith.constant 0 : i32
    %c0_i32_2 = arith.constant 0 : i32
    return %arg0, %c0_i32, %c0_i32_0, %c0_i32_1 : i32, i32, i32, i32
  }
  func.func @transform_1(%arg0: i32) -> (i32, i32) {
    %c0_i32 = arith.constant 0 : i32
    %c0_i32_0 = arith.constant 0 : i32
    %c0_i32_1 = arith.constant 0 : i32
    return %c0_i32, %c0_i32_0 : i32, i32
  }
  func.func @transform_2(%arg0: i32) -> (i32, i32) {
    %c0_i32 = arith.constant 0 : i32
    %c0_i32_0 = arith.constant 0 : i32
    %c0_i32_1 = arith.constant 0 : i32
    return %c0_i32, %c0_i32_0 : i32, i32
  }
  func.func @transform_3(%arg0: i32) -> (i32, i32, i32) {
    %c0_i32 = arith.constant 0 : i32
    %c0_i32_0 = arith.constant 0 : i32
    %c0_i32_1 = arith.constant 0 : i32
    %c0_i32_2 = arith.constant 0 : i32
    return %c0_i32, %c0_i32_0, %c0_i32_1 : i32, i32, i32
  }
  func.func @transform_4(%arg0: i32) -> (i32, i32) {
    %c0_i32 = arith.constant 0 : i32
    %c0_i32_0 = arith.constant 0 : i32
    %c0_i32_1 = arith.constant 0 : i32
    return %c0_i32, %c0_i32_0 : i32, i32
  }
  func.func @transform_5(%arg0: i32) -> (i32, i32) {
    %c0_i32 = arith.constant 0 : i32
    %c0_i32_0 = arith.constant 0 : i32
    return %arg0, %c0_i32 : i32, i32
  }
}

module attributes {stable_mosaic.version = 11 : i64} {
  func.func @_fc_attn_kernel(%arg0: i32, %arg1: i32, %arg2: memref<8x1024xf32, #tpu.memory_space<vmem>>, %arg3: memref<1024x1024xbf16, #tpu.memory_space<vmem>>, %arg4: memref<1x1024xf32, #tpu.memory_space<vmem>>, %arg5: memref<1024x128xbf16, #tpu.memory_space<vmem>>, %arg6: memref<1x128xf32, #tpu.memory_space<vmem>>, %arg7: memref<128x1024xbf16, #tpu.memory_space<vmem>>, %arg8: memref<1x1024xf32, #tpu.memory_space<vmem>>, %arg9: memref<8x1024xf32, #tpu.memory_space<vmem>>, %arg10: memref<8x1024xf32, #tpu.memory_space<vmem>>) attributes {dimension_semantics = [#tpu.dimension_semantics<parallel>, #tpu.dimension_semantics<arbitrary>], iteration_bounds = array<i64: 1, 1>, scalar_prefetch = 0 : i64, scratch_operands = 1 : i64, tpu.core_type = #tpu.core_type<tc>, window_params = [{transform_indices = @transform_0, window_bounds = array<i64: 8, 1024>}, {transform_indices = @transform_1, window_bounds = array<i64: 1024, 1024>}, {pipeline_mode = #tpu.pipeline_mode<synchronous>, transform_indices = @transform_2, window_bounds = array<i64: 1, 1024>}, {pipeline_mode = #tpu.pipeline_mode<synchronous>, transform_indices = @transform_3, window_bounds = array<i64: 1024, 128>}, {pipeline_mode = #tpu.pipeline_mode<synchronous>, transform_indices = @transform_4, window_bounds = array<i64: 1, 128>}, {pipeline_mode = #tpu.pipeline_mode<synchronous>, transform_indices = @transform_5, window_bounds = array<i64: 128, 1024>}, {pipeline_mode = #tpu.pipeline_mode<synchronous>, transform_indices = @transform_6, window_bounds = array<i64: 1, 1024>}, {transform_indices = @transform_7, window_bounds = array<i64: 8, 1024>}]} {
    %c0_i32 = arith.constant 0 : i32
    %0 = arith.cmpi eq, %arg1, %c0_i32 : i32
    %1 = arith.extui %0 : i1 to i32
    %c0_i32_0 = arith.constant 0 : i32
    %2 = arith.cmpi ne, %1, %c0_i32_0 : i32
    scf.if %2 {
      %cst_10 = arith.constant 0.000000e+00 : f32
      %13 = vector.broadcast %cst_10 : f32 to vector<8x1024xf32>
      %c0_11 = arith.constant 0 : index
      %c0_12 = arith.constant 0 : index
      %14 = vector.load %arg10[%c0_11, %c0_12] : memref<8x1024xf32, #tpu.memory_space<vmem>>, vector<8x1024xf32>
      tpu.vector_store %arg10[%c0_11, %c0_12], %13 {strides = array<i32>} : memref<8x1024xf32, #tpu.memory_space<vmem>>, vector<8x1024xf32>,
    } else {
    }
    %c0 = arith.constant 0 : index
    %c0_1 = arith.constant 0 : index
    %3 = vector.load %arg10[%c0, %c0_1] : memref<8x1024xf32, #tpu.memory_space<vmem>>, vector<8x1024xf32>
    %c0_2 = arith.constant 0 : index
    %c0_3 = arith.constant 0 : index
    %4 = vector.load %arg2[%c0_2, %c0_3] : memref<8x1024xf32, #tpu.memory_space<vmem>>, vector<8x1024xf32>
    %5 = arith.truncf %4 : vector<8x1024xf32> to vector<8x1024xbf16>
    %c0_4 = arith.constant 0 : index
    %c0_5 = arith.constant 0 : index
    %6 = vector.load %arg3[%c0_4, %c0_5] : memref<1024x1024xbf16, #tpu.memory_space<vmem>>, vector<1024x1024xbf16>
    %cst = arith.constant dense<0.000000e+00> : vector<8x1024xf32>
    %7 = tpu.matmul %5, %6, %cst {dimension_numbers = #tpu.dot_dimension_numbers<[1], [0], [0], [1], [0, 0, 1, 1], [], []>} : vector<8x1024xbf16>, vector<1024x1024xbf16>, vector<8x1024xf32> -> vector<8x1024xf32>
    %8 = arith.addf %3, %7 : vector<8x1024xf32>
    %c0_6 = arith.constant 0 : index
    %c0_7 = arith.constant 0 : index
    %9 = vector.load %arg10[%c0_6, %c0_7] : memref<8x1024xf32, #tpu.memory_space<vmem>>, vector<8x1024xf32>
    tpu.vector_store %arg10[%c0_6, %c0_7], %8 {strides = array<i32>} : memref<8x1024xf32, #tpu.memory_space<vmem>>, vector<8x1024xf32>,
    %c0_i32_8 = arith.constant 0 : i32
    %10 = arith.cmpi eq, %arg1, %c0_i32_8 : i32
    %11 = arith.extui %10 : i1 to i32
    %c0_i32_9 = arith.constant 0 : i32
    %12 = arith.cmpi ne, %11, %c0_i32_9 : i32
    scf.if %12 {
      %c0_10 = arith.constant 0 : index
      %c0_11 = arith.constant 0 : index
      %13 = vector.load %arg10[%c0_10, %c0_11] : memref<8x1024xf32, #tpu.memory_space<vmem>>, vector<8x1024xf32>
      %c0_12 = arith.constant 0 : index
      %c0_13 = arith.constant 0 : index
      %14 = vector.load %arg4[%c0_12, %c0_13] : memref<1x1024xf32, #tpu.memory_space<vmem>>, vector<1x1024xf32>
      %15 = vector.broadcast %14 : vector<1x1024xf32> to vector<8x1024xf32>
      %16 = arith.addf %13, %15 : vector<8x1024xf32>
      %cst_14 = arith.constant 0.000000e+00 : f32
      %17 = vector.broadcast %cst_14 : f32 to vector<8x1024xf32>
      %18 = arith.maximumf %16, %17 : vector<8x1024xf32>
      %19 = arith.truncf %18 : vector<8x1024xf32> to vector<8x1024xbf16>
      %c0_15 = arith.constant 0 : index
      %c0_16 = arith.constant 0 : index
      %20 = vector.load %arg5[%c0_15, %c0_16] : memref<1024x128xbf16, #tpu.memory_space<vmem>>, vector<1024x128xbf16>
      %cst_17 = arith.constant dense<0.000000e+00> : vector<8x128xf32>
      %21 = tpu.matmul %19, %20, %cst_17 {dimension_numbers = #tpu.dot_dimension_numbers<[1], [0], [0], [1], [0, 0, 1, 1], [], []>} : vector<8x1024xbf16>, vector<1024x128xbf16>, vector<8x128xf32> -> vector<8x128xf32>
      %c0_18 = arith.constant 0 : index
      %c0_19 = arith.constant 0 : index
      %22 = vector.load %arg6[%c0_18, %c0_19] : memref<1x128xf32, #tpu.memory_space<vmem>>, vector<1x128xf32>
      %23 = vector.broadcast %22 : vector<1x128xf32> to vector<8x128xf32>
      %24 = arith.addf %21, %23 : vector<8x128xf32>
      %cst_20 = arith.constant 0.000000e+00 : f32
      %25 = vector.broadcast %cst_20 : f32 to vector<8x128xf32>
      %26 = arith.maximumf %24, %25 : vector<8x128xf32>
      %27 = arith.truncf %26 : vector<8x128xf32> to vector<8x128xbf16>
      %c0_21 = arith.constant 0 : index
      %c0_22 = arith.constant 0 : index
      %28 = vector.load %arg7[%c0_21, %c0_22] : memref<128x1024xbf16, #tpu.memory_space<vmem>>, vector<128x1024xbf16>
      %cst_23 = arith.constant dense<0.000000e+00> : vector<8x1024xf32>
      %29 = tpu.matmul %27, %28, %cst_23 {dimension_numbers = #tpu.dot_dimension_numbers<[1], [0], [0], [1], [0, 0, 1, 1], [], []>} : vector<8x128xbf16>, vector<128x1024xbf16>, vector<8x1024xf32> -> vector<8x1024xf32>
      %c0_24 = arith.constant 0 : index
      %c0_25 = arith.constant 0 : index
      %30 = vector.load %arg8[%c0_24, %c0_25] : memref<1x1024xf32, #tpu.memory_space<vmem>>, vector<1x1024xf32>
      %31 = vector.broadcast %30 : vector<1x1024xf32> to vector<8x1024xf32>
      %32 = arith.addf %29, %31 : vector<8x1024xf32>
      %33 = arith.negf %32 : vector<8x1024xf32>
      %34 = math.exp %33 : vector<8x1024xf32>
      %cst_26 = arith.constant 1.000000e+00 : f32
      %35 = vector.broadcast %cst_26 : f32 to vector<8x1024xf32>
      %36 = arith.addf %35, %34 : vector<8x1024xf32>
      %37 = arith.divf %35, %36 : vector<8x1024xf32>
      %38 = arith.mulf %18, %37 : vector<8x1024xf32>
      %c0_27 = arith.constant 0 : index
      %c0_28 = arith.constant 0 : index
      %39 = vector.load %arg9[%c0_27, %c0_28] : memref<8x1024xf32, #tpu.memory_space<vmem>>, vector<8x1024xf32>
      tpu.vector_store %arg9[%c0_27, %c0_28], %38 {strides = array<i32>} : memref<8x1024xf32, #tpu.memory_space<vmem>>, vector<8x1024xf32>,
    } else {
    }
    return
  }
  func.func @transform_0(%arg0: i32, %arg1: i32) -> (i32, i32) {
    %c0_i32 = arith.constant 0 : i32
    return %arg0, %arg1 : i32, i32
  }
  func.func @transform_1(%arg0: i32, %arg1: i32) -> (i32, i32) {
    %c0_i32 = arith.constant 0 : i32
    %c0_i32_0 = arith.constant 0 : i32
    return %arg1, %c0_i32 : i32, i32
  }
  func.func @transform_2(%arg0: i32, %arg1: i32) -> (i32, i32) {
    %c0_i32 = arith.constant 0 : i32
    %c0_i32_0 = arith.constant 0 : i32
    %c0_i32_1 = arith.constant 0 : i32
    return %c0_i32, %c0_i32_0 : i32, i32
  }
  func.func @transform_3(%arg0: i32, %arg1: i32) -> (i32, i32) {
    %c0_i32 = arith.constant 0 : i32
    %c0_i32_0 = arith.constant 0 : i32
    %c0_i32_1 = arith.constant 0 : i32
    return %c0_i32, %c0_i32_0 : i32, i32
  }
  func.func @transform_4(%arg0: i32, %arg1: i32) -> (i32, i32) {
    %c0_i32 = arith.constant 0 : i32
    %c0_i32_0 = arith.constant 0 : i32
    %c0_i32_1 = arith.constant 0 : i32
    return %c0_i32, %c0_i32_0 : i32, i32
  }
  func.func @transform_5(%arg0: i32, %arg1: i32) -> (i32, i32) {
    %c0_i32 = arith.constant 0 : i32
    %c0_i32_0 = arith.constant 0 : i32
    %c0_i32_1 = arith.constant 0 : i32
    return %c0_i32, %c0_i32_0 : i32, i32
  }
  func.func @transform_6(%arg0: i32, %arg1: i32) -> (i32, i32) {
    %c0_i32 = arith.constant 0 : i32
    %c0_i32_0 = arith.constant 0 : i32
    %c0_i32_1 = arith.constant 0 : i32
    return %c0_i32, %c0_i32_0 : i32, i32
  }
  func.func @transform_7(%arg0: i32, %arg1: i32) -> (i32, i32) {
    %c0_i32 = arith.constant 0 : i32
    %c0_i32_0 = arith.constant 0 : i32
    return %arg0, %c0_i32 : i32, i32
  }
}

</mosaic_0001>

<bundles_post_ra>
// kernel: _lambda_.3
= control target key start
LH: loop header
LB: loop body
LE: loop exit
PB: predicated region body
PF: predicated region fallthrough
CT: control target
= control target key end

     0   :  { %10 = vsyncpa [#allocation5], 0  ;;  %s3134_s0 = inlined_call_operand.vmem [shape: f32[2,8,8,4], index: 0, kind: input, shape index: {}]   ;;  %s3135_s1 = inlined_call_operand.hbm [shape: bf16[36,16], index: 1, kind: input, shape index: {}]   ;;  %s3136_s2 = inlined_call_operand.hbm [shape: f32[1,16], index: 2, kind: input, shape index: {}]   ;;  %s3137_s3 = inlined_call_operand.hbm [shape: bf16[9,16,16], index: 3, kind: input, shape index: {}]   ;;  %s3138_s4 = inlined_call_operand.hbm [shape: f32[1,16], index: 4, kind: input, shape index: {}]   ;;  %s3139_s5 = inlined_call_operand.vmem [shape: f32[128,16], index: 5, kind: output, shape index: {}]  }
   0x1   :  { %11 = vsyncpa [#allocation7], 0 }
   0x2   :  { %12 = vsyncpa [#allocation10], 0  ;;  %s2654_s18 = smov 0  }
   0x3 LB: > { %s2609_s19 = smov [#allocation6]   ;;  %s2660_s21 = sadd.s32 4294967295, %s2607_s18   ;;  %s2607_s18 = sphi %s2654_s18, %s18_s18  }
   0x4   : > { %s185_s20 = sshll.u32 %s2609_s19, 4  ;;  %p1952_p0 = scmp.ge.s32.totalorder %s2607_s18, 1  ;;  %s2665_s20 = int_to_ptr.vmem [resolvable:$true] %s185_s20 }
   0x5   : > { %p159_p1 = scmp.lt.s32.totalorder %s2607_s18, 3  ;;  %p3140_p2 = scmp.eq.s32.totalorder %s2660_s21, 0 }
   0x6   : > { %s2610_s23 = smov [#allocation4]   ;;  %s2611_s26 = smov [#allocation8]  }
   0x7   : > { %p2667_p3 = pnand %p1952_p0, %p159_p1  ;;  %s171_s24 = sshll.u32 %s2610_s23, 4  ;;  %s2673_s24 = int_to_ptr.vmem [resolvable:$true] %s171_s24 }
   0x8   : > { %s195_s27 = sshll.u32 %s2611_s26, 4  ;;  %s2612_s28 = smov [#allocation9]   ;;  %s2681_s27 = int_to_ptr.vmem [resolvable:$true] %s195_s27 }
   0x9   : > { %s3142_s22 = scalar_select %p2667_p3, 1, 0 }
   0xa   : > { %p2261_p4 = pneg %p2667_p3  ;;  %s2683_s29 = sshll.u32 %s2612_s28, 4  ;;  %s210_s29 = int_to_ptr.vmem [resolvable:$true] %s2683_s29 }
   0xb   : > { %s2477_s7 = scalar_lea.hbm %s3136_s2, 16 }
   0xc   : > { %p2677_p5 = pnand %p3140_p2, %p2261_p4  ;;  %p2478_p6 = scmp.ne.s32.totalorder %s3136_s2, %s2477_s7 }
   0xd   : > { %p2484_p10 = scmp.lt.u32.totalorder %s2477_s7, %s3136_s2 }
   0xe   : > { %p2693_p7 = pneg %p2677_p5 }
  0x10   : > { %p2480_p8 = pnand %p2693_p7, %p2478_p6 }
  0x12   : > { %p2481_p9 = pneg %p2480_p8 }
  0x14   : > { %p2486_p11 = pnand %p2484_p10, %p2481_p9 }
  0x16   : > { %2489 = shalt.err (!%p2486_p11)
}
  0x17   : > { %s2490_s13 = scalar_lea.vmem %s2665_s20, 16  ;;  %s2497_s14 = scalar_lea.vmem %s2665_s20, 32 }
  0x18   : > { %p2491_p12 = scmp.ne.s32.totalorder %s2665_s20, %s2490_s13  ;;  %p2498_p1 = scmp.lt.s32.totalorder %s2665_s20, %s2665_s20 }
  0x19   : > { %p2499_p4 = scmp.lt.s32.totalorder %s2497_s14, %s2490_s13 }
  0x1a   : > { %p2493_p13 = pnand %p2491_p12, %p2693_p7 }
  0x1b   : > { %p2500_p6 = por %p2499_p4, %p2498_p1 }
  0x1c   : > { %p2494_p0 = pneg %p2493_p13 }
  0x1e   : > { %p2501_p8 = pnand %p2500_p6, %p2494_p0 }
  0x20   : > { %2504 = shalt.err (!%p2501_p8)
}
  0x21   : > { %2267 = dma.hbm_to_vmem [thread:$0]  (!%p2677_p5), %s3136_s2, 16, %s2665_s20, [#allocation7]  }
  0x22   : > { %s2505_s23 = scalar_lea.hbm %s3135_s1, 320 }
  0x23   : > { %p2506_p9 = scmp.ne.s32.totalorder %s3135_s1, %s2505_s23  ;;  %p2512_p12 = scmp.lt.u32.totalorder %s2505_s23, %s3135_s1 }
  0x25   : > { %p2508_p10 = pnand %p2506_p9, %p2693_p7 }
  0x27   : > { %p2509_p11 = pneg %p2508_p10 }
  0x29   : > { %p2514_p13 = pnand %p2512_p12, %p2509_p11 }
  0x2b   : > { %2517 = shalt.err (!%p2514_p13)
}
  0x2c   : > { %s2518_s20 = scalar_lea.vmem %s2673_s24, 320  ;;  %p2526_p6 = scmp.lt.s32.totalorder %s2673_s24, %s2673_s24 }
  0x2d   : > { %p2519_p0 = scmp.ne.s32.totalorder %s2673_s24, %s2518_s20  ;;  %p2527_p8 = scmp.lt.s32.totalorder %s2518_s20, %s2518_s20 }
  0x2f   : > { %p2521_p1 = pnand %p2519_p0, %p2693_p7  ;;  %p2528_p9 = por %p2527_p8, %p2526_p6 }
  0x31   : > { %p2522_p4 = pneg %p2521_p1 }
  0x33   : > { %p2529_p10 = pnand %p2528_p9, %p2522_p4 }
  0x35   : > { %2532 = shalt.err (!%p2529_p10)
}
  0x36   : > { %s2613_s7 = smov 64   ;;  %s2614_s8 = smov 4  }
  0x37   : > { %2264 = dma.hbm_to_vmem [thread:$0]  (!%p2677_p5), %s3135_s1, 320, %s2673_s24, [#allocation5], %s2613_s7, %s2613_s7, %s2614_s8  }
  0x38   : > { %s2533_s14 = scalar_lea.hbm %s3137_s3, 1152 }
  0x39   : > { %p2534_p11 = scmp.ne.s32.totalorder %s3137_s3, %s2533_s14  ;;  %p2540_p0 = scmp.lt.u32.totalorder %s2533_s14, %s3137_s3 }
  0x3b   : > { %p2536_p12 = pnand %p2534_p11, %p2693_p7 }
  0x3d   : > { %p2537_p13 = pneg %p2536_p12 }
  0x3f   : > { %p2542_p1 = pnand %p2540_p0, %p2537_p13 }
  0x41   : > { %2545 = shalt.err (!%p2542_p1)
}
  0x42   : > { %s2546_s24 = scalar_lea.vmem %s2681_s27, 1152  ;;  %p2554_p9 = scmp.lt.s32.totalorder %s2681_s27, %s2681_s27 }
  0x43   : > { %p2547_p4 = scmp.ne.s32.totalorder %s2681_s27, %s2546_s24  ;;  %p2555_p10 = scmp.lt.s32.totalorder %s2546_s24, %s2546_s24 }
  0x45   : > { %p2549_p6 = pnand %p2547_p4, %p2693_p7  ;;  %p2556_p11 = por %p2555_p10, %p2554_p9 }
  0x47   : > { %p2550_p8 = pneg %p2549_p6 }
  0x49   : > { %p2557_p12 = pnand %p2556_p11, %p2550_p8 }
  0x4b   : > { %2560 = shalt.err (!%p2557_p12)
}
  0x4c   : > { %2270 = dma.hbm_to_vmem [thread:$0]  (!%p2677_p5), %s3137_s3, 1152, %s2681_s27, [#allocation7], %s2613_s7, %s2613_s7, %s2614_s8  }
  0x4d   : > { %s2561_s6 = scalar_lea.hbm %s3138_s4, 16 }
  0x4e   : > { %p2562_p13 = scmp.ne.s32.totalorder %s3138_s4, %s2561_s6  ;;  %p2568_p4 = scmp.lt.u32.totalorder %s2561_s6, %s3138_s4 }
  0x50   : > { %p2564_p0 = pnand %p2562_p13, %p2693_p7 }
  0x52   : > { %p2565_p1 = pneg %p2564_p0 }
  0x54   : > { %p2570_p6 = pnand %p2568_p4, %p2565_p1 }
  0x56   : > { %2573 = shalt.err (!%p2570_p6)
}
  0x57   : > { %s2574_s13 = scalar_lea.vmem %s210_s29, 16  ;;  %s2581_s27 = scalar_lea.vmem %s210_s29, 32 }
  0x58   : > { %p2575_p8 = scmp.ne.s32.totalorder %s210_s29, %s2574_s13  ;;  %p2582_p11 = scmp.lt.s32.totalorder %s210_s29, %s210_s29 }
  0x59   : > { %p2583_p12 = scmp.lt.s32.totalorder %s2581_s27, %s2574_s13 }
  0x5a   : > { %p2577_p9 = pnand %p2575_p8, %p2693_p7 }
  0x5b   : > { %p2584_p2 = por %p2583_p12, %p2582_p11 }
  0x5c   : > { %p2578_p10 = pneg %p2577_p9 }
  0x5e   : > { %p2585_p3 = pnand %p2584_p2, %p2578_p10 }
  0x60   : > { %2588 = shalt.err (!%p2585_p3)
}
  0x61   : > { %2273 = dma.hbm_to_vmem [thread:$0]  (!%p2677_p5), %s3138_s4, 16, %s210_s29, [#allocation10]  }
  0x62   : > { %p3145_p13 = scmp.ne.s32.totalorder %s3142_s22, 0 }
  0x63   : > { %p3146_p0 = scmp.eq.s32.totalorder (!%p3145_p13), %s2660_s21, 0 }
  0x64   : > { %230 = sbr.rel (%p3145_p13) target bundleno = 836 (0x344), region = 40 }
  0x6b   : > { %2594 = dma.done.wait (%p3146_p0), [#allocation5], 320   ;;  %p3147_p7 = pmov %p3146_p0 }
  0x6c   : > { %p3148_p1 = pmov %p3146_p0 }
  0x6d   : > { %2596 = vsyncadd (%p3147_p7), [#allocation5], 4294966976 }
  0x6e   : > { %2598 = dma.done.wait (%p3148_p1), [#allocation7], 1168   ;;  %p3149_p2 = pmov %p3146_p0 }
  0x6f   : > { %p3150_p3 = pmov %p3146_p0 }
  0x70   : > { %2600 = vsyncadd (%p3149_p2), [#allocation7], 4294966128 }
  0x71   : > { %2602 = dma.done.wait (%p3150_p3), [#allocation10], 16   ;;  %p3151_p5 = pmov %p3146_p0 }
  0x72   : > { %p270_p4 = scmp.lt.s32.totalorder %s2660_s21, 1  ;;  %vm282_vm0 = vcmask 31744   ;;  %vm284_vm1 = vcmask 25600   ;;  %v2615_v0 = vmov 0.0   ;;  %vm289_vm2 = vcmask 24576   ;;  %s2616_s15 = smov 8  }
  0x73   : > { %2604 = vsyncadd (%p3151_p5), [#allocation10], 4294967280  ;;  %283 = vst.msk [vmem:[#allocation2] sm:$0xff] %vm282_vm0, %v2615_v0  ;;  %vm310_vm3 = vcmask 130048   ;;  %s2617_s16 = smov 4   ;;  %s2618_s17 = smov 12  }
  0x74   : > { %285 = vst.msk [vmem:[#allocation2 + $0x8] sm:$0x3] %vm284_vm1, %v2615_v0  ;;  %288 = vst.msk [vmem:[#allocation2 + $0x98] sm:$0x3] %vm284_vm1, %v2615_v0  ;;  %s271_s22 = scalar_select %p270_p4, %s2660_s21, 1  ;;  %v2465_v31 = vld [vmem:[#allocation4] sm:$0xff]  }
  0x75   : > { %287 = vst.msk [vmem:[#allocation2 + $0x90] sm:$0xff] %vm282_vm0, %v2615_v0  ;;  %s2619_s19 = smov 16   ;;  %2076 = vmatprep.subr.bf16.mxu0 %v2465_v31  ;;  %v2466_v35 = vld [vmem:[#allocation4 + $0x8] sm:$0xff]   ;;  %s2620_s24 = smov 20   ;;  %vm798_vm4 = vcmask 1041408   ;;  %vm692_vm5 = vcmask 64512  }
  0x76   : > { %300 = vst.msk [vmem:[#allocation2 + $0x9] sm:$0x1] %vm289_vm2, %v2615_v0  ;;  %301 = vst.msk [vmem:[#allocation2 + $0x19] sm:$0x1] %vm289_vm2, %v2615_v0  ;;  %s2023_s25 = sshll.u32 %s271_s22, 6  ;;  %2077 = vmatpush3.bf16.msra.mxu0 %v2465_v31  ;;  %s2621_s23 = smov 24  }
  0x77   : > { %290 = vst.msk [vmem:[#allocation2] sm:$0x1] %vm289_vm2, %v2615_v0  ;;  %291 = vst.msk [vmem:[#allocation2 + $0x10] sm:$0x1] %vm289_vm2, %v2615_v0  ;;  %s274_s14 = scalar_lea.vmem %s3134_s0, %s2023_s25  ;;  %2078 = vmatprep.subr.bf16.mxu0 %v2466_v35  ;;  %s2622_s26 = smov 28   ;;  %vm701_vm6 = vcmask 97280  }
  0x78   : > { %292 = vst.msk [vmem:[#allocation2 + $0x20] sm:$0x1] %vm289_vm2, %v2615_v0  ;;  %293 = vst.msk [vmem:[#allocation2 + $0x30] sm:$0x1] %vm289_vm2, %v2615_v0  ;;  %v338_v1 = vld [vmem:[%s274_s14] sm:$0xff]  ;;  %v339_v2 = vld [vmem:[%s274_s14 + $0x8] sm:$0xff] }
  0x79   : > { %294 = vst.msk [vmem:[#allocation2 + $0x40] sm:$0x1] %vm289_vm2, %v2615_v0  ;;  %295 = vst.msk [vmem:[#allocation2 + $0x50] sm:$0x1] %vm289_vm2, %v2615_v0  ;;  %v340_v3 = vld [vmem:[%s274_s14 + $0x10] sm:$0xff]  ;;  %v341_v4 = vld [vmem:[%s274_s14 + $0x18] sm:$0xff] }
  0x7a   : > { %296 = vst.msk [vmem:[#allocation2 + $0x60] sm:$0x1] %vm289_vm2, %v2615_v0  ;;  %297 = vst.msk [vmem:[#allocation2 + $0x70] sm:$0x1] %vm289_vm2, %v2615_v0  ;;  %v342_v5 = vld [vmem:[%s274_s14 + $0x20] sm:$0xff]  ;;  %v343_v6 = vld [vmem:[%s274_s14 + $0x28] sm:$0xff]  ;;  %2079 = vmatpush3.bf16.msra.mxu0 %v2466_v35 }
  0x7b   : > { %298 = vst.msk [vmem:[#allocation2 + $0x80] sm:$0x1] %vm289_vm2, %v2615_v0  ;;  %302 = vst.msk [vmem:[#allocation2 + $0x29] sm:$0x1] %vm289_vm2, %v2615_v0  ;;  %v344_v7 = vld [vmem:[%s274_s14 + $0x30] sm:$0xff]  ;;  %v345_v8 = vld [vmem:[%s274_s14 + $0x38] sm:$0xff] }
  0x7c   : > { %303 = vst.msk [vmem:[#allocation2 + $0x39] sm:$0x1] %vm289_vm2, %v2615_v0  ;;  %304 = vst.msk [vmem:[#allocation2 + $0x49] sm:$0x1] %vm289_vm2, %v2615_v0  ;;  %v363_v10 = vld [vmem:[#allocation2 + $0x1] sm:$0xff]  ;;  %s2623_s28 = smov 32  }
  0x7d   : > { %305 = vst.msk [vmem:[#allocation2 + $0x59] sm:$0x1] %vm289_vm2, %v2615_v0  ;;  %306 = vst.msk [vmem:[#allocation2 + $0x69] sm:$0x1] %vm289_vm2, %v2615_v0  ;;  %v371_v9 = vld [vmem:[#allocation2 + $0x2] sm:$0xff]  ;;  %vm718_vm7 = vcmask 162816  }
  0x7e   : > { %307 = vst.msk [vmem:[#allocation2 + $0x79] sm:$0x1] %vm289_vm2, %v2615_v0  ;;  %308 = vst.msk [vmem:[#allocation2 + $0x89] sm:$0x1] %vm289_vm2, %v2615_v0  ;;  %vm727_vm8 = vcmask 195584   ;;  %vm736_vm9 = vcmask 228352  }
  0x7f   : > { %299 = vst.msk [vmem:[#allocation2 + $0x90] sm:$0x1] %vm289_vm2, %v2615_v0  ;;  %309 = vst.msk [vmem:[#allocation2 + $0x99] sm:$0x1] %vm289_vm2, %v2615_v0  ;;  %vm745_vm10 = vcmask 261120   ;;  %vm785_vm11 = vcmask 293888  }
  0x80   : > { %347 = vst.msk [vmem:[#allocation2 + $0x11] sm:$0xff] %vm282_vm0, %v338_v1  ;;  %348 = vst.msk [vmem:[#allocation2 + $0x21] sm:$0xff] %vm282_vm0, %v339_v2  ;;  %v2467_v39 = vld [vmem:[#allocation4 + $0x10] ss:$0 sps:$4 sm:$0x33]   ;;  %v419_v1 = vld [vmem:[#allocation2 + $0x91] sm:$0xff] }
  0x81   : > { %349 = vst.msk [vmem:[#allocation2 + $0x31] sm:$0xff] %vm282_vm0, %v340_v3  ;;  %350 = vst.msk [vmem:[#allocation2 + $0x41] sm:$0xff] %vm282_vm0, %v341_v4  ;;  %v800_v41 = vsel %vm798_vm4, %v2467_v39, 0  ;;  %2244 = vmatprep.subr.msk.bf16.mxu0 %vm798_vm4, %v2467_v39  ;;  %vm312_vm12 = vcmask 123904   ;;  %vm317_vm13 = vcmask 122880   ;;  %s1965_s30 = sshll.u32 %s2660_s21, 3 }
  0x82   : > { %351 = vst.msk [vmem:[#allocation2 + $0x51] sm:$0xff] %vm282_vm0, %v342_v5  ;;  %352 = vst.msk [vmem:[#allocation2 + $0x61] sm:$0xff] %vm282_vm0, %v343_v6  ;;  %2081 = vmatpush3.bf16.msra.mxu0 %v800_v41  ;;  %p276_p6 = scmp.lt.s32.totalorder %s1965_s30, 15 }
  0x83   : > { %353 = vst.msk [vmem:[#allocation2 + $0x71] sm:$0xff] %vm282_vm0, %v344_v7  ;;  %354 = vst.msk [vmem:[#allocation2 + $0x81] sm:$0xff] %vm282_vm0, %v345_v8 }
  0x84   : > { %311 = vst.msk [vmem:[#allocation3] sm:$0xff] %vm310_vm3, %v2615_v0  ;;  %315 = vst.msk [vmem:[#allocation3 + $0x90] sm:$0xff] %vm310_vm3, %v2615_v0  ;;  %s3153_s30 = smov (!%p276_p6, %s1965_s30), 15 }
  0x85   : > { %313 = vst.msk [vmem:[#allocation3 + $0x8] sm:$0x3] %vm312_vm12, %v2615_v0  ;;  %316 = vst.msk [vmem:[#allocation3 + $0x98] sm:$0x3] %vm312_vm12, %v2615_v0  ;;  %s1966_s6 = sshll.u32 %s3153_s30, 3 }
  0x86   : > { %v411_v61 = vld [vmem:[#allocation2 + $0x90] sm:$0xff]  ;;  %318 = vst.msk [vmem:[#allocation3] sm:$0x1] %vm317_vm13, %v2615_v0  ;;  %319 = vst.msk [vmem:[#allocation3 + $0x10] sm:$0x1] %vm317_vm13, %v2615_v0  ;;  %s3113_s21 = scalar_lea.vmem %s3139_s5, %s1966_s6 }
  0x87   : > { %v372_v11 = vld [vmem:[#allocation2 + $0x12] sm:$0xff]  ;;  %v373_v13 = vld [vmem:[#allocation2 + $0x22] sm:$0xff]  ;;  %320 = vst.msk [vmem:[#allocation3 + $0x20] sm:$0x1] %vm317_vm13, %v2615_v0  ;;  %321 = vst.msk [vmem:[#allocation3 + $0x30] sm:$0x1] %vm317_vm13, %v2615_v0 }
  0x88   : > { %v364_v12 = vld [vmem:[#allocation2 + $0x11] sm:$0xff]  ;;  %v2315_v14 = vpack.i.bf16 %v372_v11, %v371_v9  ;;  %v365_v17 = vld [vmem:[#allocation2 + $0x21] sm:$0xff]  ;;  %v2345_v33 = vpack.i.bf16 %v373_v13, %v372_v11  ;;  %322 = vst.msk [vmem:[#allocation3 + $0x40] sm:$0x1] %vm317_vm13, %v2615_v0  ;;  %323 = vst.msk [vmem:[#allocation3 + $0x50] sm:$0x1] %vm317_vm13, %v2615_v0 }
  0x89   : > { %v2305_v15 = vpack.i.bf16 %v364_v12, %v363_v10  ;;  %v374_v16 = vld [vmem:[#allocation2 + $0x32] sm:$0xff]  ;;  %v2861_v22 = vld [vmem:[#allocation2 + $0x40] sm:$0xff]  ;;  %v2335_v29 = vpack.i.bf16 %v365_v17, %v364_v12  ;;  %324 = vst.msk [vmem:[#allocation3 + $0x60] sm:$0x1] %vm317_vm13, %v2615_v0  ;;  %325 = vst.msk [vmem:[#allocation3 + $0x70] sm:$0x1] %vm317_vm13, %v2615_v0 }
  0x8a   : > { %v366_v18 = vld [vmem:[#allocation2 + $0x31] sm:$0xff]  ;;  %2316 = vrot.lane.b32.xlu1 %v2315_v14, %s2616_s15  ;;  %v2320_v19 = vpack.i.bf16 %v374_v16, %v373_v13  ;;  %v2865_v24 = vld [vmem:[#allocation2 + $0x20] sm:$0xff]  ;;  %326 = vst.msk [vmem:[#allocation3 + $0x80] sm:$0x1] %vm317_vm13, %v2615_v0  ;;  %327 = vst.msk [vmem:[#allocation3 + $0x90] sm:$0x1] %vm317_vm13, %v2615_v0 }
  0x8b   : > { %2306 = vrot.lane.b32.xlu0 %v2305_v15, %s2617_s16  ;;  %v2310_v20 = vpack.i.bf16 %v366_v18, %v365_v17  ;;  %v2859_v21 = vld [vmem:[#allocation2 + $0x30] sm:$0xff]  ;;  %v390_v27 = vld [vmem:[#allocation2 + $0x41] sm:$0xff]  ;;  %329 = vst.msk [vmem:[#allocation3 + $0x19] sm:$0x1] %vm317_vm13, %v2615_v0  ;;  %330 = vst.msk [vmem:[#allocation3 + $0x29] sm:$0x1] %vm317_vm13, %v2615_v0 }
  0x8c   : > { %v2863_v23 = vld [vmem:[#allocation2 + $0x10] sm:$0xff]  ;;  %v2330_v25 = vpack.i.bf16 %v2861_v22, %v2859_v21  ;;  %v2340_v28 = vpack.i.bf16 %v390_v27, %v366_v18  ;;  %v398_v30 = vld [vmem:[#allocation2 + $0x42] sm:$0xff]  ;;  %v2355_v37 = vpack.i.bf16 %v2859_v21, %v2865_v24  ;;  %331 = vst.msk [vmem:[#allocation3 + $0x39] sm:$0x1] %vm317_vm13, %v2615_v0  ;;  %332 = vst.msk [vmem:[#allocation3 + $0x49] sm:$0x1] %vm317_vm13, %v2615_v0 }
  0x8d   : > { %v2325_v26 = vpack.i.bf16 %v2865_v24, %v2863_v23  ;;  %v2350_v32 = vpack.i.bf16 %v398_v30, %v374_v16  ;;  %v2877_v34 = vld [vmem:[#allocation2 + $0x50] sm:$0xff]  ;;  %v369_v42 = vld [vmem:[#allocation2 + $0x61] sm:$0xff]  ;;  %333 = vst.msk [vmem:[#allocation3 + $0x59] sm:$0x1] %vm317_vm13, %v2615_v0  ;;  %334 = vst.msk [vmem:[#allocation3 + $0x69] sm:$0x1] %vm317_vm13, %v2615_v0 }
  0x8e   : > { %2321 = vrot.lane.b32.xlu1 %v2320_v19, %s2616_s15  ;;  %v2360_v36 = vpack.i.bf16 %v2877_v34, %v2861_v22  ;;  %v415_v38 = vld [vmem:[#allocation2 + $0x51] sm:$0xff]  ;;  %v377_v47 = vld [vmem:[#allocation2 + $0x62] sm:$0xff]  ;;  %335 = vst.msk [vmem:[#allocation3 + $0x79] sm:$0x1] %vm317_vm13, %v2615_v0  ;;  %336 = vst.msk [vmem:[#allocation3 + $0x89] sm:$0x1] %vm317_vm13, %v2615_v0 }
  0x8f   : > { %2311 = vrot.lane.b32.xlu0 %v2310_v20, %s2617_s16  ;;  %v2370_v40 = vpack.i.bf16 %v415_v38, %v390_v27  ;;  %v370_v43 = vld [vmem:[#allocation2 + $0x71] sm:$0xff]  ;;  %v386_v51 = vld [vmem:[#allocation2 + $0x80] sm:$0xff]  ;;  %v2415_v57 = vpack.i.bf16 %v369_v42, %v415_v38  ;;  %328 = vst.msk [vmem:[#allocation3 + $0x9] sm:$0x1] %vm317_vm13, %v2615_v0  ;;  %337 = vst.msk [vmem:[#allocation3 + $0x99] sm:$0x1] %vm317_vm13, %v2615_v0 }
  0x90   : > { %v423_v44 = vld [vmem:[#allocation2 + $0x52] sm:$0xff]  ;;  %v2390_v45 = vpack.i.bf16 %v370_v43, %v369_v42  ;;  %v2895_v52 = vld [vmem:[#allocation2 + $0x60] sm:$0xff]  ;;  %v2440_v62 = vpack.i.bf16 %v411_v61, %v386_v51 }
  0x91   : > { %v2385_v46 = vpack.i.bf16 %v423_v44, %v398_v30  ;;  %v378_v48 = vld [vmem:[#allocation2 + $0x72] sm:$0xff]  ;;  %v2405_v54 = vpack.i.bf16 %v2895_v52, %v2877_v34  ;;  %v394_v55 = vld [vmem:[#allocation2 + $0x81] sm:$0xff]  ;;  %v2425_v60 = vpack.i.bf16 %v377_v47, %v423_v44 }
  0x92   : > { %2331 = vrot.lane.b32.xlu1 %v2330_v25, %s2618_s17  ;;  %v2400_v49 = vpack.i.bf16 %v378_v48, %v377_v47  ;;  %v2893_v50 = vld [vmem:[#allocation2 + $0x70] sm:$0xff]  ;;  %v2420_v56 = vpack.i.bf16 %v394_v55, %v370_v43  ;;  %v402_v58 = vld [vmem:[#allocation2 + $0x82] sm:$0xff]  ;;  %v2450_v2 = vpack.i.bf16 %v419_v1, %v394_v55 }
  0x93   : > { %2326 = vrot.lane.b32.xlu0 %v2325_v26, %s2618_s17  ;;  %v2410_v53 = vpack.i.bf16 %v386_v51, %v2893_v50  ;;  %v2430_v59 = vpack.i.bf16 %v402_v58, %v378_v48  ;;  %v2435_v63 = vpack.i.bf16 %v2893_v50, %v2895_v52  ;;  %v427_v3 = vld [vmem:[#allocation2 + $0x92] sm:$0xff]  ;;  %v355_v15 = vld [vmem:[#allocation2] sm:$0xff] }
  0x94   : > { %v2460_v4 = vpack.i.bf16 %v427_v3, %v402_v58 }
  0x96   : > { %2341 = vrot.lane.b32.xlu1 %v2340_v28, %s2619_s19 }
  0x97   : > { %2336 = vrot.lane.b32.xlu0 %v2335_v29, %s2619_s19 }
  0x9a   : > { %2351 = vrot.lane.b32.xlu1 %v2350_v32, %s2620_s24 }
  0x9b   : > { %2346 = vrot.lane.b32.xlu0 %v2345_v33, %s2620_s24 }
  0x9e   : > { %2361 = vrot.lane.b32.xlu1 %v2360_v36, %s2621_s23 }
  0x9f   : > { %2356 = vrot.lane.b32.xlu0 %v2355_v37, %s2621_s23 }
  0xa2   : > { %2371 = vrot.lane.b32.xlu1 %v2370_v40, %s2622_s26 }
  0xa3   : > { %2366 = vrot.lane.b32.xlu0 %v2310_v20, %s2622_s26 }
  0xa6   : > { %2381 = vrot.lane.b32.xlu1 %v2370_v40, %s2617_s16 }
  0xa7   : > { %2376 = vrot.lane.b32.xlu0 %v2320_v19, %s2623_s28 }
  0xaa   : > { %2391 = vrot.lane.b32.xlu1 %v2390_v45, %s2617_s16 }
  0xab   : > { %2386 = vrot.lane.b32.xlu0 %v2385_v46, %s2623_s28 }
  0xae   : > { %2401 = vrot.lane.b32.xlu1 %v2400_v49, %s2616_s15 }
  0xaf   : > { %2396 = vrot.lane.b32.xlu0 %v2385_v46, %s2616_s15 }
  0xb2   : > { %2411 = vrot.lane.b32.xlu1 %v2410_v53, %s2618_s17 }
  0xb3   : > { %2406 = vrot.lane.b32.xlu0 %v2405_v54, %s2618_s17 }
  0xb6   : > { %2421 = vrot.lane.b32.xlu1 %v2420_v56, %s2619_s19 }
  0xb7   : > { %2416 = vrot.lane.b32.xlu0 %v2415_v57, %s2619_s19 }
  0xba   : > { %2431 = vrot.lane.b32.xlu1 %v2430_v59, %s2620_s24 }
  0xbb   : > { %2426 = vrot.lane.b32.xlu0 %v2425_v60, %s2620_s24 }
  0xbe   : > { %2441 = vrot.lane.b32.xlu1 %v2440_v62, %s2621_s23 }
  0xbf   : > { %2436 = vrot.lane.b32.xlu0 %v2435_v63, %s2621_s23 }
  0xc2   : > { %2451 = vrot.lane.b32.xlu1 %v2450_v2, %s2622_s26 }
  0xc3   : > { %2446 = vrot.lane.b32.xlu0 %v2390_v45, %s2622_s26 }
  0xc6   : > { %2461 = vrot.lane.b32.xlu1 %v2460_v4, %s2623_s28 }
  0xc7   : > { %2456 = vrot.lane.b32.xlu0 %v2400_v49, %s2623_s28 }
  0xfc   : > { %v2317_v5 = vpop.permute.xlu1 %2316 }
  0xfd   : > { %v2307_v6 = vpop.permute.xlu0 %2306  ;;  %v2319_v20 = vunpack.i.h.bf16 %v2317_v5  ;;  %v2318_v25 = vunpack.i.l.bf16 %v2317_v5 }
  0xfe   : > { %v2309_v13 = vunpack.i.h.bf16 %v2307_v6  ;;  %v2308_v14 = vunpack.i.l.bf16 %v2307_v6 }
 0x100   : > { %v2322_v7 = vpop.permute.xlu1 %2321  ;;  %v685_v26 = vsel %vm282_vm0, %v2863_v23, %v2309_v13  ;;  %v684_v27 = vsel %vm282_vm0, %v355_v15, %v2308_v14 }
 0x101   : > { %v2312_v8 = vpop.permute.xlu0 %2311  ;;  %v2324_v28 = vunpack.i.h.bf16 %v2322_v7  ;;  %v2323_v29 = vunpack.i.l.bf16 %v2322_v7  ;;  %v693_v23 = vsel %vm692_vm5, %v684_v27, %v2318_v25  ;;  %v694_v39 = vsel %vm692_vm5, %v685_v26, %v2319_v20 }
 0x102   : > { %v2314_v16 = vunpack.i.h.bf16 %v2312_v8  ;;  %v2313_v17 = vunpack.i.l.bf16 %v2312_v8 }
 0x104   : > { %v2332_v9 = vpop.permute.xlu1 %2331  ;;  %v687_v30 = vsel %vm282_vm0, %v2859_v21, %v2314_v16  ;;  %v686_v31 = vsel %vm282_vm0, %v2865_v24, %v2313_v17 }
 0x105   : > { %v2327_v10 = vpop.permute.xlu0 %2326  ;;  %v2334_v32 = vunpack.i.h.bf16 %v2332_v9  ;;  %v2333_v33 = vunpack.i.l.bf16 %v2332_v9  ;;  %v695_v40 = vsel %vm692_vm5, %v686_v31, %v2323_v29  ;;  %v696_v21 = vsel %vm692_vm5, %v687_v30, %v2324_v28 }
 0x106   : > { %v2329_v37 = vunpack.i.h.bf16 %v2327_v10  ;;  %v2328_v38 = vunpack.i.l.bf16 %v2327_v10 }
 0x107   : > { %v704_v42 = vsel %vm701_vm6, %v695_v40, %v2333_v33  ;;  %v705_v43 = vsel %vm701_vm6, %v696_v21, %v2334_v32 }
 0x108   : > { %v2916_v11 = vpop.permute.xlu1 %2341  ;;  %v702_v48 = vsel %vm701_vm6, %v693_v23, %v2328_v38  ;;  %v703_v49 = vsel %vm701_vm6, %v694_v39, %v2329_v37 }
 0x109   : > { %v2337_v12 = vpop.permute.xlu0 %2336  ;;  %v2344_v54 = vunpack.i.h.bf16 %v2916_v11  ;;  %v2343_v55 = vunpack.i.l.bf16 %v2916_v11 }
 0x10a   : > { %v2339_v41 = vunpack.i.h.bf16 %v2337_v12  ;;  %v2338_v24 = vunpack.i.l.bf16 %v2337_v12 }
 0x10b   : > { %v712_v13 = vsel %vm310_vm3, %v704_v42, %v2343_v55  ;;  %v713_v14 = vsel %vm310_vm3, %v705_v43, %v2344_v54 }
 0x10c   : > { %v2918_v18 = vpop.permute.xlu1 %2351  ;;  %v710_v58 = vsel %vm310_vm3, %v702_v48, %v2338_v24  ;;  %v711_v59 = vsel %vm310_vm3, %v703_v49, %v2339_v41 }
 0x10d   : > { %v2347_v19 = vpop.permute.xlu0 %2346  ;;  %v2354_v60 = vunpack.i.h.bf16 %v2918_v18  ;;  %v2353_v61 = vunpack.i.l.bf16 %v2918_v18 }
 0x10e   : > { %v2349_v44 = vunpack.i.h.bf16 %v2347_v19  ;;  %v2348_v45 = vunpack.i.l.bf16 %v2347_v19 }
 0x10f   : > { %v721_v17 = vsel %vm718_vm7, %v712_v13, %v2353_v61  ;;  %v722_v18 = vsel %vm718_vm7, %v713_v14, %v2354_v60 }
 0x110   : > { %v2362_v35 = vpop.permute.xlu1 %2361  ;;  %v719_v62 = vsel %vm718_vm7, %v710_v58, %v2348_v45  ;;  %v720_v63 = vsel %vm718_vm7, %v711_v59, %v2349_v44 }
 0x111   : > { %v2357_v36 = vpop.permute.xlu0 %2356  ;;  %v2364_v1 = vunpack.i.h.bf16 %v2362_v35  ;;  %v2363_v2 = vunpack.i.l.bf16 %v2362_v35 }
 0x112   : > { %v2359_v51 = vunpack.i.h.bf16 %v2357_v36  ;;  %v2358_v53 = vunpack.i.l.bf16 %v2357_v36 }
 0x113   : > { %v730_v26 = vsel %vm727_vm8, %v721_v17, %v2363_v2  ;;  %v731_v27 = vsel %vm727_vm8, %v722_v18, %v2364_v1 }
 0x114   : > { %v2372_v46 = vpop.permute.xlu1 %2371  ;;  %v728_v5 = vsel %vm727_vm8, %v719_v62, %v2358_v53  ;;  %v729_v6 = vsel %vm727_vm8, %v720_v63, %v2359_v51 }
 0x115   : > { %v2367_v47 = vpop.permute.xlu0 %2366  ;;  %v2374_v9 = vunpack.i.h.bf16 %v2372_v46  ;;  %v2373_v10 = vunpack.i.l.bf16 %v2372_v46 }
 0x116   : > { %v2369_v56 = vunpack.i.h.bf16 %v2367_v47  ;;  %v2368_v57 = vunpack.i.l.bf16 %v2367_v47 }
 0x117   : > { %v739_v30 = vsel %vm736_vm9, %v730_v26, %v2373_v10  ;;  %v740_v31 = vsel %vm736_vm9, %v731_v27, %v2374_v9 }
 0x118   : > { %v2382_v3 = vpop.permute.xlu1 %2381  ;;  %v737_v11 = vsel %vm736_vm9, %v728_v5, %v2368_v57  ;;  %v738_v12 = vsel %vm736_vm9, %v729_v6, %v2369_v56 }
 0x119   : > { %v2377_v4 = vpop.permute.xlu0 %2376  ;;  %v2384_v21 = vunpack.i.h.bf16 %v2382_v3  ;;  %v2383_v41 = vunpack.i.l.bf16 %v2382_v3 }
 0x11a   : > { %v2379_v7 = vunpack.i.h.bf16 %v2377_v4  ;;  %v2378_v8 = vunpack.i.l.bf16 %v2377_v4 }
 0x11b   : > { %v689_v55 = vsel %vm282_vm0, %v2877_v34, %v2384_v21  ;;  %v688_v56 = vsel %vm282_vm0, %v2861_v22, %v2383_v41 }
 0x11c   : > { %v746_v15 = vsel %vm745_vm10, %v737_v11, %v2378_v8  ;;  %v747_v16 = vsel %vm745_vm10, %v738_v12, %v2379_v7  ;;  %v2392_v19 = vpop.permute.xlu1 %2391 }
 0x11d   : > { %v2387_v20 = vpop.permute.xlu0 %2386  ;;  %v754_v25 = vpack.c.bf16 %v747_v16, %v746_v15  ;;  %v2394_v24 = vunpack.i.h.bf16 %v2392_v19  ;;  %v2393_v42 = vunpack.i.l.bf16 %v2392_v19 }
 0x11e   : > { %v2389_v28 = vunpack.i.h.bf16 %v2387_v20  ;;  %v2388_v29 = vunpack.i.l.bf16 %v2387_v20 }
 0x11f   : > { %2082 = vmatprep.mubr.msk.bf16.mxu0 %vm785_vm11, %v754_v25  ;;  %v691_v57 = vsel %vm282_vm0, %v2893_v50, %v2394_v24  ;;  %v690_v58 = vsel %vm282_vm0, %v2895_v52, %v2393_v42 }
 0x120   : > { %v748_v32 = vsel %vm745_vm10, %v739_v30, %v2388_v29  ;;  %v749_v33 = vsel %vm745_vm10, %v740_v31, %v2389_v28  ;;  %v2402_v36 = vpop.permute.xlu1 %2401 }
 0x121   : > { %v755_v35 = vpack.c.bf16 %v749_v33, %v748_v32  ;;  %v2397_v37 = vpop.permute.xlu0 %2396  ;;  %v2404_v43 = vunpack.i.h.bf16 %v2402_v36  ;;  %v2403_v44 = vunpack.i.l.bf16 %v2402_v36 }
 0x122   : > { %v2399_v45 = vunpack.i.h.bf16 %v2397_v37  ;;  %v2398_v46 = vunpack.i.l.bf16 %v2397_v37 }
 0x123   : > { %2083 = vmatmul.mubr.msk.bf16.vlgmr.msra.gmra.mrb[0].mxu0 %vm785_vm11, %v755_v35  ;;  %v699_v59 = vsel %vm692_vm5, %v690_v58, %v2403_v44  ;;  %v700_v60 = vsel %vm692_vm5, %v691_v57, %v2404_v43 }
 0x124   : > { %v2412_v38 = vpop.permute.xlu1 %2411  ;;  %v698_v61 = vsel %vm692_vm5, %v689_v55, %v2399_v45  ;;  %v697_v62 = vsel %vm692_vm5, %v688_v56, %v2398_v46  ;;  %v2471_v55 = vld [vmem:[#allocation8] sm:$0xff]   ;;  %v1967_v56 = vld [vmem:[#allocation6] ss:$0 sm:$0xff] }
 0x125   : > { %v2407_v23 = vpop.permute.xlu0 %2406  ;;  %v2414_v49 = vunpack.i.h.bf16 %v2412_v38  ;;  %v2413_v51 = vunpack.i.l.bf16 %v2412_v38 }
 0x126   : > { %v2409_v53 = vunpack.i.h.bf16 %v2407_v23  ;;  %v2408_v54 = vunpack.i.l.bf16 %v2407_v23 }
 0x127   : > { %v708_v4 = vsel %vm701_vm6, %v699_v59, %v2413_v51  ;;  %v709_v50 = vsel %vm701_vm6, %v700_v60, %v2414_v49  ;;  %v2468_v51 = vld [vmem:[#allocation8 + $0x8] sm:$0xff]  }
 0x128   : > { %v2422_v39 = vpop.permute.xlu1 %2421  ;;  %v706_v52 = vsel %vm701_vm6, %v697_v62, %v2408_v54  ;;  %v707_v5 = vsel %vm701_vm6, %v698_v61, %v2409_v53  ;;  %v2469_v53 = vld [vmem:[#allocation8 + $0x20] sm:$0xff]   ;;  %2090 = vmatprep.subr.bf16.mxu0 %v2468_v51  ;;  %v2470_v54 = vld [vmem:[#allocation8 + $0x28] sm:$0xff]  }
 0x129   : > { %v2417_v40 = vpop.permute.xlu0 %2416  ;;  %v2424_v34 = vunpack.i.h.bf16 %v2422_v39  ;;  %v2423_v2 = vunpack.i.l.bf16 %v2422_v39  ;;  %2130 = vmatprep.subr.bf16.mxu1 %v2469_v53  ;;  %2091 = vmatpush3.bf16.msra.mxu0 %v2468_v51 }
 0x12a   : > { %v2419_v3 = vunpack.i.h.bf16 %v2417_v40  ;;  %v2418_v22 = vunpack.i.l.bf16 %v2417_v40  ;;  %2131 = vmatpush3.bf16.msra.mxu1 %v2469_v53  ;;  %2100 = vmatprep.subr.bf16.mxu0 %v2471_v55  ;;  %v2474_v53 = vld [vmem:[#allocation8 + $0x38] sm:$0xff]  }
 0x12b   : > { %v716_v16 = vsel %vm310_vm3, %v708_v4, %v2423_v2  ;;  %v717_v17 = vsel %vm310_vm3, %v709_v50, %v2424_v34  ;;  %2140 = vmatprep.subr.bf16.mxu1 %v2470_v54 }
 0x12c   : > { %v2432_v47 = vpop.permute.xlu1 %2431  ;;  %v714_v18 = vsel %vm310_vm3, %v706_v52, %v2418_v22  ;;  %v715_v19 = vsel %vm310_vm3, %v707_v5, %v2419_v3  ;;  %v898_v22 = vld [vmem:[#allocation3 + $0x1] sm:$0xff] }
 0x12d   : > { %v2427_v48 = vpop.permute.xlu0 %2426  ;;  %v2434_v6 = vunpack.i.h.bf16 %v2432_v47  ;;  %v2433_v7 = vunpack.i.l.bf16 %v2432_v47 }
 0x12e   : > { %v2429_v8 = vunpack.i.h.bf16 %v2427_v48  ;;  %v2428_v9 = vunpack.i.l.bf16 %v2427_v48 }
 0x12f   : > { %v725_v28 = vsel %vm718_vm7, %v716_v16, %v2433_v7  ;;  %v726_v29 = vsel %vm718_vm7, %v717_v17, %v2434_v6 }
 0x130   : > { %v2442_v63 = vpop.permute.xlu1 %2441  ;;  %v723_v30 = vsel %vm718_vm7, %v714_v18, %v2428_v9  ;;  %v724_v31 = vsel %vm718_vm7, %v715_v19, %v2429_v8  ;;  %v3048_v9 = vld [vmem:[#allocation8 + $0x10] sm:$0xff]  }
 0x131   : > { %v2437_v1 = vpop.permute.xlu0 %2436  ;;  %v2444_v10 = vunpack.i.h.bf16 %v2442_v63  ;;  %v2443_v11 = vunpack.i.l.bf16 %v2442_v63 }
 0x132   : > { %v2439_v12 = vunpack.i.h.bf16 %v2437_v1  ;;  %v2438_v13 = vunpack.i.l.bf16 %v2437_v1 }
 0x133   : > { %v734_v32 = vsel %vm727_vm8, %v725_v28, %v2443_v11  ;;  %v735_v33 = vsel %vm727_vm8, %v726_v29, %v2444_v10  ;;  %v2472_v11 = vld [vmem:[#allocation8 + $0x30] sm:$0xff]  }
 0x134   : > { %v2452_v14 = vpop.permute.xlu1 %2451  ;;  %v732_v35 = vsel %vm727_vm8, %v723_v30, %v2438_v13  ;;  %v733_v36 = vsel %vm727_vm8, %v724_v31, %v2439_v12  ;;  %v884_v30 = vld [vmem:[#allocation3] sm:$0xff] }
 0x135   : > { %v2447_v15 = vpop.permute.xlu0 %2446  ;;  %v2454_v20 = vunpack.i.h.bf16 %v2452_v14  ;;  %v2453_v25 = vunpack.i.l.bf16 %v2452_v14 }
 0x136   : > { %v2449_v26 = vunpack.i.h.bf16 %v2447_v15  ;;  %v2448_v27 = vunpack.i.l.bf16 %v2447_v15 }
 0x137   : > { %v743_v41 = vsel %vm736_vm9, %v734_v32, %v2453_v25  ;;  %v744_v24 = vsel %vm736_vm9, %v735_v33, %v2454_v20 }
 0x138   : > { %v2462_v37 = vpop.permute.xlu1 %2461  ;;  %v741_v42 = vsel %vm736_vm9, %v732_v35, %v2448_v27  ;;  %v742_v43 = vsel %vm736_vm9, %v733_v36, %v2449_v26 }
 0x139   : > { %v2457_v38 = vpop.permute.xlu0 %2456  ;;  %v2464_v23 = vunpack.i.h.bf16 %v2462_v37  ;;  %v2463_v39 = vunpack.i.l.bf16 %v2462_v37 }
 0x13a   : > { %v2459_v40 = vunpack.i.h.bf16 %v2457_v38  ;;  %v2458_v21 = vunpack.i.l.bf16 %v2457_v38 }
 0x13b   : > { %v752_v44 = vsel %vm745_vm10, %v743_v41, %v2463_v39  ;;  %v753_v45 = vsel %vm745_vm10, %v744_v24, %v2464_v23 }
 0x13c   : > { %v750_v46 = vsel %vm745_vm10, %v741_v42, %v2458_v21  ;;  %v751_v47 = vsel %vm745_vm10, %v742_v43, %v2459_v40  ;;  %v757_v48 = vpack.c.bf16 %v753_v45, %v752_v44 }
 0x13d   : > { %v756_v49 = vpack.c.bf16 %v751_v47, %v750_v46 }
 0x13f   : > { %2086 = vmatprep.mubr.msk.bf16.mxu0 %vm785_vm11, %v756_v49 }
 0x140   : > { %2087 = vmatmul.mubr.msk.bf16.gmra.mrb[4].mxu0 %vm785_vm11, %v757_v48 }
 0x1f6   : > { %v2084_v57 = vpop.f32.mrb[0].mxu0 }
 0x1f7   : > { %v845_v58 = vadd.f32 %v2084_v57, %v1967_v56  ;;  %v836_v59 = vpop.f32.mrb[1].mxu0  ;;  %v1079_v57 = vld [vmem:[#allocation3 + $0x2] sm:$0xff] }
 0x1f8   : > { %v837_v60 = vadd.f32 %v1967_v56, %v836_v59  ;;  %v2085_v61 = vpop.f32.mrb[2].mxu0 }
 0x1f9   : > { %v869_v62 = vmax.f32 %v845_v58, 0.0  ;;  %v848_v63 = vadd.f32 %v2085_v61, %v1967_v56  ;;  %v839_v1 = vpop.f32.mrb[3].mxu0 }
 0x1fa   : > { %v867_v0 = vmax.f32 %v837_v60, 0.0  ;;  %v840_v34 = vadd.f32 %v1967_v56, %v839_v1 }
 0x1fb   : > { %878 = vst.msk [vmem:[#allocation3 + $0x31] sm:$0xff] %vm310_vm3, %v869_v62  ;;  %v870_v2 = vmax.f32 %v848_v63, 0.0 }
 0x1fc   : > { %876 = vst.msk [vmem:[#allocation3 + $0x11] sm:$0xff] %vm310_vm3, %v867_v0  ;;  %v868_v3 = vmax.f32 %v840_v34, 0.0  ;;  %v2476_v34 = vld [vmem:[#allocation8 + $0x40] sm:$0xff]  }
 0x1fd   : > { %879 = vst.msk [vmem:[#allocation3 + $0x41] sm:$0xff] %vm310_vm3, %v870_v2 }
 0x1fe   : > { %877 = vst.msk [vmem:[#allocation3 + $0x21] sm:$0xff] %vm310_vm3, %v868_v3  ;;  %v1511_v3 = vld [vmem:[#allocation3 + $0x90] sm:$0xff] }
 0x202   : > { %v901_v6 = vld [vmem:[#allocation3 + $0x31] sm:$0xff] }
 0x203   : > { %v899_v4 = vld [vmem:[#allocation3 + $0x11] sm:$0xff] }
 0x204   : > { %v906_v50 = vpack.c.bf16 %v899_v4, %v898_v22  ;;  %v1294_v52 = vld [vmem:[#allocation3 + $0x41] sm:$0xff]  ;;  %v3061_v31 = vld [vmem:[#allocation3 + $0x10] sm:$0xff] }
 0x205   : > { %v900_v5 = vld [vmem:[#allocation3 + $0x21] sm:$0xff]  ;;  %v1300_v10 = vpack.c.bf16 %v1294_v52, %v901_v6  ;;  %v892_v23 = vpack.c.bf16 %v3061_v31, %v884_v30  ;;  %v1397_v40 = vld [vmem:[#allocation3 + $0x12] sm:$0xff] }
 0x206   : > { %2092 = vmatprep.mubr.msk.bf16.mxu0 %vm310_vm3, %v906_v50  ;;  %v3046_v7 = vpack.c.bf16 %v901_v6, %v900_v5  ;;  %v1299_v8 = vpack.c.bf16 %v900_v5, %v899_v4  ;;  %v1398_v36 = vld [vmem:[#allocation3 + $0x22] sm:$0xff]  ;;  %v887_v43 = vld [vmem:[#allocation3 + $0x30] sm:$0xff]  ;;  %v1087_v62 = vpack.c.bf16 %v1397_v40, %v1079_v57 }
 0x207   : > { %v1405_v21 = vpack.c.bf16 %v1398_v36, %v1397_v40  ;;  %v886_v41 = vld [vmem:[#allocation3 + $0x20] sm:$0xff]  ;;  %v1399_v47 = vld [vmem:[#allocation3 + $0x32] sm:$0xff] }
 0x208   : > { %2093 = vmatmul.mubr.msk.bf16.vlgmr.msra.gmra.mrb[8].mxu0 %vm310_vm3, %v3046_v7  ;;  %2132 = vmatprep.mubr.msk.bf16.mxu1 %vm310_vm3, %v1299_v8  ;;  %v1400_v42 = vld [vmem:[#allocation3 + $0x42] sm:$0xff]  ;;  %v893_v45 = vpack.c.bf16 %v887_v43, %v886_v41  ;;  %v1088_v1 = vpack.c.bf16 %v1399_v47, %v1398_v36  ;;  %v1193_v4 = vpack.c.bf16 %v886_v41, %v3061_v31  ;;  %v1617_v6 = vld [vmem:[#allocation3 + $0x91] sm:$0xff] }
 0x209   : > { %2133 = vmatmul.mubr.msk.bf16.vlgmr.msra.gmra.mrb[0].mxu1 %vm310_vm3, %v1300_v10  ;;  %2101 = vmatpush3.bf16.msra.mxu0 %v2471_v55  ;;  %v888_v46 = vld [vmem:[#allocation3 + $0x40] sm:$0xff]  ;;  %v1406_v49 = vpack.c.bf16 %v1400_v42, %v1399_v47  ;;  %v2475_v55 = vld [vmem:[#allocation8 + $0x18] sm:$0xff]  }
 0x20a   : > { %2141 = vmatpush3.bf16.msra.mxu1 %v2470_v54  ;;  %2110 = vmatprep.subr.bf16.mxu0 %v3048_v9 }
 0x20b   : > { %2150 = vmatprep.subr.bf16.mxu1 %v2472_v11 }
 0x213   : > { %v2088_v12 = vpop.f32.mrb[4].mxu0 }
 0x214   : > { %v861_v13 = vadd.f32 %v2088_v12, %v1967_v56  ;;  %v852_v14 = vpop.f32.mrb[5].mxu0 }
 0x215   : > { %v853_v15 = vadd.f32 %v1967_v56, %v852_v14  ;;  %v2089_v16 = vpop.f32.mrb[6].mxu0 }
 0x216   : > { %v873_v17 = vmax.f32 %v861_v13, 0.0  ;;  %v864_v18 = vadd.f32 %v2089_v16, %v1967_v56  ;;  %v855_v19 = vpop.f32.mrb[7].mxu0 }
 0x217   : > { %v871_v20 = vmax.f32 %v853_v15, 0.0  ;;  %v856_v25 = vadd.f32 %v1967_v56, %v855_v19 }
 0x218   : > { %882 = vst.msk [vmem:[#allocation3 + $0x71] sm:$0xff] %vm310_vm3, %v873_v17  ;;  %v874_v26 = vmax.f32 %v864_v18, 0.0 }
 0x219   : > { %880 = vst.msk [vmem:[#allocation3 + $0x51] sm:$0xff] %vm310_vm3, %v871_v20  ;;  %v872_v27 = vmax.f32 %v856_v25, 0.0  ;;  %v2020_v20 = vld [vmem:[#allocation9] ss:$0 sm:$0xff] }
 0x21a   : > { %883 = vst.msk [vmem:[#allocation3 + $0x81] sm:$0xff] %vm310_vm3, %v874_v26 }
 0x21b   : > { %881 = vst.msk [vmem:[#allocation3 + $0x61] sm:$0xff] %vm310_vm3, %v872_v27 }
 0x21f   : > { %v905_v35 = vld [vmem:[#allocation3 + $0x71] sm:$0xff] }
 0x220   : > { %v903_v28 = vld [vmem:[#allocation3 + $0x51] sm:$0xff] }
 0x221   : > { %v3059_v29 = vpack.c.bf16 %v903_v28, %v1294_v52  ;;  %v3063_v32 = vld [vmem:[#allocation3 + $0x81] sm:$0xff]  ;;  %v889_v24 = vld [vmem:[#allocation3 + $0x50] sm:$0xff]  ;;  %v1194_v52 = vpack.c.bf16 %v888_v46, %v887_v43 }
 0x222   : > { %v904_v33 = vld [vmem:[#allocation3 + $0x61] sm:$0xff]  ;;  %v1302_v39 = vpack.c.bf16 %v3063_v32, %v905_v35  ;;  %v894_v48 = vpack.c.bf16 %v889_v24, %v888_v46  ;;  %v1401_v51 = vld [vmem:[#allocation3 + $0x52] sm:$0xff] }
 0x223   : > { %2096 = vmatprep.mubr.msk.bf16.mxu0 %vm310_vm3, %v3059_v29  ;;  %v3067_v37 = vpack.c.bf16 %v905_v35, %v904_v33  ;;  %v1301_v38 = vpack.c.bf16 %v904_v33, %v903_v28  ;;  %v1402_v44 = vld [vmem:[#allocation3 + $0x62] sm:$0xff]  ;;  %v891_v59 = vld [vmem:[#allocation3 + $0x70] sm:$0xff]  ;;  %v1089_v0 = vpack.c.bf16 %v1401_v51, %v1400_v42 }
 0x224   : > { %v1407_v54 = vpack.c.bf16 %v1402_v44, %v1401_v51  ;;  %v890_v56 = vld [vmem:[#allocation3 + $0x60] sm:$0xff]  ;;  %v1403_v61 = vld [vmem:[#allocation3 + $0x72] sm:$0xff] }
 0x225   : > { %2097 = vmatmul.mubr.msk.bf16.gmra.mrb[12].mxu0 %vm310_vm3, %v3067_v37  ;;  %2136 = vmatprep.mubr.msk.bf16.mxu1 %vm310_vm3, %v1301_v38  ;;  %v1404_v58 = vld [vmem:[#allocation3 + $0x82] sm:$0xff]  ;;  %v895_v60 = vpack.c.bf16 %v891_v59, %v890_v56  ;;  %v1090_v22 = vpack.c.bf16 %v1403_v61, %v1402_v44  ;;  %v1195_v5 = vpack.c.bf16 %v890_v56, %v889_v24 }
 0x226   : > { %2102 = vmatprep.mubr.msk.bf16.mxu0 %vm310_vm3, %v892_v23  ;;  %2137 = vmatmul.mubr.msk.bf16.gmra.mrb[4].mxu1 %vm310_vm3, %v1302_v39  ;;  %v1408_v63 = vpack.c.bf16 %v1404_v58, %v1403_v61  ;;  %v1510_v2 = vld [vmem:[#allocation3 + $0x80] sm:$0xff] }
 0x227   : > { %2142 = vmatprep.mubr.msk.bf16.mxu1 %vm310_vm3, %v1405_v21  ;;  %v1515_v50 = vpack.c.bf16 %v1511_v3, %v1510_v2  ;;  %v1196_v8 = vpack.c.bf16 %v1510_v2, %v891_v59 }
 0x22d   : > { %2103 = vmatmul.mubr.msk.bf16.vlgmr.msra.gmra.mrb[8].mxu0 %vm310_vm3, %v893_v45 }
 0x22e   : > { %2106 = vmatprep.mubr.msk.bf16.mxu0 %vm310_vm3, %v894_v48  ;;  %2143 = vmatmul.mubr.msk.bf16.vlgmr.msra.gmra.mrb[0].mxu1 %vm310_vm3, %v1406_v49 }
 0x22f   : > { %2151 = vmatpush3.bf16.msra.mxu1 %v2472_v11  ;;  %2146 = vmatprep.mubr.msk.bf16.mxu1 %vm310_vm3, %v1407_v54 }
 0x230   : > { %2111 = vmatpush3.bf16.msra.mxu0 %v3048_v9  ;;  %2160 = vmatprep.subr.bf16.mxu1 %v2474_v53  ;;  %v1621_v9 = vpack.c.bf16 %v1617_v6, %v3063_v32 }
 0x231   : > { %2120 = vmatprep.subr.bf16.mxu0 %v2475_v55 }
 0x235   : > { %2107 = vmatmul.mubr.msk.bf16.gmra.mrb[12].mxu0 %vm310_vm3, %v895_v60 }
 0x236   : > { %2112 = vmatprep.mubr.msk.bf16.mxu0 %vm310_vm3, %v1087_v62  ;;  %2147 = vmatmul.mubr.msk.bf16.gmra.mrb[4].mxu1 %vm310_vm3, %v1408_v63 }
 0x237   : > { %2152 = vmatprep.mubr.msk.bf16.mxu1 %vm310_vm3, %v893_v45 }
 0x23d   : > { %2113 = vmatmul.mubr.msk.bf16.vlgmr.msra.gmra.mrb[8].mxu0 %vm310_vm3, %v1088_v1 }
 0x23e   : > { %2116 = vmatprep.mubr.msk.bf16.mxu0 %vm310_vm3, %v1089_v0  ;;  %2153 = vmatmul.mubr.msk.bf16.vlgmr.msra.gmra.mrb[0].mxu1 %vm310_vm3, %v894_v48 }
 0x23f   : > { %2161 = vmatpush3.bf16.msra.mxu1 %v2474_v53  ;;  %2156 = vmatprep.mubr.msk.bf16.mxu1 %vm310_vm3, %v895_v60 }
 0x240   : > { %2121 = vmatpush3.bf16.msra.mxu0 %v2475_v55  ;;  %2170 = vmatprep.subr.bf16.mxu1 %v2476_v34 }
 0x245   : > { %2117 = vmatmul.mubr.msk.bf16.gmra.mrb[12].mxu0 %vm310_vm3, %v1090_v22 }
 0x246   : > { %2122 = vmatprep.mubr.msk.bf16.mxu0 %vm310_vm3, %v1193_v4  ;;  %2157 = vmatmul.mubr.msk.bf16.gmra.mrb[4].mxu1 %vm310_vm3, %v1515_v50 }
 0x247   : > { %2162 = vmatprep.mubr.msk.bf16.mxu1 %vm310_vm3, %v3046_v7  ;;  %v1723_v7 = vld [vmem:[#allocation3 + $0x92] sm:$0xff] }
 0x248   : > { %v1727_v10 = vpack.c.bf16 %v1723_v7, %v1404_v58 }
 0x24d   : > { %2123 = vmatmul.mubr.msk.bf16.vlgmr.msra.gmra.mrb[8].mxu0 %vm310_vm3, %v1194_v52 }
 0x24e   : > { %2126 = vmatprep.mubr.msk.bf16.mxu0 %vm310_vm3, %v1195_v5  ;;  %2163 = vmatmul.mubr.msk.bf16.vlgmr.msra.gmra.mrb[0].mxu1 %vm310_vm3, %v3059_v29 }
 0x24f   : > { %2171 = vmatpush3.bf16.msra.mxu1 %v2476_v34  ;;  %2166 = vmatprep.mubr.msk.bf16.mxu1 %vm310_vm3, %v3067_v37 }
 0x255   : > { %2127 = vmatmul.mubr.msk.bf16.gmra.mrb[12].mxu0 %vm310_vm3, %v1196_v8 }
 0x256   : > { %2167 = vmatmul.mubr.msk.bf16.gmra.mrb[4].mxu1 %vm310_vm3, %v1621_v9 }
 0x257   : > { %2172 = vmatprep.mubr.msk.bf16.mxu1 %vm310_vm3, %v1088_v1 }
 0x25e   : > { %2173 = vmatmul.mubr.msk.bf16.vlgmr.msra.gmra.mrb[0].mxu1 %vm310_vm3, %v1089_v0 }
 0x25f   : > { %2176 = vmatprep.mubr.msk.bf16.mxu1 %vm310_vm3, %v1090_v22 }
 0x266   : > { %2177 = vmatmul.mubr.msk.bf16.gmra.mrb[4].mxu1 %vm310_vm3, %v1727_v10 }
 0x320   : > { %v2124_v11 = vpop.f32.mrb[8].mxu0 }
 0x321   : > { %v1252_v12 = vpop.f32.mrb[9].mxu0 }
 0x322   : > { %v2125_v13 = vpop.f32.mrb[10].mxu0 }
 0x323   : > { %v1255_v14 = vpop.f32.mrb[11].mxu0 }
 0x328   : > { %v2128_v15 = vpop.f32.mrb[12].mxu0 }
 0x329   : > { %v1268_v16 = vpop.f32.mrb[13].mxu0 }
 0x32a   : > { %v2129_v17 = vpop.f32.mrb[14].mxu0 }
 0x32b   : > { %v1271_v18 = vpop.f32.mrb[15].mxu0 }
 0x331   : > { %v2174_v19 = vpop.f32.mrb[0].mxu1 }
 0x332   : > { %v2180_v25 = vadd.f32 %v2174_v19, %v2124_v11  ;;  %v1783_v26 = vpop.f32.mrb[1].mxu1 }
 0x333   : > { %v2181_v27 = vadd.f32 %v1783_v26, %v1252_v12  ;;  %v2175_v28 = vpop.f32.mrb[2].mxu1 }
 0x334   : > { %v1831_v29 = vadd.f32 %v2180_v25, %v2020_v20  ;;  %v2182_v30 = vadd.f32 %v2175_v28, %v2125_v13  ;;  %v1786_v31 = vpop.f32.mrb[3].mxu1 }
 0x335   : > { %v1829_v32 = vadd.f32 %v2181_v27, %v2020_v20  ;;  %v2183_v33 = vadd.f32 %v1786_v31, %v1255_v14 }
 0x336   : > { %v1839_v35 = vmax.f32 %v1831_v29, 0.0  ;;  %v1832_v36 = vadd.f32 %v2182_v30, %v2020_v20 }
 0x337   : > { %v1837_v37 = vmax.f32 %v1829_v32, 0.0  ;;  %v1830_v38 = vadd.f32 %v2183_v33, %v2020_v20 }
 0x338   : > { %1847 = vst.msk [vmem:[%s3113_s21 + $0x10] sm:$0xff] %vm310_vm3, %v1839_v35  ;;  %v1840_v23 = vmax.f32 %v1832_v36, 0.0 }
 0x339   : > { %1845 = vst.msk [vmem:[%s3113_s21] sm:$0xff] %vm310_vm3, %v1837_v37  ;;  %v1838_v39 = vmax.f32 %v1830_v38, 0.0  ;;  %v2178_v40 = vpop.f32.mrb[4].mxu1 }
 0x33a   : > { %1848 = vst.msk [vmem:[%s3113_s21 + $0x18] sm:$0xff] %vm310_vm3, %v1840_v23  ;;  %v2184_v21 = vadd.f32 %v2178_v40, %v2128_v15  ;;  %v1799_v41 = vpop.f32.mrb[5].mxu1 }
 0x33b   : > { %1846 = vst.msk [vmem:[%s3113_s21 + $0x8] sm:$0xff] %vm310_vm3, %v1838_v39  ;;  %v2185_v24 = vadd.f32 %v1799_v41, %v1268_v16  ;;  %v2179_v42 = vpop.f32.mrb[6].mxu1 }
 0x33c   : > { %v1835_v43 = vadd.f32 %v2184_v21, %v2020_v20  ;;  %v2186_v44 = vadd.f32 %v2179_v42, %v2129_v17  ;;  %v1802_v45 = vpop.f32.mrb[7].mxu1 }
 0x33d   : > { %v1833_v46 = vadd.f32 %v2185_v24, %v2020_v20  ;;  %v2187_v47 = vadd.f32 %v1802_v45, %v1271_v18 }
 0x33e   : > { %v1843_v48 = vmax.f32 %v1835_v43, 0.0  ;;  %v1836_v49 = vadd.f32 %v2186_v44, %v2020_v20 }
 0x33f   : > { %v1841_v51 = vmax.f32 %v1833_v46, 0.0  ;;  %v1834_v53 = vadd.f32 %v2187_v47, %v2020_v20 }
 0x340   : > { %1851 = vst.msk [vmem:[%s3113_s21 + $0x30] sm:$0xff] %vm310_vm3, %v1843_v48  ;;  %v1844_v54 = vmax.f32 %v1836_v49, 0.0 }
 0x341   : > { %1849 = vst.msk [vmem:[%s3113_s21 + $0x20] sm:$0xff] %vm310_vm3, %v1841_v51  ;;  %v1842_v55 = vmax.f32 %v1834_v53, 0.0 }
 0x342   : > { %1852 = vst.msk [vmem:[%s3113_s21 + $0x38] sm:$0xff] %vm310_vm3, %v1844_v54 }
 0x343   : > { %1850 = vst.msk [vmem:[%s3113_s21 + $0x28] sm:$0xff] %vm310_vm3, %v1842_v55 }
 0x344 PF: > { %s18_s18 = sadd.s32 1, %s2607_s18  }
 0x345   : > { %p15_p8 = scmp.ge.s32.totalorder %s18_s18, 4  }
 0x347   :  { %17 = sbr.rel (!%p15_p8) target bundleno = 3 (0x3), region = 101 }
 0x34e   :  { %1875 = vsyncpa [#allocation5], 1 }
 0x34f   :  { %1877 = vsyncpa [#allocation5 + $0x1], 1 }
 0x350   :  { %1878 = vsyncpa [#allocation7], 1 }
 0x351   :  { %1879 = vsyncpa [#allocation10], 1 }

// kernel: _lambda_.4
= control target key start
LH: loop header
LB: loop body
LE: loop exit
PB: predicated region body
PF: predicated region fallthrough
CT: control target
= control target key end

     0   :  { %s8259_s1 = inlined_call_operand.vmem [shape: bf16[1024,1024], index: 1, kind: input, shape index: {}]   ;;  %s8260_s0 = inlined_call_operand.vmem [shape: f32[8,1024], index: 0, kind: input, shape index: {}]   ;;  %s8261_s3 = inlined_call_operand.vmem [shape: bf16[1024,128], index: 3, kind: input, shape index: {}]   ;;  %s8262_s2 = inlined_call_operand.vmem [shape: f32[1,1024], index: 2, kind: input, shape index: {}]   ;;  %s8263_s5 = inlined_call_operand.vmem [shape: bf16[128,1024], index: 5, kind: input, shape index: {}]   ;;  %s8264_s4 = inlined_call_operand.vmem [shape: f32[1,128], index: 4, kind: input, shape index: {}]   ;;  %s8265_s6 = inlined_call_operand.vmem [shape: f32[1,1024], index: 6, kind: input, shape index: {}]   ;;  %s8266_s7 = inlined_call_operand.vmem [shape: f32[8,1024], index: 7, kind: output, shape index: {}]  }
   0x1   :  { %v63_v0 = vld [vmem:[%s8259_s1] sm:$0xff]  ;;  %v48_v53 = vld [vmem:[%s8260_s0 + $0x8] sm:$0xff]  ;;  %v50_v54 = vld [vmem:[%s8260_s0 + $0x18] sm:$0xff] }
   0x2   :  { %v67_v1 = vld [vmem:[%s8259_s1 + $0x20] sm:$0xff]  ;;  %v6194_v58 = vpack.c.bf16 %v48_v53, %v48_v53  ;;  %v6196_v59 = vpack.c.bf16 %v50_v54, %v50_v54 }
   0x3   :  { %v191_v2 = vld [vmem:[%s8259_s1 + $0x400] sm:$0xff]  ;;  %v5224_v3 = vcombine.high %v63_v0, %v67_v1  ;;  %v5223_v5 = vcombine.low %v63_v0, %v67_v1 }
   0x4   :  { %v195_v4 = vld [vmem:[%s8259_s1 + $0x420] sm:$0xff]  ;;  %3167 = vmatprep.mubr.bf16.mxu0 %v6194_v58  ;;  %3208 = vmatprep.mubr.bf16.mxu1 %v6196_v59 }
   0x5   :  { %v71_v6 = vld [vmem:[%s8259_s1 + $0x40] sm:$0xff]  ;;  %v5352_v8 = vcombine.high %v191_v2, %v195_v4  ;;  %v5351_v9 = vcombine.low %v191_v2, %v195_v4  ;;  %3135 = vmatprep.subr.bf16.mxu0 %v5224_v3 }
   0x6   :  { %v75_v7 = vld [vmem:[%s8259_s1 + $0x60] sm:$0xff]  ;;  %3136 = vmatpush1.bf16.msra.mxu0 %v5223_v5 }
   0x7   :  { %v5232_v10 = vcombine.high %v71_v6, %v75_v7  ;;  %v199_v11 = vld [vmem:[%s8259_s1 + $0x440] sm:$0xff]  ;;  %3176 = vmatprep.subr.bf16.mxu1 %v5352_v8  ;;  %v5231_v18 = vcombine.low %v71_v6, %v75_v7 }
   0x8   :  { %v203_v12 = vld [vmem:[%s8259_s1 + $0x460] sm:$0xff]  ;;  %3177 = vmatpush1.bf16.msra.mxu1 %v5351_v9 }
   0x9   :  { %v79_v13 = vld [vmem:[%s8259_s1 + $0x80] sm:$0xff]  ;;  %v5360_v14 = vcombine.high %v199_v11, %v203_v12  ;;  %3137 = vmatprep.subr.bf16.mxu0 %v5232_v10  ;;  %v5359_v19 = vcombine.low %v199_v11, %v203_v12 }
   0xa   :  { %v83_v15 = vld [vmem:[%s8259_s1 + $0xa0] sm:$0xff]  ;;  %3138 = vmatpush1.bf16.msra.mxu0 %v5231_v18 }
   0xb   :  { %v207_v16 = vld [vmem:[%s8259_s1 + $0x480] sm:$0xff]  ;;  %v5240_v20 = vcombine.high %v79_v13, %v83_v15  ;;  %3178 = vmatprep.subr.bf16.mxu1 %v5360_v14  ;;  %v5239_v26 = vcombine.low %v79_v13, %v83_v15 }
   0xc   :  { %v211_v17 = vld [vmem:[%s8259_s1 + $0x4a0] sm:$0xff]  ;;  %3179 = vmatpush1.bf16.msra.mxu1 %v5359_v19 }
   0xd   :  { %v5368_v21 = vcombine.high %v207_v16, %v211_v17  ;;  %v87_v22 = vld [vmem:[%s8259_s1 + $0xc0] sm:$0xff]  ;;  %3139 = vmatprep.subr.bf16.mxu0 %v5240_v20  ;;  %v5367_v27 = vcombine.low %v207_v16, %v211_v17 }
   0xe   :  { %v91_v23 = vld [vmem:[%s8259_s1 + $0xe0] sm:$0xff]  ;;  %3140 = vmatpush1.bf16.msra.mxu0 %v5239_v26 }
   0xf   :  { %v215_v24 = vld [vmem:[%s8259_s1 + $0x4c0] sm:$0xff]  ;;  %v5248_v28 = vcombine.high %v87_v22, %v91_v23  ;;  %3180 = vmatprep.subr.bf16.mxu1 %v5368_v21  ;;  %v5247_v34 = vcombine.low %v87_v22, %v91_v23 }
  0x10   :  { %v219_v25 = vld [vmem:[%s8259_s1 + $0x4e0] sm:$0xff]  ;;  %3181 = vmatpush1.bf16.msra.mxu1 %v5367_v27 }
  0x11   :  { %v5376_v29 = vcombine.high %v215_v24, %v219_v25  ;;  %v95_v30 = vld [vmem:[%s8259_s1 + $0x100] sm:$0xff]  ;;  %3141 = vmatprep.subr.bf16.mxu0 %v5248_v28  ;;  %v5375_v35 = vcombine.low %v215_v24, %v219_v25 }
  0x12   :  { %v99_v31 = vld [vmem:[%s8259_s1 + $0x120] sm:$0xff]  ;;  %3142 = vmatpush1.bf16.msra.mxu0 %v5247_v34 }
  0x13   :  { %v223_v32 = vld [vmem:[%s8259_s1 + $0x500] sm:$0xff]  ;;  %v5256_v36 = vcombine.high %v95_v30, %v99_v31  ;;  %3182 = vmatprep.subr.bf16.mxu1 %v5376_v29  ;;  %v5255_v42 = vcombine.low %v95_v30, %v99_v31 }
  0x14   :  { %v227_v33 = vld [vmem:[%s8259_s1 + $0x520] sm:$0xff]  ;;  %3183 = vmatpush1.bf16.msra.mxu1 %v5375_v35 }
  0x15   :  { %v5384_v37 = vcombine.high %v223_v32, %v227_v33  ;;  %v103_v38 = vld [vmem:[%s8259_s1 + $0x140] sm:$0xff]  ;;  %3143 = vmatprep.subr.bf16.mxu0 %v5256_v36  ;;  %v5383_v43 = vcombine.low %v223_v32, %v227_v33 }
  0x16   :  { %v107_v39 = vld [vmem:[%s8259_s1 + $0x160] sm:$0xff]  ;;  %3144 = vmatpush1.bf16.msra.mxu0 %v5255_v42 }
  0x17   :  { %v231_v40 = vld [vmem:[%s8259_s1 + $0x540] sm:$0xff]  ;;  %v5264_v44 = vcombine.high %v103_v38, %v107_v39  ;;  %3184 = vmatprep.subr.bf16.mxu1 %v5384_v37  ;;  %v5263_v50 = vcombine.low %v103_v38, %v107_v39 }
  0x18   :  { %v235_v41 = vld [vmem:[%s8259_s1 + $0x560] sm:$0xff]  ;;  %3185 = vmatpush1.bf16.msra.mxu1 %v5383_v43 }
  0x19   :  { %v5392_v45 = vcombine.high %v231_v40, %v235_v41  ;;  %v111_v46 = vld [vmem:[%s8259_s1 + $0x180] sm:$0xff]  ;;  %3145 = vmatprep.subr.bf16.mxu0 %v5264_v44  ;;  %v5391_v51 = vcombine.low %v231_v40, %v235_v41 }
  0x1a   :  { %v115_v47 = vld [vmem:[%s8259_s1 + $0x1a0] sm:$0xff]  ;;  %3146 = vmatpush1.bf16.msra.mxu0 %v5263_v50 }
  0x1b   :  { %v239_v48 = vld [vmem:[%s8259_s1 + $0x580] sm:$0xff]  ;;  %v5272_v52 = vcombine.high %v111_v46, %v115_v47  ;;  %3186 = vmatprep.subr.bf16.mxu1 %v5392_v45  ;;  %v5271_v62 = vcombine.low %v111_v46, %v115_v47 }
  0x1c   :  { %v243_v49 = vld [vmem:[%s8259_s1 + $0x5a0] sm:$0xff]  ;;  %3187 = vmatpush1.bf16.msra.mxu1 %v5391_v51 }
  0x1d   :  { %v5400_v55 = vcombine.high %v239_v48, %v243_v49  ;;  %v119_v56 = vld [vmem:[%s8259_s1 + $0x1c0] sm:$0xff]  ;;  %3147 = vmatprep.subr.bf16.mxu0 %v5272_v52  ;;  %v5399_v63 = vcombine.low %v239_v48, %v243_v49 }
  0x1e   :  { %v123_v57 = vld [vmem:[%s8259_s1 + $0x1e0] sm:$0xff]  ;;  %3148 = vmatpush1.bf16.msra.mxu0 %v5271_v62 }
  0x1f   :  { %v247_v60 = vld [vmem:[%s8259_s1 + $0x5c0] sm:$0xff]  ;;  %v5280_v0 = vcombine.high %v119_v56, %v123_v57  ;;  %3188 = vmatprep.subr.bf16.mxu1 %v5400_v55  ;;  %v5279_v6 = vcombine.low %v119_v56, %v123_v57 }
  0x20   :  { %v251_v61 = vld [vmem:[%s8259_s1 + $0x5e0] sm:$0xff]  ;;  %3189 = vmatpush1.bf16.msra.mxu1 %v5399_v63 }
  0x21   :  { %v5408_v1 = vcombine.high %v247_v60, %v251_v61  ;;  %v127_v2 = vld [vmem:[%s8259_s1 + $0x200] sm:$0xff]  ;;  %3149 = vmatprep.subr.bf16.mxu0 %v5280_v0  ;;  %v5407_v7 = vcombine.low %v247_v60, %v251_v61 }
  0x22   :  { %v131_v3 = vld [vmem:[%s8259_s1 + $0x220] sm:$0xff]  ;;  %3150 = vmatpush1.bf16.msra.mxu0 %v5279_v6 }
  0x23   :  { %v255_v4 = vld [vmem:[%s8259_s1 + $0x600] sm:$0xff]  ;;  %v5288_v8 = vcombine.high %v127_v2, %v131_v3  ;;  %3190 = vmatprep.subr.bf16.mxu1 %v5408_v1  ;;  %v5287_v14 = vcombine.low %v127_v2, %v131_v3 }
  0x24   :  { %v259_v5 = vld [vmem:[%s8259_s1 + $0x620] sm:$0xff]  ;;  %3191 = vmatpush1.bf16.msra.mxu1 %v5407_v7 }
  0x25   :  { %v5416_v9 = vcombine.high %v255_v4, %v259_v5  ;;  %v135_v10 = vld [vmem:[%s8259_s1 + $0x240] sm:$0xff]  ;;  %3151 = vmatprep.subr.bf16.mxu0 %v5288_v8  ;;  %v5415_v15 = vcombine.low %v255_v4, %v259_v5 }
  0x26   :  { %v139_v11 = vld [vmem:[%s8259_s1 + $0x260] sm:$0xff]  ;;  %3152 = vmatpush1.bf16.msra.mxu0 %v5287_v14 }
  0x27   :  { %v263_v12 = vld [vmem:[%s8259_s1 + $0x640] sm:$0xff]  ;;  %v5296_v16 = vcombine.high %v135_v10, %v139_v11  ;;  %3192 = vmatprep.subr.bf16.mxu1 %v5416_v9  ;;  %v5295_v22 = vcombine.low %v135_v10, %v139_v11  ;;  %v49_v11 = vld [vmem:[%s8260_s0 + $0x10] sm:$0xff] }
  0x28   :  { %v267_v13 = vld [vmem:[%s8259_s1 + $0x660] sm:$0xff]  ;;  %3193 = vmatpush1.bf16.msra.mxu1 %v5415_v15 }
  0x29   :  { %v5424_v17 = vcombine.high %v263_v12, %v267_v13  ;;  %v143_v18 = vld [vmem:[%s8259_s1 + $0x280] sm:$0xff]  ;;  %3153 = vmatprep.subr.bf16.mxu0 %v5296_v16  ;;  %v5423_v23 = vcombine.low %v263_v12, %v267_v13 }
  0x2a   :  { %v147_v19 = vld [vmem:[%s8259_s1 + $0x2a0] sm:$0xff]  ;;  %3154 = vmatpush1.bf16.msra.mxu0 %v5295_v22  ;;  %v54_v22 = vld [vmem:[%s8260_s0 + $0x38] sm:$0xff] }
  0x2b   :  { %v271_v20 = vld [vmem:[%s8259_s1 + $0x680] sm:$0xff]  ;;  %v5304_v24 = vcombine.high %v143_v18, %v147_v19  ;;  %3194 = vmatprep.subr.bf16.mxu1 %v5424_v17  ;;  %v5303_v30 = vcombine.low %v143_v18, %v147_v19  ;;  %v52_v19 = vld [vmem:[%s8260_s0 + $0x28] sm:$0xff] }
  0x2c   :  { %v275_v21 = vld [vmem:[%s8259_s1 + $0x6a0] sm:$0xff]  ;;  %3195 = vmatpush1.bf16.msra.mxu1 %v5423_v23 }
  0x2d   :  { %v5432_v25 = vcombine.high %v271_v20, %v275_v21  ;;  %v151_v26 = vld [vmem:[%s8259_s1 + $0x2c0] sm:$0xff]  ;;  %3155 = vmatprep.subr.bf16.mxu0 %v5304_v24  ;;  %v5431_v31 = vcombine.low %v271_v20, %v275_v21  ;;  %v6337_v20 = vpack.c.bf16 %v49_v11, %v49_v11 }
  0x2e   :  { %v155_v27 = vld [vmem:[%s8259_s1 + $0x2e0] sm:$0xff]  ;;  %3156 = vmatpush1.bf16.msra.mxu0 %v5303_v30 }
  0x2f   :  { %v279_v28 = vld [vmem:[%s8259_s1 + $0x6c0] sm:$0xff]  ;;  %v5312_v32 = vcombine.high %v151_v26, %v155_v27  ;;  %3196 = vmatprep.subr.bf16.mxu1 %v5432_v25  ;;  %v5311_v38 = vcombine.low %v151_v26, %v155_v27 }
  0x30   :  { %v283_v29 = vld [vmem:[%s8259_s1 + $0x6e0] sm:$0xff]  ;;  %3197 = vmatpush1.bf16.msra.mxu1 %v5431_v31  ;;  %v6357_v31 = vpack.c.bf16 %v54_v22, %v54_v22 }
  0x31   :  { %v5440_v33 = vcombine.high %v279_v28, %v283_v29  ;;  %v159_v34 = vld [vmem:[%s8259_s1 + $0x300] sm:$0xff]  ;;  %3157 = vmatprep.subr.bf16.mxu0 %v5312_v32  ;;  %v5439_v39 = vcombine.low %v279_v28, %v283_v29  ;;  %v6348_v28 = vpack.c.bf16 %v52_v19, %v52_v19 }
  0x32   :  { %v163_v35 = vld [vmem:[%s8259_s1 + $0x320] sm:$0xff]  ;;  %3158 = vmatpush1.bf16.msra.mxu0 %v5311_v38 }
  0x33   :  { %v287_v36 = vld [vmem:[%s8259_s1 + $0x700] sm:$0xff]  ;;  %v5320_v40 = vcombine.high %v159_v34, %v163_v35  ;;  %3198 = vmatprep.subr.bf16.mxu1 %v5440_v33  ;;  %v5319_v46 = vcombine.low %v159_v34, %v163_v35 }
  0x34   :  { %v291_v37 = vld [vmem:[%s8259_s1 + $0x720] sm:$0xff]  ;;  %3199 = vmatpush1.bf16.msra.mxu1 %v5439_v39 }
  0x35   :  { %v5448_v41 = vcombine.high %v287_v36, %v291_v37  ;;  %v167_v42 = vld [vmem:[%s8259_s1 + $0x340] sm:$0xff]  ;;  %3159 = vmatprep.subr.bf16.mxu0 %v5320_v40  ;;  %v5447_v47 = vcombine.low %v287_v36, %v291_v37 }
  0x36   :  { %v171_v43 = vld [vmem:[%s8259_s1 + $0x360] sm:$0xff]  ;;  %3160 = vmatpush1.bf16.msra.mxu0 %v5319_v46 }
  0x37   :  { %v295_v44 = vld [vmem:[%s8259_s1 + $0x740] sm:$0xff]  ;;  %v5328_v48 = vcombine.high %v167_v42, %v171_v43  ;;  %3200 = vmatprep.subr.bf16.mxu1 %v5448_v41  ;;  %v5327_v54 = vcombine.low %v167_v42, %v171_v43 }
  0x38   :  { %v299_v45 = vld [vmem:[%s8259_s1 + $0x760] sm:$0xff]  ;;  %3201 = vmatpush1.bf16.msra.mxu1 %v5447_v47 }
  0x39   :  { %v5456_v49 = vcombine.high %v295_v44, %v299_v45  ;;  %v175_v50 = vld [vmem:[%s8259_s1 + $0x380] sm:$0xff]  ;;  %3161 = vmatprep.subr.bf16.mxu0 %v5328_v48  ;;  %v5455_v55 = vcombine.low %v295_v44, %v299_v45 }
  0x3a   :  { %v179_v51 = vld [vmem:[%s8259_s1 + $0x3a0] sm:$0xff]  ;;  %3162 = vmatpush1.bf16.msra.mxu0 %v5327_v54 }
  0x3b   :  { %v303_v52 = vld [vmem:[%s8259_s1 + $0x780] sm:$0xff]  ;;  %v5336_v56 = vcombine.high %v175_v50, %v179_v51  ;;  %3202 = vmatprep.subr.bf16.mxu1 %v5456_v49  ;;  %v5335_v0 = vcombine.low %v175_v50, %v179_v51 }
  0x3c   :  { %v307_v53 = vld [vmem:[%s8259_s1 + $0x7a0] sm:$0xff]  ;;  %3203 = vmatpush1.bf16.msra.mxu1 %v5455_v55 }
  0x3d   :  { %v5464_v57 = vcombine.high %v303_v52, %v307_v53  ;;  %v183_v60 = vld [vmem:[%s8259_s1 + $0x3c0] sm:$0xff]  ;;  %3163 = vmatprep.subr.bf16.mxu0 %v5336_v56  ;;  %v5463_v1 = vcombine.low %v303_v52, %v307_v53 }
  0x3e   :  { %v187_v61 = vld [vmem:[%s8259_s1 + $0x3e0] sm:$0xff]  ;;  %3164 = vmatpush1.bf16.msra.mxu0 %v5335_v0 }
  0x3f   :  { %v311_v62 = vld [vmem:[%s8259_s1 + $0x7c0] sm:$0xff]  ;;  %v5344_v2 = vcombine.high %v183_v60, %v187_v61  ;;  %3204 = vmatprep.subr.bf16.mxu1 %v5464_v57  ;;  %v5343_v8 = vcombine.low %v183_v60, %v187_v61 }
  0x40   :  { %v315_v63 = vld [vmem:[%s8259_s1 + $0x7e0] sm:$0xff]  ;;  %3205 = vmatpush1.bf16.msra.mxu1 %v5463_v1 }
  0x41   :  { %v5472_v3 = vcombine.high %v311_v62, %v315_v63  ;;  %v319_v4 = vld [vmem:[%s8259_s1 + $0x800] sm:$0xff]  ;;  %3165 = vmatprep.subr.bf16.mxu0 %v5344_v2  ;;  %v5471_v10 = vcombine.low %v311_v62, %v315_v63 }
  0x42   :  { %v323_v5 = vld [vmem:[%s8259_s1 + $0x820] sm:$0xff]  ;;  %3166 = vmatpush1.bf16.msra.mxu0 %v5343_v8 }
  0x43   :  { %v447_v6 = vld [vmem:[%s8259_s1 + $0xc00] sm:$0xff]  ;;  %v5480_v12 = vcombine.high %v319_v4, %v323_v5  ;;  %3206 = vmatprep.subr.bf16.mxu1 %v5472_v3  ;;  %v5479_v21 = vcombine.low %v319_v4, %v323_v5 }
  0x44   :  { %v451_v7 = vld [vmem:[%s8259_s1 + $0xc20] sm:$0xff]  ;;  %3207 = vmatpush1.bf16.msra.mxu1 %v5471_v10 }
  0x45   :  { %v47_v9 = vld [vmem:[%s8260_s0] sm:$0xff]  ;;  %v5608_v13 = vcombine.high %v447_v6, %v451_v7  ;;  %3217 = vmatprep.subr.bf16.mxu0 %v5480_v12  ;;  %v5607_v23 = vcombine.low %v447_v6, %v451_v7 }
  0x46   :  { %v327_v14 = vld [vmem:[%s8259_s1 + $0x840] sm:$0xff]  ;;  %v6326_v16 = vpack.c.bf16 %v47_v9, %v47_v9 }
  0x47   :  { %v331_v15 = vld [vmem:[%s8259_s1 + $0x860] sm:$0xff]  ;;  %3258 = vmatprep.subr.bf16.mxu1 %v5608_v13  ;;  %3209 = vmatmul.mubr.bf16.vlgmr.msra.gmra.mrb[0].mxu1 %v6337_v20 }
  0x48   :  { %v455_v17 = vld [vmem:[%s8259_s1 + $0xc40] sm:$0xff]  ;;  %v5488_v24 = vcombine.high %v327_v14, %v331_v15  ;;  %3168 = vmatmul.mubr.bf16.vlgmr.msra.gmra.mrb[0].mxu0 %v6326_v16  ;;  %v5487_v32 = vcombine.low %v327_v14, %v331_v15  ;;  %3259 = vmatpush1.bf16.msra.mxu1 %v5607_v23 }
  0x49   :  { %v459_v18 = vld [vmem:[%s8259_s1 + $0xc60] sm:$0xff]  ;;  %3218 = vmatpush1.bf16.msra.mxu0 %v5479_v21  ;;  %3249 = vmatprep.mubr.bf16.mxu0 %v6348_v28 }
  0x4a   :  { %v5616_v25 = vcombine.high %v455_v17, %v459_v18  ;;  %v335_v26 = vld [vmem:[%s8259_s1 + $0x880] sm:$0xff]  ;;  %3219 = vmatprep.subr.bf16.mxu0 %v5488_v24  ;;  %v5615_v33 = vcombine.low %v455_v17, %v459_v18  ;;  %3290 = vmatprep.mubr.bf16.mxu1 %v6357_v31 }
  0x4b   :  { %v339_v27 = vld [vmem:[%s8259_s1 + $0x8a0] sm:$0xff] }
  0x4c   :  { %v463_v29 = vld [vmem:[%s8259_s1 + $0xc80] sm:$0xff]  ;;  %v5496_v34 = vcombine.high %v335_v26, %v339_v27  ;;  %3260 = vmatprep.subr.bf16.mxu1 %v5616_v25  ;;  %v5495_v40 = vcombine.low %v335_v26, %v339_v27 }
  0x4d   :  { %v467_v30 = vld [vmem:[%s8259_s1 + $0xca0] sm:$0xff]  ;;  %3220 = vmatpush1.bf16.msra.mxu0 %v5487_v32  ;;  %3261 = vmatpush1.bf16.msra.mxu1 %v5615_v33 }
  0x4e   :  { %v5624_v35 = vcombine.high %v463_v29, %v467_v30  ;;  %v343_v36 = vld [vmem:[%s8259_s1 + $0x8c0] sm:$0xff]  ;;  %3221 = vmatprep.subr.bf16.mxu0 %v5496_v34  ;;  %v5623_v41 = vcombine.low %v463_v29, %v467_v30 }
  0x4f   :  { %v347_v37 = vld [vmem:[%s8259_s1 + $0x8e0] sm:$0xff] }
  0x50   :  { %v471_v38 = vld [vmem:[%s8259_s1 + $0xcc0] sm:$0xff]  ;;  %v5504_v42 = vcombine.high %v343_v36, %v347_v37  ;;  %3262 = vmatprep.subr.bf16.mxu1 %v5624_v35  ;;  %v5503_v48 = vcombine.low %v343_v36, %v347_v37 }
  0x51   :  { %v475_v39 = vld [vmem:[%s8259_s1 + $0xce0] sm:$0xff]  ;;  %3222 = vmatpush1.bf16.msra.mxu0 %v5495_v40  ;;  %3263 = vmatpush1.bf16.msra.mxu1 %v5623_v41 }
  0x52   :  { %v5632_v43 = vcombine.high %v471_v38, %v475_v39  ;;  %v351_v44 = vld [vmem:[%s8259_s1 + $0x900] sm:$0xff]  ;;  %3223 = vmatprep.subr.bf16.mxu0 %v5504_v42  ;;  %v5631_v49 = vcombine.low %v471_v38, %v475_v39 }
  0x53   :  { %v355_v45 = vld [vmem:[%s8259_s1 + $0x920] sm:$0xff] }
  0x54   :  { %v479_v46 = vld [vmem:[%s8259_s1 + $0xd00] sm:$0xff]  ;;  %v5512_v50 = vcombine.high %v351_v44, %v355_v45  ;;  %3264 = vmatprep.subr.bf16.mxu1 %v5632_v43  ;;  %v5511_v56 = vcombine.low %v351_v44, %v355_v45 }
  0x55   :  { %v483_v47 = vld [vmem:[%s8259_s1 + $0xd20] sm:$0xff]  ;;  %3224 = vmatpush1.bf16.msra.mxu0 %v5503_v48  ;;  %3265 = vmatpush1.bf16.msra.mxu1 %v5631_v49 }
  0x56   :  { %v5640_v51 = vcombine.high %v479_v46, %v483_v47  ;;  %v359_v52 = vld [vmem:[%s8259_s1 + $0x940] sm:$0xff]  ;;  %3225 = vmatprep.subr.bf16.mxu0 %v5512_v50  ;;  %v5639_v57 = vcombine.low %v479_v46, %v483_v47 }
  0x57   :  { %v363_v53 = vld [vmem:[%s8259_s1 + $0x960] sm:$0xff] }
  0x58   :  { %v487_v54 = vld [vmem:[%s8259_s1 + $0xd40] sm:$0xff]  ;;  %v5520_v60 = vcombine.high %v359_v52, %v363_v53  ;;  %3266 = vmatprep.subr.bf16.mxu1 %v5640_v51  ;;  %v5519_v2 = vcombine.low %v359_v52, %v363_v53 }
  0x59   :  { %v491_v55 = vld [vmem:[%s8259_s1 + $0xd60] sm:$0xff]  ;;  %3226 = vmatpush1.bf16.msra.mxu0 %v5511_v56  ;;  %3267 = vmatpush1.bf16.msra.mxu1 %v5639_v57 }
  0x5a   :  { %v5648_v61 = vcombine.high %v487_v54, %v491_v55  ;;  %v367_v62 = vld [vmem:[%s8259_s1 + $0x980] sm:$0xff]  ;;  %3227 = vmatprep.subr.bf16.mxu0 %v5520_v60  ;;  %v5647_v3 = vcombine.low %v487_v54, %v491_v55 }
  0x5b   :  { %v371_v63 = vld [vmem:[%s8259_s1 + $0x9a0] sm:$0xff] }
  0x5c   :  { %v495_v0 = vld [vmem:[%s8259_s1 + $0xd80] sm:$0xff]  ;;  %v5528_v4 = vcombine.high %v367_v62, %v371_v63  ;;  %3268 = vmatprep.subr.bf16.mxu1 %v5648_v61  ;;  %v5527_v10 = vcombine.low %v367_v62, %v371_v63 }
  0x5d   :  { %v499_v1 = vld [vmem:[%s8259_s1 + $0xda0] sm:$0xff]  ;;  %3228 = vmatpush1.bf16.msra.mxu0 %v5519_v2  ;;  %3269 = vmatpush1.bf16.msra.mxu1 %v5647_v3 }
  0x5e   :  { %v5656_v5 = vcombine.high %v495_v0, %v499_v1  ;;  %v375_v6 = vld [vmem:[%s8259_s1 + $0x9c0] sm:$0xff]  ;;  %3229 = vmatprep.subr.bf16.mxu0 %v5528_v4  ;;  %v5655_v11 = vcombine.low %v495_v0, %v499_v1 }
  0x5f   :  { %v379_v7 = vld [vmem:[%s8259_s1 + $0x9e0] sm:$0xff] }
  0x60   :  { %v503_v8 = vld [vmem:[%s8259_s1 + $0xdc0] sm:$0xff]  ;;  %v5536_v12 = vcombine.high %v375_v6, %v379_v7  ;;  %3270 = vmatprep.subr.bf16.mxu1 %v5656_v5  ;;  %v5535_v19 = vcombine.low %v375_v6, %v379_v7 }
  0x61   :  { %v507_v9 = vld [vmem:[%s8259_s1 + $0xde0] sm:$0xff]  ;;  %3230 = vmatpush1.bf16.msra.mxu0 %v5527_v10  ;;  %3271 = vmatpush1.bf16.msra.mxu1 %v5655_v11 }
  0x62   :  { %v5664_v13 = vcombine.high %v503_v8, %v507_v9  ;;  %v383_v14 = vld [vmem:[%s8259_s1 + $0xa00] sm:$0xff]  ;;  %3231 = vmatprep.subr.bf16.mxu0 %v5536_v12  ;;  %v5663_v21 = vcombine.low %v503_v8, %v507_v9 }
  0x63   :  { %v387_v15 = vld [vmem:[%s8259_s1 + $0xa20] sm:$0xff] }
  0x64   :  { %v511_v17 = vld [vmem:[%s8259_s1 + $0xe00] sm:$0xff]  ;;  %v5544_v22 = vcombine.high %v383_v14, %v387_v15  ;;  %3272 = vmatprep.subr.bf16.mxu1 %v5664_v13  ;;  %v5543_v29 = vcombine.low %v383_v14, %v387_v15 }
  0x65   :  { %v515_v18 = vld [vmem:[%s8259_s1 + $0xe20] sm:$0xff]  ;;  %3232 = vmatpush1.bf16.msra.mxu0 %v5535_v19  ;;  %3273 = vmatpush1.bf16.msra.mxu1 %v5663_v21 }
  0x66   :  { %v5672_v23 = vcombine.high %v511_v17, %v515_v18  ;;  %v391_v24 = vld [vmem:[%s8259_s1 + $0xa40] sm:$0xff]  ;;  %3233 = vmatprep.subr.bf16.mxu0 %v5544_v22  ;;  %v5671_v30 = vcombine.low %v511_v17, %v515_v18  ;;  %v64_v22 = vld [vmem:[%s8259_s1 + $0x8] sm:$0xff] }
  0x67   :  { %v395_v25 = vld [vmem:[%s8259_s1 + $0xa60] sm:$0xff] }
  0x68   :  { %v519_v26 = vld [vmem:[%s8259_s1 + $0xe40] sm:$0xff]  ;;  %v5552_v32 = vcombine.high %v391_v24, %v395_v25  ;;  %3274 = vmatprep.subr.bf16.mxu1 %v5672_v23  ;;  %v5551_v38 = vcombine.low %v391_v24, %v395_v25  ;;  %v68_v23 = vld [vmem:[%s8259_s1 + $0x28] sm:$0xff] }
  0x69   :  { %v523_v27 = vld [vmem:[%s8259_s1 + $0xe60] sm:$0xff]  ;;  %3234 = vmatpush1.bf16.msra.mxu0 %v5543_v29  ;;  %3275 = vmatpush1.bf16.msra.mxu1 %v5671_v30  ;;  %v192_v24 = vld [vmem:[%s8259_s1 + $0x408] sm:$0xff]  ;;  %v53_v30 = vld [vmem:[%s8260_s0 + $0x30] sm:$0xff] }
  0x6a   :  { %v5680_v33 = vcombine.high %v519_v26, %v523_v27  ;;  %v399_v34 = vld [vmem:[%s8259_s1 + $0xa80] sm:$0xff]  ;;  %3235 = vmatprep.subr.bf16.mxu0 %v5552_v32  ;;  %v5679_v39 = vcombine.low %v519_v26, %v523_v27  ;;  %v196_v25 = vld [vmem:[%s8259_s1 + $0x428] sm:$0xff]  ;;  %v5226_v32 = vcombine.high %v64_v22, %v68_v23 }
  0x6b   :  { %v403_v35 = vld [vmem:[%s8259_s1 + $0xaa0] sm:$0xff] }
  0x6c   :  { %v527_v36 = vld [vmem:[%s8259_s1 + $0xe80] sm:$0xff]  ;;  %v5560_v40 = vcombine.high %v399_v34, %v403_v35  ;;  %3276 = vmatprep.subr.bf16.mxu1 %v5680_v33  ;;  %v5559_v46 = vcombine.low %v399_v34, %v403_v35  ;;  %v5354_v33 = vcombine.high %v192_v24, %v196_v25  ;;  %v72_v34 = vld [vmem:[%s8259_s1 + $0x48] sm:$0xff] }
  0x6d   :  { %v531_v37 = vld [vmem:[%s8259_s1 + $0xea0] sm:$0xff]  ;;  %3236 = vmatpush1.bf16.msra.mxu0 %v5551_v38  ;;  %3277 = vmatpush1.bf16.msra.mxu1 %v5679_v39  ;;  %v76_v35 = vld [vmem:[%s8259_s1 + $0x68] sm:$0xff]  ;;  %v6550_v39 = vpack.c.bf16 %v53_v30, %v53_v30 }
  0x6e   :  { %v5688_v41 = vcombine.high %v527_v36, %v531_v37  ;;  %v407_v42 = vld [vmem:[%s8259_s1 + $0xac0] sm:$0xff]  ;;  %3237 = vmatprep.subr.bf16.mxu0 %v5560_v40  ;;  %v5687_v47 = vcombine.low %v527_v36, %v531_v37  ;;  %v200_v37 = vld [vmem:[%s8259_s1 + $0x448] sm:$0xff]  ;;  %v5225_v40 = vcombine.low %v64_v22, %v68_v23 }
  0x6f   :  { %v411_v43 = vld [vmem:[%s8259_s1 + $0xae0] sm:$0xff]  ;;  %v204_v38 = vld [vmem:[%s8259_s1 + $0x468] sm:$0xff] }
  0x70   :  { %v535_v44 = vld [vmem:[%s8259_s1 + $0xec0] sm:$0xff]  ;;  %v5568_v48 = vcombine.high %v407_v42, %v411_v43  ;;  %3278 = vmatprep.subr.bf16.mxu1 %v5688_v41  ;;  %v5567_v54 = vcombine.low %v407_v42, %v411_v43  ;;  %v5353_v41 = vcombine.low %v192_v24, %v196_v25  ;;  %v5234_v42 = vcombine.high %v72_v34, %v76_v35  ;;  %v120_v24 = vld [vmem:[%s8259_s1 + $0x1c8] sm:$0xff] }
  0x71   :  { %v539_v45 = vld [vmem:[%s8259_s1 + $0xee0] sm:$0xff]  ;;  %3238 = vmatpush1.bf16.msra.mxu0 %v5559_v46  ;;  %3279 = vmatpush1.bf16.msra.mxu1 %v5687_v47  ;;  %v5362_v43 = vcombine.high %v200_v37, %v204_v38  ;;  %v208_v46 = vld [vmem:[%s8259_s1 + $0x488] sm:$0xff] }
  0x72   :  { %v5696_v49 = vcombine.high %v535_v44, %v539_v45  ;;  %v415_v50 = vld [vmem:[%s8259_s1 + $0xb00] sm:$0xff]  ;;  %3239 = vmatprep.subr.bf16.mxu0 %v5568_v48  ;;  %v5695_v55 = vcombine.low %v535_v44, %v539_v45  ;;  %v80_v44 = vld [vmem:[%s8259_s1 + $0x88] sm:$0xff]  ;;  %v5233_v48 = vcombine.low %v72_v34, %v76_v35 }
  0x73   :  { %v419_v51 = vld [vmem:[%s8259_s1 + $0xb20] sm:$0xff]  ;;  %v84_v45 = vld [vmem:[%s8259_s1 + $0xa8] sm:$0xff] }
  0x74   :  { %v543_v52 = vld [vmem:[%s8259_s1 + $0xf00] sm:$0xff]  ;;  %v5576_v56 = vcombine.high %v415_v50, %v419_v51  ;;  %3280 = vmatprep.subr.bf16.mxu1 %v5696_v49  ;;  %v5575_v0 = vcombine.low %v415_v50, %v419_v51  ;;  %v212_v47 = vld [vmem:[%s8259_s1 + $0x4a8] sm:$0xff]  ;;  %v5361_v49 = vcombine.low %v200_v37, %v204_v38  ;;  %v5242_v50 = vcombine.high %v80_v44, %v84_v45 }
  0x75   :  { %v547_v53 = vld [vmem:[%s8259_s1 + $0xf20] sm:$0xff]  ;;  %3240 = vmatpush1.bf16.msra.mxu0 %v5567_v54  ;;  %3281 = vmatpush1.bf16.msra.mxu1 %v5695_v55  ;;  %v5370_v51 = vcombine.high %v208_v46, %v212_v47  ;;  %v216_v54 = vld [vmem:[%s8259_s1 + $0x4c8] sm:$0xff] }
  0x76   :  { %v5704_v57 = vcombine.high %v543_v52, %v547_v53  ;;  %v423_v60 = vld [vmem:[%s8259_s1 + $0xb40] sm:$0xff]  ;;  %3241 = vmatprep.subr.bf16.mxu0 %v5576_v56  ;;  %v5703_v1 = vcombine.low %v543_v52, %v547_v53  ;;  %v88_v52 = vld [vmem:[%s8259_s1 + $0xc8] sm:$0xff]  ;;  %v5241_v56 = vcombine.low %v80_v44, %v84_v45 }
  0x77   :  { %v427_v61 = vld [vmem:[%s8259_s1 + $0xb60] sm:$0xff]  ;;  %v92_v53 = vld [vmem:[%s8259_s1 + $0xe8] sm:$0xff] }
  0x78   :  { %v551_v62 = vld [vmem:[%s8259_s1 + $0xf40] sm:$0xff]  ;;  %v5584_v2 = vcombine.high %v423_v60, %v427_v61  ;;  %3282 = vmatprep.subr.bf16.mxu1 %v5704_v57  ;;  %v5583_v8 = vcombine.low %v423_v60, %v427_v61  ;;  %v220_v55 = vld [vmem:[%s8259_s1 + $0x4e8] sm:$0xff]  ;;  %v5369_v57 = vcombine.low %v208_v46, %v212_v47  ;;  %v5250_v60 = vcombine.high %v88_v52, %v92_v53 }
  0x79   :  { %v555_v63 = vld [vmem:[%s8259_s1 + $0xf60] sm:$0xff]  ;;  %3242 = vmatpush1.bf16.msra.mxu0 %v5575_v0  ;;  %3283 = vmatpush1.bf16.msra.mxu1 %v5703_v1  ;;  %v5378_v61 = vcombine.high %v216_v54, %v220_v55  ;;  %v224_v0 = vld [vmem:[%s8259_s1 + $0x508] sm:$0xff] }
  0x7a   :  { %v5712_v3 = vcombine.high %v551_v62, %v555_v63  ;;  %v431_v4 = vld [vmem:[%s8259_s1 + $0xb80] sm:$0xff]  ;;  %3243 = vmatprep.subr.bf16.mxu0 %v5584_v2  ;;  %v5711_v9 = vcombine.low %v551_v62, %v555_v63  ;;  %v96_v62 = vld [vmem:[%s8259_s1 + $0x108] sm:$0xff]  ;;  %v5249_v2 = vcombine.low %v88_v52, %v92_v53 }
  0x7b   :  { %v435_v5 = vld [vmem:[%s8259_s1 + $0xba0] sm:$0xff]  ;;  %v100_v63 = vld [vmem:[%s8259_s1 + $0x128] sm:$0xff] }
  0x7c   :  { %v559_v6 = vld [vmem:[%s8259_s1 + $0xf80] sm:$0xff]  ;;  %v5592_v10 = vcombine.high %v431_v4, %v435_v5  ;;  %3284 = vmatprep.subr.bf16.mxu1 %v5712_v3  ;;  %v5591_v17 = vcombine.low %v431_v4, %v435_v5  ;;  %v228_v1 = vld [vmem:[%s8259_s1 + $0x528] sm:$0xff]  ;;  %v5377_v3 = vcombine.low %v216_v54, %v220_v55  ;;  %v5258_v4 = vcombine.high %v96_v62, %v100_v63 }
  0x7d   :  { %v563_v7 = vld [vmem:[%s8259_s1 + $0xfa0] sm:$0xff]  ;;  %3244 = vmatpush1.bf16.msra.mxu0 %v5583_v8  ;;  %3285 = vmatpush1.bf16.msra.mxu1 %v5711_v9  ;;  %v5386_v5 = vcombine.high %v224_v0, %v228_v1  ;;  %v232_v8 = vld [vmem:[%s8259_s1 + $0x548] sm:$0xff] }
  0x7e   :  { %v5720_v11 = vcombine.high %v559_v6, %v563_v7  ;;  %v439_v12 = vld [vmem:[%s8259_s1 + $0xbc0] sm:$0xff]  ;;  %3245 = vmatprep.subr.bf16.mxu0 %v5592_v10  ;;  %v5719_v18 = vcombine.low %v559_v6, %v563_v7  ;;  %v104_v6 = vld [vmem:[%s8259_s1 + $0x148] sm:$0xff]  ;;  %v5257_v10 = vcombine.low %v96_v62, %v100_v63 }
  0x7f   :  { %v443_v13 = vld [vmem:[%s8259_s1 + $0xbe0] sm:$0xff]  ;;  %v108_v7 = vld [vmem:[%s8259_s1 + $0x168] sm:$0xff] }
  0x80   :  { %v567_v14 = vld [vmem:[%s8259_s1 + $0xfc0] sm:$0xff]  ;;  %v5600_v19 = vcombine.high %v439_v12, %v443_v13  ;;  %3286 = vmatprep.subr.bf16.mxu1 %v5720_v11  ;;  %v5599_v26 = vcombine.low %v439_v12, %v443_v13  ;;  %v236_v9 = vld [vmem:[%s8259_s1 + $0x568] sm:$0xff]  ;;  %v5385_v11 = vcombine.low %v224_v0, %v228_v1  ;;  %v5266_v12 = vcombine.high %v104_v6, %v108_v7 }
  0x81   :  { %v571_v15 = vld [vmem:[%s8259_s1 + $0xfe0] sm:$0xff]  ;;  %3246 = vmatpush1.bf16.msra.mxu0 %v5591_v17  ;;  %3287 = vmatpush1.bf16.msra.mxu1 %v5719_v18  ;;  %v5394_v13 = vcombine.high %v232_v8, %v236_v9  ;;  %v240_v17 = vld [vmem:[%s8259_s1 + $0x588] sm:$0xff] }
  0x82   :  { %v5728_v21 = vcombine.high %v567_v14, %v571_v15  ;;  %v51_v27 = vld [vmem:[%s8260_s0 + $0x20] sm:$0xff]  ;;  %3247 = vmatprep.subr.bf16.mxu0 %v5600_v19  ;;  %v5727_v29 = vcombine.low %v567_v14, %v571_v15  ;;  %v112_v14 = vld [vmem:[%s8259_s1 + $0x188] sm:$0xff]  ;;  %v5265_v19 = vcombine.low %v104_v6, %v108_v7 }
  0x83   :  { %v6542_v36 = vpack.c.bf16 %v51_v27, %v51_v27  ;;  %v116_v15 = vld [vmem:[%s8259_s1 + $0x1a8] sm:$0xff] }
  0x84   :  { %3288 = vmatprep.subr.bf16.mxu1 %v5728_v21  ;;  %v244_v18 = vld [vmem:[%s8259_s1 + $0x5a8] sm:$0xff]  ;;  %v5393_v21 = vcombine.low %v232_v8, %v236_v9  ;;  %v5274_v22 = vcombine.high %v112_v14, %v116_v15 }
  0x85   :  { %3248 = vmatpush1.bf16.msra.mxu0 %v5599_v26  ;;  %3289 = vmatpush1.bf16.msra.mxu1 %v5727_v29  ;;  %v5402_v23 = vcombine.high %v240_v17, %v244_v18  ;;  %v124_v25 = vld [vmem:[%s8259_s1 + $0x1e8] sm:$0xff]  ;;  %v5273_v29 = vcombine.low %v112_v14, %v116_v15  ;;  %v5401_v30 = vcombine.low %v240_v17, %v244_v18 }
  0x86   :  { %3299 = vmatprep.subr.bf16.mxu0 %v5226_v32  ;;  %3340 = vmatprep.subr.bf16.mxu1 %v5354_v33  ;;  %v248_v26 = vld [vmem:[%s8259_s1 + $0x5c8] sm:$0xff]  ;;  %v5282_v32 = vcombine.high %v120_v24, %v124_v25 }
  0x87   :  { %v252_v27 = vld [vmem:[%s8259_s1 + $0x5e8] sm:$0xff] }
  0x88   :  { %3250 = vmatmul.mubr.bf16.vlgmr.msra.gmra.mrb[4].mxu0 %v6542_v36  ;;  %3291 = vmatmul.mubr.bf16.vlgmr.msra.gmra.mrb[4].mxu1 %v6550_v39  ;;  %v5410_v33 = vcombine.high %v248_v26, %v252_v27  ;;  %v128_v34 = vld [vmem:[%s8259_s1 + $0x208] sm:$0xff] }
  0x89   :  { %3300 = vmatpush1.bf16.msra.mxu0 %v5225_v40  ;;  %3341 = vmatpush1.bf16.msra.mxu1 %v5353_v41  ;;  %v132_v35 = vld [vmem:[%s8259_s1 + $0x228] sm:$0xff]  ;;  %v5281_v40 = vcombine.low %v120_v24, %v124_v25  ;;  %v5409_v41 = vcombine.low %v248_v26, %v252_v27 }
  0x8a   :  { %3301 = vmatprep.subr.bf16.mxu0 %v5234_v42  ;;  %3342 = vmatprep.subr.bf16.mxu1 %v5362_v43  ;;  %v256_v37 = vld [vmem:[%s8259_s1 + $0x608] sm:$0xff]  ;;  %v5290_v42 = vcombine.high %v128_v34, %v132_v35 }
  0x8b   :  { %3331 = vmatprep.mubr.bf16.mxu0 %v6194_v58  ;;  %3372 = vmatprep.mubr.bf16.mxu1 %v6196_v59  ;;  %v260_v38 = vld [vmem:[%s8259_s1 + $0x628] sm:$0xff] }
  0x8c   :  { %v5418_v43 = vcombine.high %v256_v37, %v260_v38  ;;  %v136_v44 = vld [vmem:[%s8259_s1 + $0x248] sm:$0xff] }
  0x8d   :  { %3302 = vmatpush1.bf16.msra.mxu0 %v5233_v48  ;;  %3343 = vmatpush1.bf16.msra.mxu1 %v5361_v49  ;;  %v140_v45 = vld [vmem:[%s8259_s1 + $0x268] sm:$0xff]  ;;  %v5289_v48 = vcombine.low %v128_v34, %v132_v35  ;;  %v5417_v49 = vcombine.low %v256_v37, %v260_v38 }
  0x8e   :  { %3303 = vmatprep.subr.bf16.mxu0 %v5242_v50  ;;  %3344 = vmatprep.subr.bf16.mxu1 %v5370_v51  ;;  %v264_v46 = vld [vmem:[%s8259_s1 + $0x648] sm:$0xff]  ;;  %v5298_v50 = vcombine.high %v136_v44, %v140_v45 }
  0x8f   :  { %v268_v47 = vld [vmem:[%s8259_s1 + $0x668] sm:$0xff] }
  0x90   :  { %v5426_v51 = vcombine.high %v264_v46, %v268_v47  ;;  %v144_v52 = vld [vmem:[%s8259_s1 + $0x288] sm:$0xff] }
  0x91   :  { %3304 = vmatpush1.bf16.msra.mxu0 %v5241_v56  ;;  %3345 = vmatpush1.bf16.msra.mxu1 %v5369_v57  ;;  %v148_v53 = vld [vmem:[%s8259_s1 + $0x2a8] sm:$0xff]  ;;  %v5297_v56 = vcombine.low %v136_v44, %v140_v45  ;;  %v5425_v57 = vcombine.low %v264_v46, %v268_v47 }
  0x92   :  { %3305 = vmatprep.subr.bf16.mxu0 %v5250_v60  ;;  %3346 = vmatprep.subr.bf16.mxu1 %v5378_v61  ;;  %v272_v54 = vld [vmem:[%s8259_s1 + $0x688] sm:$0xff]  ;;  %v5306_v60 = vcombine.high %v144_v52, %v148_v53 }
  0x93   :  { %v276_v55 = vld [vmem:[%s8259_s1 + $0x6a8] sm:$0xff] }
  0x94   :  { %v5434_v61 = vcombine.high %v272_v54, %v276_v55  ;;  %v152_v62 = vld [vmem:[%s8259_s1 + $0x2c8] sm:$0xff] }
  0x95   :  { %3306 = vmatpush1.bf16.msra.mxu0 %v5249_v2  ;;  %3347 = vmatpush1.bf16.msra.mxu1 %v5377_v3  ;;  %v156_v63 = vld [vmem:[%s8259_s1 + $0x2e8] sm:$0xff]  ;;  %v5305_v2 = vcombine.low %v144_v52, %v148_v53  ;;  %v5433_v3 = vcombine.low %v272_v54, %v276_v55 }
  0x96   :  { %3307 = vmatprep.subr.bf16.mxu0 %v5258_v4  ;;  %3348 = vmatprep.subr.bf16.mxu1 %v5386_v5  ;;  %v280_v0 = vld [vmem:[%s8259_s1 + $0x6c8] sm:$0xff]  ;;  %v5314_v4 = vcombine.high %v152_v62, %v156_v63 }
  0x97   :  { %v284_v1 = vld [vmem:[%s8259_s1 + $0x6e8] sm:$0xff] }
  0x98   :  { %v5442_v5 = vcombine.high %v280_v0, %v284_v1  ;;  %v160_v6 = vld [vmem:[%s8259_s1 + $0x308] sm:$0xff] }
  0x99   :  { %3308 = vmatpush1.bf16.msra.mxu0 %v5257_v10  ;;  %3349 = vmatpush1.bf16.msra.mxu1 %v5385_v11  ;;  %v164_v7 = vld [vmem:[%s8259_s1 + $0x328] sm:$0xff]  ;;  %v5313_v10 = vcombine.low %v152_v62, %v156_v63  ;;  %v5441_v11 = vcombine.low %v280_v0, %v284_v1 }
  0x9a   :  { %3309 = vmatprep.subr.bf16.mxu0 %v5266_v12  ;;  %3350 = vmatprep.subr.bf16.mxu1 %v5394_v13  ;;  %v288_v8 = vld [vmem:[%s8259_s1 + $0x708] sm:$0xff]  ;;  %v5322_v12 = vcombine.high %v160_v6, %v164_v7 }
  0x9b   :  { %v292_v9 = vld [vmem:[%s8259_s1 + $0x728] sm:$0xff] }
  0x9c   :  { %v5450_v13 = vcombine.high %v288_v8, %v292_v9  ;;  %v168_v14 = vld [vmem:[%s8259_s1 + $0x348] sm:$0xff] }
  0x9d   :  { %3310 = vmatpush1.bf16.msra.mxu0 %v5265_v19  ;;  %3351 = vmatpush1.bf16.msra.mxu1 %v5393_v21  ;;  %v172_v15 = vld [vmem:[%s8259_s1 + $0x368] sm:$0xff]  ;;  %v5321_v19 = vcombine.low %v160_v6, %v164_v7  ;;  %v5449_v21 = vcombine.low %v288_v8, %v292_v9 }
  0x9e   :  { %3311 = vmatprep.subr.bf16.mxu0 %v5274_v22  ;;  %3352 = vmatprep.subr.bf16.mxu1 %v5402_v23  ;;  %v296_v17 = vld [vmem:[%s8259_s1 + $0x748] sm:$0xff]  ;;  %v5330_v22 = vcombine.high %v168_v14, %v172_v15 }
  0x9f   :  { %v300_v18 = vld [vmem:[%s8259_s1 + $0x768] sm:$0xff] }
  0xa0   :  { %v5458_v23 = vcombine.high %v296_v17, %v300_v18  ;;  %v176_v24 = vld [vmem:[%s8259_s1 + $0x388] sm:$0xff] }
  0xa1   :  { %3312 = vmatpush1.bf16.msra.mxu0 %v5273_v29  ;;  %3353 = vmatpush1.bf16.msra.mxu1 %v5401_v30  ;;  %v180_v25 = vld [vmem:[%s8259_s1 + $0x3a8] sm:$0xff]  ;;  %v5329_v29 = vcombine.low %v168_v14, %v172_v15  ;;  %v5457_v30 = vcombine.low %v296_v17, %v300_v18 }
  0xa2   :  { %3313 = vmatprep.subr.bf16.mxu0 %v5282_v32  ;;  %3354 = vmatprep.subr.bf16.mxu1 %v5410_v33  ;;  %v304_v26 = vld [vmem:[%s8259_s1 + $0x788] sm:$0xff]  ;;  %v5338_v32 = vcombine.high %v176_v24, %v180_v25 }
  0xa3   :  { %v308_v27 = vld [vmem:[%s8259_s1 + $0x7a8] sm:$0xff] }
  0xa4   :  { %v5466_v33 = vcombine.high %v304_v26, %v308_v27  ;;  %v184_v34 = vld [vmem:[%s8259_s1 + $0x3c8] sm:$0xff] }
  0xa5   :  { %3314 = vmatpush1.bf16.msra.mxu0 %v5281_v40  ;;  %3355 = vmatpush1.bf16.msra.mxu1 %v5409_v41  ;;  %v188_v35 = vld [vmem:[%s8259_s1 + $0x3e8] sm:$0xff]  ;;  %v5337_v40 = vcombine.low %v176_v24, %v180_v25  ;;  %v5465_v41 = vcombine.low %v304_v26, %v308_v27 }
  0xa6   :  { %3315 = vmatprep.subr.bf16.mxu0 %v5290_v42  ;;  %3356 = vmatprep.subr.bf16.mxu1 %v5418_v43  ;;  %v312_v37 = vld [vmem:[%s8259_s1 + $0x7c8] sm:$0xff]  ;;  %v5346_v42 = vcombine.high %v184_v34, %v188_v35 }
  0xa7   :  { %v316_v38 = vld [vmem:[%s8259_s1 + $0x7e8] sm:$0xff] }
  0xa8   :  { %v5474_v43 = vcombine.high %v312_v37, %v316_v38  ;;  %v320_v44 = vld [vmem:[%s8259_s1 + $0x808] sm:$0xff] }
  0xa9   :  { %3316 = vmatpush1.bf16.msra.mxu0 %v5289_v48  ;;  %3357 = vmatpush1.bf16.msra.mxu1 %v5417_v49  ;;  %v324_v45 = vld [vmem:[%s8259_s1 + $0x828] sm:$0xff]  ;;  %v5345_v48 = vcombine.low %v184_v34, %v188_v35  ;;  %v5473_v49 = vcombine.low %v312_v37, %v316_v38 }
  0xaa   :  { %3317 = vmatprep.subr.bf16.mxu0 %v5298_v50  ;;  %3358 = vmatprep.subr.bf16.mxu1 %v5426_v51  ;;  %v448_v46 = vld [vmem:[%s8259_s1 + $0xc08] sm:$0xff]  ;;  %v5482_v50 = vcombine.high %v320_v44, %v324_v45 }
  0xab   :  { %v452_v47 = vld [vmem:[%s8259_s1 + $0xc28] sm:$0xff] }
  0xac   :  { %v5610_v51 = vcombine.high %v448_v46, %v452_v47  ;;  %v328_v52 = vld [vmem:[%s8259_s1 + $0x848] sm:$0xff] }
  0xad   :  { %3318 = vmatpush1.bf16.msra.mxu0 %v5297_v56  ;;  %3359 = vmatpush1.bf16.msra.mxu1 %v5425_v57  ;;  %v332_v53 = vld [vmem:[%s8259_s1 + $0x868] sm:$0xff]  ;;  %v5481_v56 = vcombine.low %v320_v44, %v324_v45  ;;  %v5609_v57 = vcombine.low %v448_v46, %v452_v47 }
  0xae   :  { %3319 = vmatprep.subr.bf16.mxu0 %v5306_v60  ;;  %3360 = vmatprep.subr.bf16.mxu1 %v5434_v61  ;;  %v456_v54 = vld [vmem:[%s8259_s1 + $0xc48] sm:$0xff]  ;;  %v5490_v60 = vcombine.high %v328_v52, %v332_v53 }
  0xaf   :  { %v460_v55 = vld [vmem:[%s8259_s1 + $0xc68] sm:$0xff] }
  0xb0   :  { %v5618_v61 = vcombine.high %v456_v54, %v460_v55  ;;  %v336_v62 = vld [vmem:[%s8259_s1 + $0x888] sm:$0xff] }
  0xb1   :  { %3320 = vmatpush1.bf16.msra.mxu0 %v5305_v2  ;;  %3361 = vmatpush1.bf16.msra.mxu1 %v5433_v3  ;;  %v340_v63 = vld [vmem:[%s8259_s1 + $0x8a8] sm:$0xff]  ;;  %v5489_v2 = vcombine.low %v328_v52, %v332_v53  ;;  %v5617_v3 = vcombine.low %v456_v54, %v460_v55 }
  0xb2   :  { %3321 = vmatprep.subr.bf16.mxu0 %v5314_v4  ;;  %3362 = vmatprep.subr.bf16.mxu1 %v5442_v5  ;;  %v464_v0 = vld [vmem:[%s8259_s1 + $0xc88] sm:$0xff]  ;;  %v5498_v4 = vcombine.high %v336_v62, %v340_v63 }
  0xb3   :  { %v468_v1 = vld [vmem:[%s8259_s1 + $0xca8] sm:$0xff] }
  0xb4   :  { %v5626_v5 = vcombine.high %v464_v0, %v468_v1  ;;  %v344_v6 = vld [vmem:[%s8259_s1 + $0x8c8] sm:$0xff] }
  0xb5   :  { %3322 = vmatpush1.bf16.msra.mxu0 %v5313_v10  ;;  %3363 = vmatpush1.bf16.msra.mxu1 %v5441_v11  ;;  %v348_v7 = vld [vmem:[%s8259_s1 + $0x8e8] sm:$0xff]  ;;  %v5497_v10 = vcombine.low %v336_v62, %v340_v63  ;;  %v5625_v11 = vcombine.low %v464_v0, %v468_v1 }
  0xb6   :  { %3323 = vmatprep.subr.bf16.mxu0 %v5322_v12  ;;  %3364 = vmatprep.subr.bf16.mxu1 %v5450_v13  ;;  %v472_v8 = vld [vmem:[%s8259_s1 + $0xcc8] sm:$0xff]  ;;  %v5506_v12 = vcombine.high %v344_v6, %v348_v7 }
  0xb7   :  { %v476_v9 = vld [vmem:[%s8259_s1 + $0xce8] sm:$0xff] }
  0xb8   :  { %v5634_v13 = vcombine.high %v472_v8, %v476_v9  ;;  %v352_v14 = vld [vmem:[%s8259_s1 + $0x908] sm:$0xff] }
  0xb9   :  { %3324 = vmatpush1.bf16.msra.mxu0 %v5321_v19  ;;  %3365 = vmatpush1.bf16.msra.mxu1 %v5449_v21  ;;  %v356_v15 = vld [vmem:[%s8259_s1 + $0x928] sm:$0xff]  ;;  %v5505_v19 = vcombine.low %v344_v6, %v348_v7  ;;  %v5633_v21 = vcombine.low %v472_v8, %v476_v9 }
  0xba   :  { %3325 = vmatprep.subr.bf16.mxu0 %v5330_v22  ;;  %3366 = vmatprep.subr.bf16.mxu1 %v5458_v23  ;;  %v480_v17 = vld [vmem:[%s8259_s1 + $0xd08] sm:$0xff]  ;;  %v5514_v22 = vcombine.high %v352_v14, %v356_v15 }
  0xbb   :  { %v484_v18 = vld [vmem:[%s8259_s1 + $0xd28] sm:$0xff] }
  0xbc   :  { %v5642_v23 = vcombine.high %v480_v17, %v484_v18  ;;  %v360_v24 = vld [vmem:[%s8259_s1 + $0x948] sm:$0xff] }
  0xbd   :  { %3326 = vmatpush1.bf16.msra.mxu0 %v5329_v29  ;;  %3367 = vmatpush1.bf16.msra.mxu1 %v5457_v30  ;;  %v364_v25 = vld [vmem:[%s8259_s1 + $0x968] sm:$0xff]  ;;  %v5513_v29 = vcombine.low %v352_v14, %v356_v15  ;;  %v5641_v30 = vcombine.low %v480_v17, %v484_v18 }
  0xbe   :  { %3327 = vmatprep.subr.bf16.mxu0 %v5338_v32  ;;  %3368 = vmatprep.subr.bf16.mxu1 %v5466_v33  ;;  %v488_v26 = vld [vmem:[%s8259_s1 + $0xd48] sm:$0xff]  ;;  %v5522_v32 = vcombine.high %v360_v24, %v364_v25 }
  0xbf   :  { %v492_v27 = vld [vmem:[%s8259_s1 + $0xd68] sm:$0xff] }
  0xc0   :  { %v5650_v33 = vcombine.high %v488_v26, %v492_v27  ;;  %v368_v34 = vld [vmem:[%s8259_s1 + $0x988] sm:$0xff] }
  0xc1   :  { %3328 = vmatpush1.bf16.msra.mxu0 %v5337_v40  ;;  %3369 = vmatpush1.bf16.msra.mxu1 %v5465_v41  ;;  %v372_v35 = vld [vmem:[%s8259_s1 + $0x9a8] sm:$0xff]  ;;  %v5521_v40 = vcombine.low %v360_v24, %v364_v25  ;;  %v5649_v41 = vcombine.low %v488_v26, %v492_v27 }
  0xc2   :  { %3329 = vmatprep.subr.bf16.mxu0 %v5346_v42  ;;  %3370 = vmatprep.subr.bf16.mxu1 %v5474_v43  ;;  %v496_v37 = vld [vmem:[%s8259_s1 + $0xd88] sm:$0xff]  ;;  %v5530_v42 = vcombine.high %v368_v34, %v372_v35 }
  0xc3   :  { %v500_v38 = vld [vmem:[%s8259_s1 + $0xda8] sm:$0xff] }
  0xc4   :  { %v5658_v43 = vcombine.high %v496_v37, %v500_v38  ;;  %v376_v44 = vld [vmem:[%s8259_s1 + $0x9c8] sm:$0xff] }
  0xc5   :  { %3330 = vmatpush1.bf16.msra.mxu0 %v5345_v48  ;;  %3371 = vmatpush1.bf16.msra.mxu1 %v5473_v49  ;;  %v380_v45 = vld [vmem:[%s8259_s1 + $0x9e8] sm:$0xff]  ;;  %v5529_v48 = vcombine.low %v368_v34, %v372_v35  ;;  %v5657_v49 = vcombine.low %v496_v37, %v500_v38 }
  0xc6   :  { %3381 = vmatprep.subr.bf16.mxu0 %v5482_v50  ;;  %3422 = vmatprep.subr.bf16.mxu1 %v5610_v51  ;;  %v504_v46 = vld [vmem:[%s8259_s1 + $0xdc8] sm:$0xff]  ;;  %v5538_v50 = vcombine.high %v376_v44, %v380_v45 }
  0xc7   :  { %v508_v47 = vld [vmem:[%s8259_s1 + $0xde8] sm:$0xff] }
  0xc8   :  { %3332 = vmatmul.mubr.bf16.vlgmr.msra.gmra.mrb[8].mxu0 %v6326_v16  ;;  %3373 = vmatmul.mubr.bf16.vlgmr.msra.gmra.mrb[8].mxu1 %v6337_v20  ;;  %v5666_v51 = vcombine.high %v504_v46, %v508_v47  ;;  %v384_v52 = vld [vmem:[%s8259_s1 + $0xa08] sm:$0xff] }
  0xc9   :  { %3382 = vmatpush1.bf16.msra.mxu0 %v5481_v56  ;;  %3423 = vmatpush1.bf16.msra.mxu1 %v5609_v57  ;;  %v388_v53 = vld [vmem:[%s8259_s1 + $0xa28] sm:$0xff]  ;;  %v5537_v56 = vcombine.low %v376_v44, %v380_v45  ;;  %v5665_v57 = vcombine.low %v504_v46, %v508_v47 }
  0xca   :  { %3383 = vmatprep.subr.bf16.mxu0 %v5490_v60  ;;  %3424 = vmatprep.subr.bf16.mxu1 %v5618_v61  ;;  %v512_v54 = vld [vmem:[%s8259_s1 + $0xe08] sm:$0xff]  ;;  %v5546_v60 = vcombine.high %v384_v52, %v388_v53 }
  0xcb   :  { %3413 = vmatprep.mubr.bf16.mxu0 %v6348_v28  ;;  %3454 = vmatprep.mubr.bf16.mxu1 %v6357_v31  ;;  %v516_v55 = vld [vmem:[%s8259_s1 + $0xe28] sm:$0xff] }
  0xcc   :  { %v5674_v61 = vcombine.high %v512_v54, %v516_v55  ;;  %v392_v62 = vld [vmem:[%s8259_s1 + $0xa48] sm:$0xff] }
  0xcd   :  { %3384 = vmatpush1.bf16.msra.mxu0 %v5489_v2  ;;  %3425 = vmatpush1.bf16.msra.mxu1 %v5617_v3  ;;  %v396_v63 = vld [vmem:[%s8259_s1 + $0xa68] sm:$0xff]  ;;  %v5545_v2 = vcombine.low %v384_v52, %v388_v53  ;;  %v5673_v3 = vcombine.low %v512_v54, %v516_v55 }
  0xce   :  { %3385 = vmatprep.subr.bf16.mxu0 %v5498_v4  ;;  %3426 = vmatprep.subr.bf16.mxu1 %v5626_v5  ;;  %v520_v0 = vld [vmem:[%s8259_s1 + $0xe48] sm:$0xff]  ;;  %v5554_v4 = vcombine.high %v392_v62, %v396_v63 }
  0xcf   :  { %v524_v1 = vld [vmem:[%s8259_s1 + $0xe68] sm:$0xff] }
  0xd0   :  { %v5682_v5 = vcombine.high %v520_v0, %v524_v1  ;;  %v400_v6 = vld [vmem:[%s8259_s1 + $0xa88] sm:$0xff] }
  0xd1   :  { %3386 = vmatpush1.bf16.msra.mxu0 %v5497_v10  ;;  %3427 = vmatpush1.bf16.msra.mxu1 %v5625_v11  ;;  %v404_v7 = vld [vmem:[%s8259_s1 + $0xaa8] sm:$0xff]  ;;  %v5553_v10 = vcombine.low %v392_v62, %v396_v63  ;;  %v5681_v11 = vcombine.low %v520_v0, %v524_v1  ;;  %v65_v62 = vld [vmem:[%s8259_s1 + $0x10] sm:$0xff] }
  0xd2   :  { %3387 = vmatprep.subr.bf16.mxu0 %v5506_v12  ;;  %3428 = vmatprep.subr.bf16.mxu1 %v5634_v13  ;;  %v528_v8 = vld [vmem:[%s8259_s1 + $0xe88] sm:$0xff]  ;;  %v5562_v12 = vcombine.high %v400_v6, %v404_v7  ;;  %v69_v63 = vld [vmem:[%s8259_s1 + $0x30] sm:$0xff] }
  0xd3   :  { %v532_v9 = vld [vmem:[%s8259_s1 + $0xea8] sm:$0xff]  ;;  %v193_v0 = vld [vmem:[%s8259_s1 + $0x410] sm:$0xff] }
  0xd4   :  { %v5690_v13 = vcombine.high %v528_v8, %v532_v9  ;;  %v408_v14 = vld [vmem:[%s8259_s1 + $0xac8] sm:$0xff]  ;;  %v197_v1 = vld [vmem:[%s8259_s1 + $0x430] sm:$0xff] }
  0xd5   :  { %3388 = vmatpush1.bf16.msra.mxu0 %v5505_v19  ;;  %3429 = vmatpush1.bf16.msra.mxu1 %v5633_v21  ;;  %v412_v15 = vld [vmem:[%s8259_s1 + $0xae8] sm:$0xff]  ;;  %v5561_v19 = vcombine.low %v400_v6, %v404_v7  ;;  %v5689_v21 = vcombine.low %v528_v8, %v532_v9  ;;  %v73_v6 = vld [vmem:[%s8259_s1 + $0x50] sm:$0xff] }
  0xd6   :  { %3389 = vmatprep.subr.bf16.mxu0 %v5514_v22  ;;  %3430 = vmatprep.subr.bf16.mxu1 %v5642_v23  ;;  %v536_v17 = vld [vmem:[%s8259_s1 + $0xec8] sm:$0xff]  ;;  %v5570_v22 = vcombine.high %v408_v14, %v412_v15  ;;  %v77_v7 = vld [vmem:[%s8259_s1 + $0x70] sm:$0xff] }
  0xd7   :  { %v540_v18 = vld [vmem:[%s8259_s1 + $0xee8] sm:$0xff]  ;;  %v201_v8 = vld [vmem:[%s8259_s1 + $0x450] sm:$0xff] }
  0xd8   :  { %v5698_v23 = vcombine.high %v536_v17, %v540_v18  ;;  %v416_v24 = vld [vmem:[%s8259_s1 + $0xb08] sm:$0xff]  ;;  %v205_v9 = vld [vmem:[%s8259_s1 + $0x470] sm:$0xff] }
  0xd9   :  { %3390 = vmatpush1.bf16.msra.mxu0 %v5513_v29  ;;  %3431 = vmatpush1.bf16.msra.mxu1 %v5641_v30  ;;  %v420_v25 = vld [vmem:[%s8259_s1 + $0xb28] sm:$0xff]  ;;  %v5569_v29 = vcombine.low %v408_v14, %v412_v15  ;;  %v5697_v30 = vcombine.low %v536_v17, %v540_v18  ;;  %v81_v14 = vld [vmem:[%s8259_s1 + $0x90] sm:$0xff] }
  0xda   :  { %3391 = vmatprep.subr.bf16.mxu0 %v5522_v32  ;;  %3432 = vmatprep.subr.bf16.mxu1 %v5650_v33  ;;  %v544_v26 = vld [vmem:[%s8259_s1 + $0xf08] sm:$0xff]  ;;  %v5578_v32 = vcombine.high %v416_v24, %v420_v25  ;;  %v85_v15 = vld [vmem:[%s8259_s1 + $0xb0] sm:$0xff] }
  0xdb   :  { %v548_v27 = vld [vmem:[%s8259_s1 + $0xf28] sm:$0xff]  ;;  %v209_v17 = vld [vmem:[%s8259_s1 + $0x490] sm:$0xff] }
  0xdc   :  { %v5706_v33 = vcombine.high %v544_v26, %v548_v27  ;;  %v424_v34 = vld [vmem:[%s8259_s1 + $0xb48] sm:$0xff]  ;;  %v213_v18 = vld [vmem:[%s8259_s1 + $0x4b0] sm:$0xff] }
  0xdd   :  { %3392 = vmatpush1.bf16.msra.mxu0 %v5521_v40  ;;  %3433 = vmatpush1.bf16.msra.mxu1 %v5649_v41  ;;  %v428_v35 = vld [vmem:[%s8259_s1 + $0xb68] sm:$0xff]  ;;  %v5577_v40 = vcombine.low %v416_v24, %v420_v25  ;;  %v5705_v41 = vcombine.low %v544_v26, %v548_v27  ;;  %v89_v24 = vld [vmem:[%s8259_s1 + $0xd0] sm:$0xff] }
  0xde   :  { %3393 = vmatprep.subr.bf16.mxu0 %v5530_v42  ;;  %3434 = vmatprep.subr.bf16.mxu1 %v5658_v43  ;;  %v552_v37 = vld [vmem:[%s8259_s1 + $0xf48] sm:$0xff]  ;;  %v5586_v42 = vcombine.high %v424_v34, %v428_v35  ;;  %v93_v25 = vld [vmem:[%s8259_s1 + $0xf0] sm:$0xff] }
  0xdf   :  { %v556_v38 = vld [vmem:[%s8259_s1 + $0xf68] sm:$0xff]  ;;  %v217_v26 = vld [vmem:[%s8259_s1 + $0x4d0] sm:$0xff] }
  0xe0   :  { %v5714_v43 = vcombine.high %v552_v37, %v556_v38  ;;  %v432_v44 = vld [vmem:[%s8259_s1 + $0xb88] sm:$0xff]  ;;  %v221_v27 = vld [vmem:[%s8259_s1 + $0x4f0] sm:$0xff] }
  0xe1   :  { %3394 = vmatpush1.bf16.msra.mxu0 %v5529_v48  ;;  %3435 = vmatpush1.bf16.msra.mxu1 %v5657_v49  ;;  %v436_v45 = vld [vmem:[%s8259_s1 + $0xba8] sm:$0xff]  ;;  %v5585_v48 = vcombine.low %v424_v34, %v428_v35  ;;  %v5713_v49 = vcombine.low %v552_v37, %v556_v38  ;;  %v97_v34 = vld [vmem:[%s8259_s1 + $0x110] sm:$0xff] }
  0xe2   :  { %3395 = vmatprep.subr.bf16.mxu0 %v5538_v50  ;;  %3436 = vmatprep.subr.bf16.mxu1 %v5666_v51  ;;  %v560_v46 = vld [vmem:[%s8259_s1 + $0xf88] sm:$0xff]  ;;  %v5594_v50 = vcombine.high %v432_v44, %v436_v45  ;;  %v101_v35 = vld [vmem:[%s8259_s1 + $0x130] sm:$0xff] }
  0xe3   :  { %v564_v47 = vld [vmem:[%s8259_s1 + $0xfa8] sm:$0xff]  ;;  %v225_v37 = vld [vmem:[%s8259_s1 + $0x510] sm:$0xff] }
  0xe4   :  { %v5722_v51 = vcombine.high %v560_v46, %v564_v47  ;;  %v440_v52 = vld [vmem:[%s8259_s1 + $0xbc8] sm:$0xff]  ;;  %v229_v38 = vld [vmem:[%s8259_s1 + $0x530] sm:$0xff] }
  0xe5   :  { %3396 = vmatpush1.bf16.msra.mxu0 %v5537_v56  ;;  %3437 = vmatpush1.bf16.msra.mxu1 %v5665_v57  ;;  %v444_v53 = vld [vmem:[%s8259_s1 + $0xbe8] sm:$0xff]  ;;  %v5593_v56 = vcombine.low %v432_v44, %v436_v45  ;;  %v5721_v57 = vcombine.low %v560_v46, %v564_v47  ;;  %v105_v44 = vld [vmem:[%s8259_s1 + $0x150] sm:$0xff] }
  0xe6   :  { %3397 = vmatprep.subr.bf16.mxu0 %v5546_v60  ;;  %3438 = vmatprep.subr.bf16.mxu1 %v5674_v61  ;;  %v568_v54 = vld [vmem:[%s8259_s1 + $0xfc8] sm:$0xff]  ;;  %v5602_v60 = vcombine.high %v440_v52, %v444_v53  ;;  %v109_v45 = vld [vmem:[%s8259_s1 + $0x170] sm:$0xff] }
  0xe7   :  { %v572_v55 = vld [vmem:[%s8259_s1 + $0xfe8] sm:$0xff]  ;;  %v233_v46 = vld [vmem:[%s8259_s1 + $0x550] sm:$0xff] }
  0xe8   :  { %v5730_v61 = vcombine.high %v568_v54, %v572_v55  ;;  %v237_v47 = vld [vmem:[%s8259_s1 + $0x570] sm:$0xff] }
  0xe9   :  { %3398 = vmatpush1.bf16.msra.mxu0 %v5545_v2  ;;  %3439 = vmatpush1.bf16.msra.mxu1 %v5673_v3  ;;  %v5601_v2 = vcombine.low %v440_v52, %v444_v53  ;;  %v5729_v3 = vcombine.low %v568_v54, %v572_v55  ;;  %v113_v52 = vld [vmem:[%s8259_s1 + $0x190] sm:$0xff] }
  0xea   :  { %3399 = vmatprep.subr.bf16.mxu0 %v5554_v4  ;;  %3440 = vmatprep.subr.bf16.mxu1 %v5682_v5  ;;  %v5228_v4 = vcombine.high %v65_v62, %v69_v63  ;;  %v5356_v5 = vcombine.high %v193_v0, %v197_v1  ;;  %v117_v53 = vld [vmem:[%s8259_s1 + $0x1b0] sm:$0xff] }
  0xeb   :  { %v241_v54 = vld [vmem:[%s8259_s1 + $0x590] sm:$0xff] }
  0xec   :  { %v245_v55 = vld [vmem:[%s8259_s1 + $0x5b0] sm:$0xff] }
  0xed   :  { %3400 = vmatpush1.bf16.msra.mxu0 %v5553_v10  ;;  %3441 = vmatpush1.bf16.msra.mxu1 %v5681_v11  ;;  %v5227_v10 = vcombine.low %v65_v62, %v69_v63  ;;  %v5355_v11 = vcombine.low %v193_v0, %v197_v1  ;;  %v5404_v62 = vcombine.high %v241_v54, %v245_v55  ;;  %v121_v63 = vld [vmem:[%s8259_s1 + $0x1d0] sm:$0xff] }
  0xee   :  { %3401 = vmatprep.subr.bf16.mxu0 %v5562_v12  ;;  %3442 = vmatprep.subr.bf16.mxu1 %v5690_v13  ;;  %v5236_v12 = vcombine.high %v73_v6, %v77_v7  ;;  %v5364_v13 = vcombine.high %v201_v8, %v205_v9  ;;  %v125_v0 = vld [vmem:[%s8259_s1 + $0x1f0] sm:$0xff] }
  0xf1   :  { %3402 = vmatpush1.bf16.msra.mxu0 %v5561_v19  ;;  %3443 = vmatpush1.bf16.msra.mxu1 %v5689_v21  ;;  %v5235_v19 = vcombine.low %v73_v6, %v77_v7  ;;  %v5363_v21 = vcombine.low %v201_v8, %v205_v9  ;;  %v5275_v8 = vcombine.low %v113_v52, %v117_v53 }
  0xf2   :  { %3403 = vmatprep.subr.bf16.mxu0 %v5570_v22  ;;  %3444 = vmatprep.subr.bf16.mxu1 %v5698_v23  ;;  %v5244_v22 = vcombine.high %v81_v14, %v85_v15  ;;  %v5372_v23 = vcombine.high %v209_v17, %v213_v18 }
  0xf5   :  { %3404 = vmatpush1.bf16.msra.mxu0 %v5569_v29  ;;  %3445 = vmatpush1.bf16.msra.mxu1 %v5697_v30  ;;  %v5243_v29 = vcombine.low %v81_v14, %v85_v15  ;;  %v5371_v30 = vcombine.low %v209_v17, %v213_v18  ;;  %v129_v17 = vld [vmem:[%s8259_s1 + $0x210] sm:$0xff] }
  0xf6   :  { %3405 = vmatprep.subr.bf16.mxu0 %v5578_v32  ;;  %3446 = vmatprep.subr.bf16.mxu1 %v5706_v33  ;;  %v5252_v32 = vcombine.high %v89_v24, %v93_v25  ;;  %v5380_v33 = vcombine.high %v217_v26, %v221_v27  ;;  %v133_v18 = vld [vmem:[%s8259_s1 + $0x230] sm:$0xff] }
  0xf9   :  { %3406 = vmatpush1.bf16.msra.mxu0 %v5577_v40  ;;  %3447 = vmatpush1.bf16.msra.mxu1 %v5705_v41  ;;  %v5251_v40 = vcombine.low %v89_v24, %v93_v25  ;;  %v5379_v41 = vcombine.low %v217_v26, %v221_v27  ;;  %v5292_v24 = vcombine.high %v129_v17, %v133_v18  ;;  %v137_v26 = vld [vmem:[%s8259_s1 + $0x250] sm:$0xff] }
  0xfa   :  { %3407 = vmatprep.subr.bf16.mxu0 %v5586_v42  ;;  %3448 = vmatprep.subr.bf16.mxu1 %v5714_v43  ;;  %v5260_v42 = vcombine.high %v97_v34, %v101_v35  ;;  %v5388_v43 = vcombine.high %v225_v37, %v229_v38  ;;  %v141_v27 = vld [vmem:[%s8259_s1 + $0x270] sm:$0xff] }
  0xfd   :  { %3408 = vmatpush1.bf16.msra.mxu0 %v5585_v48  ;;  %3449 = vmatpush1.bf16.msra.mxu1 %v5713_v49  ;;  %v5259_v48 = vcombine.low %v97_v34, %v101_v35  ;;  %v5387_v49 = vcombine.low %v225_v37, %v229_v38  ;;  %v5300_v34 = vcombine.high %v137_v26, %v141_v27  ;;  %v145_v37 = vld [vmem:[%s8259_s1 + $0x290] sm:$0xff] }
  0xfe   :  { %3409 = vmatprep.subr.bf16.mxu0 %v5594_v50  ;;  %3450 = vmatprep.subr.bf16.mxu1 %v5722_v51  ;;  %v5268_v50 = vcombine.high %v105_v44, %v109_v45  ;;  %v5396_v51 = vcombine.high %v233_v46, %v237_v47  ;;  %v149_v38 = vld [vmem:[%s8259_s1 + $0x2b0] sm:$0xff] }
 0x101   :  { %3410 = vmatpush1.bf16.msra.mxu0 %v5593_v56  ;;  %3451 = vmatpush1.bf16.msra.mxu1 %v5721_v57  ;;  %v5267_v56 = vcombine.low %v105_v44, %v109_v45  ;;  %v5395_v57 = vcombine.low %v233_v46, %v237_v47  ;;  %v5308_v44 = vcombine.high %v145_v37, %v149_v38  ;;  %v153_v46 = vld [vmem:[%s8259_s1 + $0x2d0] sm:$0xff] }
 0x102   :  { %3411 = vmatprep.subr.bf16.mxu0 %v5602_v60  ;;  %3452 = vmatprep.subr.bf16.mxu1 %v5730_v61  ;;  %v5276_v60 = vcombine.high %v113_v52, %v117_v53  ;;  %v157_v47 = vld [vmem:[%s8259_s1 + $0x2f0] sm:$0xff] }
 0x103   :  { %v5316_v52 = vcombine.high %v153_v46, %v157_v47 }
 0x105   :  { %3412 = vmatpush1.bf16.msra.mxu0 %v5601_v2  ;;  %3453 = vmatpush1.bf16.msra.mxu1 %v5729_v3  ;;  %v249_v3 = vld [vmem:[%s8259_s1 + $0x5d0] sm:$0xff] }
 0x106   :  { %3463 = vmatprep.subr.bf16.mxu0 %v5228_v4  ;;  %3504 = vmatprep.subr.bf16.mxu1 %v5356_v5  ;;  %v253_v4 = vld [vmem:[%s8259_s1 + $0x5f0] sm:$0xff] }
 0x107   :  { %v5412_v15 = vcombine.high %v249_v3, %v253_v4 }
 0x108   :  { %3414 = vmatmul.mubr.bf16.vlgmr.msra.gmra.mrb[12].mxu0 %v6542_v36  ;;  %3455 = vmatmul.mubr.bf16.vlgmr.msra.gmra.mrb[12].mxu1 %v6550_v39 }
 0x109   :  { %3464 = vmatpush1.bf16.msra.mxu0 %v5227_v10  ;;  %3505 = vmatpush1.bf16.msra.mxu1 %v5355_v11 }
 0x10a   :  { %3465 = vmatprep.subr.bf16.mxu0 %v5236_v12  ;;  %3506 = vmatprep.subr.bf16.mxu1 %v5364_v13  ;;  %v5403_v12 = vcombine.low %v241_v54, %v245_v55  ;;  %v5284_v13 = vcombine.high %v121_v63, %v125_v0  ;;  %v161_v54 = vld [vmem:[%s8259_s1 + $0x310] sm:$0xff] }
 0x10b   :  { %3495 = vmatprep.mubr.bf16.mxu0 %v6194_v58  ;;  %3536 = vmatprep.mubr.bf16.mxu1 %v6196_v59  ;;  %v165_v55 = vld [vmem:[%s8259_s1 + $0x330] sm:$0xff] }
 0x10d   :  { %3466 = vmatpush1.bf16.msra.mxu0 %v5235_v19  ;;  %3507 = vmatpush1.bf16.msra.mxu1 %v5363_v21  ;;  %v257_v19 = vld [vmem:[%s8259_s1 + $0x610] sm:$0xff] }
 0x10e   :  { %3467 = vmatprep.subr.bf16.mxu0 %v5244_v22  ;;  %3508 = vmatprep.subr.bf16.mxu1 %v5372_v23  ;;  %v261_v21 = vld [vmem:[%s8259_s1 + $0x630] sm:$0xff]  ;;  %v5283_v22 = vcombine.low %v121_v63, %v125_v0  ;;  %v5411_v23 = vcombine.low %v249_v3, %v253_v4  ;;  %v5323_v4 = vcombine.low %v161_v54, %v165_v55 }
 0x10f   :  { %v5420_v25 = vcombine.high %v257_v19, %v261_v21  ;;  %v169_v0 = vld [vmem:[%s8259_s1 + $0x350] sm:$0xff] }
 0x110   :  { %v301_v3 = vld [vmem:[%s8259_s1 + $0x770] sm:$0xff] }
 0x111   :  { %3468 = vmatpush1.bf16.msra.mxu0 %v5243_v29  ;;  %3509 = vmatpush1.bf16.msra.mxu1 %v5371_v30  ;;  %v265_v29 = vld [vmem:[%s8259_s1 + $0x650] sm:$0xff] }
 0x112   :  { %3469 = vmatprep.subr.bf16.mxu0 %v5252_v32  ;;  %3510 = vmatprep.subr.bf16.mxu1 %v5380_v33  ;;  %v269_v30 = vld [vmem:[%s8259_s1 + $0x670] sm:$0xff]  ;;  %v5291_v32 = vcombine.low %v129_v17, %v133_v18  ;;  %v5419_v33 = vcombine.low %v257_v19, %v261_v21 }
 0x113   :  { %v5428_v35 = vcombine.high %v265_v29, %v269_v30  ;;  %v185_v19 = vld [vmem:[%s8259_s1 + $0x3d0] sm:$0xff] }
 0x114   :  { %v189_v21 = vld [vmem:[%s8259_s1 + $0x3f0] sm:$0xff] }
 0x115   :  { %3470 = vmatpush1.bf16.msra.mxu0 %v5251_v40  ;;  %3511 = vmatpush1.bf16.msra.mxu1 %v5379_v41  ;;  %v273_v40 = vld [vmem:[%s8259_s1 + $0x690] sm:$0xff] }
 0x116   :  { %3471 = vmatprep.subr.bf16.mxu0 %v5260_v42  ;;  %3512 = vmatprep.subr.bf16.mxu1 %v5388_v43  ;;  %v277_v41 = vld [vmem:[%s8259_s1 + $0x6b0] sm:$0xff]  ;;  %v5299_v42 = vcombine.low %v137_v26, %v141_v27  ;;  %v5427_v43 = vcombine.low %v265_v29, %v269_v30  ;;  %v5348_v26 = vcombine.high %v185_v19, %v189_v21 }
 0x117   :  { %v5436_v45 = vcombine.high %v273_v40, %v277_v41  ;;  %v321_v29 = vld [vmem:[%s8259_s1 + $0x810] sm:$0xff] }
 0x118   :  { %v325_v30 = vld [vmem:[%s8259_s1 + $0x830] sm:$0xff] }
 0x119   :  { %3472 = vmatpush1.bf16.msra.mxu0 %v5259_v48  ;;  %3513 = vmatpush1.bf16.msra.mxu1 %v5387_v49  ;;  %v281_v48 = vld [vmem:[%s8259_s1 + $0x6d0] sm:$0xff] }
 0x11a   :  { %3473 = vmatprep.subr.bf16.mxu0 %v5268_v50  ;;  %3514 = vmatprep.subr.bf16.mxu1 %v5396_v51  ;;  %v3210_v1 = vpop.f32.mrb[0].mxu1  ;;  %v285_v49 = vld [vmem:[%s8259_s1 + $0x6f0] sm:$0xff]  ;;  %v5307_v50 = vcombine.low %v145_v37, %v149_v38  ;;  %v5435_v51 = vcombine.low %v273_v40, %v277_v41  ;;  %v5484_v37 = vcombine.high %v321_v29, %v325_v30 }
 0x11b   :  { %v3169_v61 = vpop.f32.mrb[0].mxu0  ;;  %v3212_v6 = vpop.f32.mrb[1].mxu1  ;;  %v5444_v53 = vcombine.high %v281_v48, %v285_v49  ;;  %v329_v40 = vld [vmem:[%s8259_s1 + $0x850] sm:$0xff] }
 0x11c   :  { %v3171_v2 = vpop.f32.mrb[1].mxu0  ;;  %v7020_v5 = vadd.f32 %v3210_v1, %v3169_v61  ;;  %v3214_v10 = vpop.f32.mrb[2].mxu1  ;;  %v5443_v61 = vcombine.low %v281_v48, %v285_v49  ;;  %v173_v1 = vld [vmem:[%s8259_s1 + $0x370] sm:$0xff] }
 0x11d   :  { %v3173_v7 = vpop.f32.mrb[2].mxu0  ;;  %3474 = vmatpush1.bf16.msra.mxu0 %v5267_v56  ;;  %v7022_v9 = vadd.f32 %v3212_v6, %v3171_v2  ;;  %3515 = vmatpush1.bf16.msra.mxu1 %v5395_v57  ;;  %v3215_v14 = vpop.f32.mrb[3].mxu1  ;;  %v289_v56 = vld [vmem:[%s8259_s1 + $0x710] sm:$0xff] }
 0x11e   :  { %v3174_v11 = vpop.f32.mrb[3].mxu0  ;;  %3475 = vmatprep.subr.bf16.mxu0 %v5276_v60  ;;  %3516 = vmatprep.subr.bf16.mxu1 %v5404_v62  ;;  %v293_v57 = vld [vmem:[%s8259_s1 + $0x730] sm:$0xff]  ;;  %v5315_v60 = vcombine.low %v153_v46, %v157_v47  ;;  %v5324_v62 = vcombine.high %v161_v54, %v165_v55  ;;  %v5332_v7 = vcombine.high %v169_v0, %v173_v1 }
 0x11f   :  { %v5452_v63 = vcombine.high %v289_v56, %v293_v57  ;;  %v297_v2 = vld [vmem:[%s8259_s1 + $0x750] sm:$0xff]  ;;  %v5451_v6 = vcombine.low %v289_v56, %v293_v57  ;;  %v5331_v14 = vcombine.low %v169_v0, %v173_v1 }
 0x120   :  { %v177_v10 = vld [vmem:[%s8259_s1 + $0x390] sm:$0xff] }
 0x121   :  { %3476 = vmatpush1.bf16.msra.mxu0 %v5275_v8  ;;  %3517 = vmatpush1.bf16.msra.mxu1 %v5403_v12  ;;  %v5460_v8 = vcombine.high %v297_v2, %v301_v3  ;;  %v181_v11 = vld [vmem:[%s8259_s1 + $0x3b0] sm:$0xff] }
 0x122   :  { %3477 = vmatprep.subr.bf16.mxu0 %v5284_v13  ;;  %3518 = vmatprep.subr.bf16.mxu1 %v5412_v15  ;;  %v305_v12 = vld [vmem:[%s8259_s1 + $0x790] sm:$0xff]  ;;  %v5459_v15 = vcombine.low %v297_v2, %v301_v3  ;;  %v5340_v17 = vcombine.high %v177_v10, %v181_v11 }
 0x123   :  { %v309_v13 = vld [vmem:[%s8259_s1 + $0x7b0] sm:$0xff] }
 0x124   :  { %v5468_v18 = vcombine.high %v305_v12, %v309_v13  ;;  %v333_v41 = vld [vmem:[%s8259_s1 + $0x870] sm:$0xff] }
 0x125   :  { %3478 = vmatpush1.bf16.msra.mxu0 %v5283_v22  ;;  %3519 = vmatpush1.bf16.msra.mxu1 %v5411_v23  ;;  %v313_v22 = vld [vmem:[%s8259_s1 + $0x7d0] sm:$0xff]  ;;  %v5492_v46 = vcombine.high %v329_v40, %v333_v41 }
 0x126   :  { %3479 = vmatprep.subr.bf16.mxu0 %v5292_v24  ;;  %3520 = vmatprep.subr.bf16.mxu1 %v5420_v25  ;;  %v317_v23 = vld [vmem:[%s8259_s1 + $0x7f0] sm:$0xff]  ;;  %v5339_v24 = vcombine.low %v177_v10, %v181_v11  ;;  %v5467_v25 = vcombine.low %v305_v12, %v309_v13 }
 0x127   :  { %v5476_v27 = vcombine.high %v313_v22, %v317_v23  ;;  %v337_v48 = vld [vmem:[%s8259_s1 + $0x890] sm:$0xff] }
 0x128   :  { %v341_v49 = vld [vmem:[%s8259_s1 + $0x8b0] sm:$0xff] }
 0x129   :  { %3480 = vmatpush1.bf16.msra.mxu0 %v5291_v32  ;;  %3521 = vmatpush1.bf16.msra.mxu1 %v5419_v33  ;;  %v449_v32 = vld [vmem:[%s8259_s1 + $0xc10] sm:$0xff]  ;;  %v5500_v54 = vcombine.high %v337_v48, %v341_v49 }
 0x12a   :  { %3481 = vmatprep.subr.bf16.mxu0 %v5300_v34  ;;  %3522 = vmatprep.subr.bf16.mxu1 %v5428_v35  ;;  %v453_v33 = vld [vmem:[%s8259_s1 + $0xc30] sm:$0xff]  ;;  %v5347_v34 = vcombine.low %v185_v19, %v189_v21  ;;  %v5475_v35 = vcombine.low %v313_v22, %v317_v23 }
 0x12b   :  { %v5612_v38 = vcombine.high %v449_v32, %v453_v33  ;;  %v345_v56 = vld [vmem:[%s8259_s1 + $0x8d0] sm:$0xff] }
 0x12c   :  { %v349_v57 = vld [vmem:[%s8259_s1 + $0x8f0] sm:$0xff] }
 0x12d   :  { %3482 = vmatpush1.bf16.msra.mxu0 %v5299_v42  ;;  %3523 = vmatpush1.bf16.msra.mxu1 %v5427_v43  ;;  %v457_v42 = vld [vmem:[%s8259_s1 + $0xc50] sm:$0xff]  ;;  %v5508_v0 = vcombine.high %v345_v56, %v349_v57 }
 0x12e   :  { %3483 = vmatprep.subr.bf16.mxu0 %v5308_v44  ;;  %3524 = vmatprep.subr.bf16.mxu1 %v5436_v45  ;;  %v461_v43 = vld [vmem:[%s8259_s1 + $0xc70] sm:$0xff]  ;;  %v5483_v44 = vcombine.low %v321_v29, %v325_v30  ;;  %v5611_v45 = vcombine.low %v449_v32, %v453_v33 }
 0x12f   :  { %v5620_v47 = vcombine.high %v457_v42, %v461_v43  ;;  %v353_v2 = vld [vmem:[%s8259_s1 + $0x910] sm:$0xff] }
 0x130   :  { %v357_v3 = vld [vmem:[%s8259_s1 + $0x930] sm:$0xff] }
 0x131   :  { %3484 = vmatpush1.bf16.msra.mxu0 %v5307_v50  ;;  %3525 = vmatpush1.bf16.msra.mxu1 %v5435_v51  ;;  %v465_v50 = vld [vmem:[%s8259_s1 + $0xc90] sm:$0xff]  ;;  %v5516_v10 = vcombine.high %v353_v2, %v357_v3 }
 0x132   :  { %3485 = vmatprep.subr.bf16.mxu0 %v5316_v52  ;;  %3526 = vmatprep.subr.bf16.mxu1 %v5444_v53  ;;  %v469_v51 = vld [vmem:[%s8259_s1 + $0xcb0] sm:$0xff]  ;;  %v5491_v52 = vcombine.low %v329_v40, %v333_v41  ;;  %v5619_v53 = vcombine.low %v457_v42, %v461_v43 }
 0x133   :  { %v5628_v55 = vcombine.high %v465_v50, %v469_v51  ;;  %v361_v12 = vld [vmem:[%s8259_s1 + $0x950] sm:$0xff] }
 0x134   :  { %v365_v13 = vld [vmem:[%s8259_s1 + $0x970] sm:$0xff] }
 0x135   :  { %3486 = vmatpush1.bf16.msra.mxu0 %v5315_v60  ;;  %3527 = vmatpush1.bf16.msra.mxu1 %v5443_v61  ;;  %v473_v60 = vld [vmem:[%s8259_s1 + $0xcd0] sm:$0xff]  ;;  %v5524_v19 = vcombine.high %v361_v12, %v365_v13 }
 0x136   :  { %3487 = vmatprep.subr.bf16.mxu0 %v5324_v62  ;;  %3528 = vmatprep.subr.bf16.mxu1 %v5452_v63  ;;  %v477_v61 = vld [vmem:[%s8259_s1 + $0xcf0] sm:$0xff]  ;;  %v5499_v62 = vcombine.low %v337_v48, %v341_v49  ;;  %v5627_v63 = vcombine.low %v465_v50, %v469_v51 }
 0x137   :  { %v5636_v1 = vcombine.high %v473_v60, %v477_v61  ;;  %v369_v22 = vld [vmem:[%s8259_s1 + $0x990] sm:$0xff] }
 0x138   :  { %v373_v23 = vld [vmem:[%s8259_s1 + $0x9b0] sm:$0xff] }
 0x139   :  { %3488 = vmatpush1.bf16.msra.mxu0 %v5323_v4  ;;  %3529 = vmatpush1.bf16.msra.mxu1 %v5451_v6  ;;  %v481_v4 = vld [vmem:[%s8259_s1 + $0xd10] sm:$0xff]  ;;  %v5532_v29 = vcombine.high %v369_v22, %v373_v23 }
 0x13a   :  { %3489 = vmatprep.subr.bf16.mxu0 %v5332_v7  ;;  %3530 = vmatprep.subr.bf16.mxu1 %v5460_v8  ;;  %v485_v6 = vld [vmem:[%s8259_s1 + $0xd30] sm:$0xff]  ;;  %v5507_v7 = vcombine.low %v345_v56, %v349_v57  ;;  %v5635_v8 = vcombine.low %v473_v60, %v477_v61 }
 0x13b   :  { %v5644_v11 = vcombine.high %v481_v4, %v485_v6  ;;  %v377_v33 = vld [vmem:[%s8259_s1 + $0x9d0] sm:$0xff] }
 0x13c   :  { %v505_v40 = vld [vmem:[%s8259_s1 + $0xdd0] sm:$0xff] }
 0x13d   :  { %3490 = vmatpush1.bf16.msra.mxu0 %v5331_v14  ;;  %3531 = vmatpush1.bf16.msra.mxu1 %v5459_v15  ;;  %v489_v14 = vld [vmem:[%s8259_s1 + $0xd50] sm:$0xff] }
 0x13e   :  { %3491 = vmatprep.subr.bf16.mxu0 %v5340_v17  ;;  %3532 = vmatprep.subr.bf16.mxu1 %v5468_v18  ;;  %v493_v15 = vld [vmem:[%s8259_s1 + $0xd70] sm:$0xff]  ;;  %v5515_v17 = vcombine.low %v353_v2, %v357_v3  ;;  %v5643_v18 = vcombine.low %v481_v4, %v485_v6 }
 0x13f   :  { %v5652_v21 = vcombine.high %v489_v14, %v493_v15  ;;  %v509_v41 = vld [vmem:[%s8259_s1 + $0xdf0] sm:$0xff] }
 0x140   :  { %v5667_v57 = vcombine.low %v505_v40, %v509_v41 }
 0x141   :  { %3492 = vmatpush1.bf16.msra.mxu0 %v5339_v24  ;;  %3533 = vmatpush1.bf16.msra.mxu1 %v5467_v25  ;;  %v497_v24 = vld [vmem:[%s8259_s1 + $0xd90] sm:$0xff] }
 0x142   :  { %3493 = vmatprep.subr.bf16.mxu0 %v5348_v26  ;;  %3534 = vmatprep.subr.bf16.mxu1 %v5476_v27  ;;  %v501_v25 = vld [vmem:[%s8259_s1 + $0xdb0] sm:$0xff]  ;;  %v5523_v26 = vcombine.low %v361_v12, %v365_v13  ;;  %v5651_v27 = vcombine.low %v489_v14, %v493_v15 }
 0x143   :  { %v5660_v32 = vcombine.high %v497_v24, %v501_v25  ;;  %v5659_v48 = vcombine.low %v497_v24, %v501_v25 }
 0x145   :  { %3494 = vmatpush1.bf16.msra.mxu0 %v5347_v34  ;;  %3535 = vmatpush1.bf16.msra.mxu1 %v5475_v35  ;;  %v381_v34 = vld [vmem:[%s8259_s1 + $0x9f0] sm:$0xff] }
 0x146   :  { %3545 = vmatprep.subr.bf16.mxu0 %v5484_v37  ;;  %3586 = vmatprep.subr.bf16.mxu1 %v5612_v38  ;;  %v5540_v49 = vcombine.high %v377_v33, %v381_v34  ;;  %v5539_v56 = vcombine.low %v377_v33, %v381_v34 }
 0x148   :  { %3496 = vmatmul.mubr.bf16.vlgmr.msra.gmra.mrb[16].mxu0 %v6326_v16  ;;  %3537 = vmatmul.mubr.bf16.vlgmr.msra.gmra.mrb[16].mxu1 %v6337_v20 }
 0x149   :  { %3546 = vmatpush1.bf16.msra.mxu0 %v5483_v44  ;;  %3587 = vmatpush1.bf16.msra.mxu1 %v5611_v45  ;;  %v5531_v45 = vcombine.low %v369_v22, %v373_v23 }
 0x14a   :  { %3547 = vmatprep.subr.bf16.mxu0 %v5492_v46  ;;  %3588 = vmatprep.subr.bf16.mxu1 %v5620_v47 }
 0x14b   :  { %3577 = vmatprep.mubr.bf16.mxu0 %v6348_v28  ;;  %3618 = vmatprep.mubr.bf16.mxu1 %v6357_v31 }
 0x14d   :  { %3548 = vmatpush1.bf16.msra.mxu0 %v5491_v52  ;;  %3589 = vmatpush1.bf16.msra.mxu1 %v5619_v53  ;;  %v5668_v52 = vcombine.high %v505_v40, %v509_v41  ;;  %v389_v53 = vld [vmem:[%s8259_s1 + $0xa30] sm:$0xff] }
 0x14e   :  { %3549 = vmatprep.subr.bf16.mxu0 %v5500_v54  ;;  %3590 = vmatprep.subr.bf16.mxu1 %v5628_v55  ;;  %v513_v54 = vld [vmem:[%s8259_s1 + $0xe10] sm:$0xff] }
 0x14f   :  { %v517_v55 = vld [vmem:[%s8259_s1 + $0xe30] sm:$0xff] }
 0x150   :  { %v5676_v61 = vcombine.high %v513_v54, %v517_v55  ;;  %v5675_v3 = vcombine.low %v513_v54, %v517_v55  ;;  %v553_v40 = vld [vmem:[%s8259_s1 + $0xf50] sm:$0xff] }
 0x151   :  { %3550 = vmatpush1.bf16.msra.mxu0 %v5499_v62  ;;  %3591 = vmatpush1.bf16.msra.mxu1 %v5627_v63  ;;  %v393_v62 = vld [vmem:[%s8259_s1 + $0xa50] sm:$0xff] }
 0x152   :  { %3551 = vmatprep.subr.bf16.mxu0 %v5508_v0  ;;  %3592 = vmatprep.subr.bf16.mxu1 %v5636_v1  ;;  %v397_v63 = vld [vmem:[%s8259_s1 + $0xa70] sm:$0xff] }
 0x153   :  { %v521_v0 = vld [vmem:[%s8259_s1 + $0xe50] sm:$0xff]  ;;  %v5556_v4 = vcombine.high %v393_v62, %v397_v63  ;;  %v5555_v12 = vcombine.low %v393_v62, %v397_v63 }
 0x154   :  { %v525_v1 = vld [vmem:[%s8259_s1 + $0xe70] sm:$0xff] }
 0x155   :  { %3552 = vmatpush1.bf16.msra.mxu0 %v5507_v7  ;;  %3593 = vmatpush1.bf16.msra.mxu1 %v5635_v8  ;;  %v5684_v6 = vcombine.high %v521_v0, %v525_v1  ;;  %v401_v7 = vld [vmem:[%s8259_s1 + $0xa90] sm:$0xff]  ;;  %v5683_v13 = vcombine.low %v521_v0, %v525_v1  ;;  %v66_v0 = vld [vmem:[%s8259_s1 + $0x18] sm:$0xff] }
 0x156   :  { %3553 = vmatprep.subr.bf16.mxu0 %v5516_v10  ;;  %3594 = vmatprep.subr.bf16.mxu1 %v5644_v11  ;;  %v405_v8 = vld [vmem:[%s8259_s1 + $0xab0] sm:$0xff]  ;;  %v70_v1 = vld [vmem:[%s8259_s1 + $0x38] sm:$0xff] }
 0x157   :  { %v529_v10 = vld [vmem:[%s8259_s1 + $0xe90] sm:$0xff]  ;;  %v5564_v14 = vcombine.high %v401_v7, %v405_v8  ;;  %v5563_v22 = vcombine.low %v401_v7, %v405_v8  ;;  %v5230_v7 = vcombine.high %v66_v0, %v70_v1 }
 0x158   :  { %v533_v11 = vld [vmem:[%s8259_s1 + $0xeb0] sm:$0xff] }
 0x159   :  { %3554 = vmatpush1.bf16.msra.mxu0 %v5515_v17  ;;  %3595 = vmatpush1.bf16.msra.mxu1 %v5643_v18  ;;  %v5692_v15 = vcombine.high %v529_v10, %v533_v11  ;;  %v409_v17 = vld [vmem:[%s8259_s1 + $0xad0] sm:$0xff]  ;;  %v5691_v23 = vcombine.low %v529_v10, %v533_v11  ;;  %v74_v10 = vld [vmem:[%s8259_s1 + $0x58] sm:$0xff] }
 0x15a   :  { %3555 = vmatprep.subr.bf16.mxu0 %v5524_v19  ;;  %3596 = vmatprep.subr.bf16.mxu1 %v5652_v21  ;;  %v413_v18 = vld [vmem:[%s8259_s1 + $0xaf0] sm:$0xff]  ;;  %v78_v11 = vld [vmem:[%s8259_s1 + $0x78] sm:$0xff] }
 0x15b   :  { %v3251_v30 = vpop.f32.mrb[4].mxu0  ;;  %v3292_v37 = vpop.f32.mrb[4].mxu1  ;;  %v537_v19 = vld [vmem:[%s8259_s1 + $0xed0] sm:$0xff]  ;;  %v5572_v24 = vcombine.high %v409_v17, %v413_v18 }
 0x15c   :  { %v3252_v35 = vadd.f32 %v3251_v30, %v7020_v5  ;;  %v3253_v38 = vpop.f32.mrb[5].mxu0  ;;  %v3294_v43 = vpop.f32.mrb[5].mxu1  ;;  %v541_v21 = vld [vmem:[%s8259_s1 + $0xef0] sm:$0xff] }
 0x15d   :  { %v3254_v42 = vadd.f32 %v3253_v38, %v7022_v9  ;;  %v3255_v44 = vpop.f32.mrb[6].mxu0  ;;  %3556 = vmatpush1.bf16.msra.mxu0 %v5523_v26  ;;  %v3296_v47 = vpop.f32.mrb[6].mxu1  ;;  %3597 = vmatpush1.bf16.msra.mxu1 %v5651_v27  ;;  %v385_v9 = vld [vmem:[%s8259_s1 + $0xa10] sm:$0xff]  ;;  %v5700_v25 = vcombine.high %v537_v19, %v541_v21  ;;  %v5699_v33 = vcombine.low %v537_v19, %v541_v21  ;;  %v86_v19 = vld [vmem:[%s8259_s1 + $0xb8] sm:$0xff] }
 0x15e   :  { %v7222_v46 = vadd.f32 %v3292_v37, %v3252_v35  ;;  %v3256_v5 = vpop.f32.mrb[7].mxu0  ;;  %3557 = vmatprep.subr.bf16.mxu0 %v5532_v29  ;;  %v3297_v51 = vpop.f32.mrb[7].mxu1  ;;  %3598 = vmatprep.subr.bf16.mxu1 %v5660_v32  ;;  %v5548_v60 = vcombine.high %v385_v9, %v389_v53  ;;  %v5547_v2 = vcombine.low %v385_v9, %v389_v53  ;;  %v417_v26 = vld [vmem:[%s8259_s1 + $0xb10] sm:$0xff] }
 0x15f   :  { %v7224_v50 = vadd.f32 %v3294_v43, %v3254_v42  ;;  %v421_v27 = vld [vmem:[%s8259_s1 + $0xb30] sm:$0xff]  ;;  %v5571_v32 = vcombine.low %v409_v17, %v413_v18  ;;  %v5238_v17 = vcombine.high %v74_v10, %v78_v11  ;;  %v82_v18 = vld [vmem:[%s8259_s1 + $0x98] sm:$0xff] }
 0x160   :  { %v545_v29 = vld [vmem:[%s8259_s1 + $0xf10] sm:$0xff]  ;;  %v5580_v34 = vcombine.high %v417_v26, %v421_v27  ;;  %v5579_v42 = vcombine.low %v417_v26, %v421_v27  ;;  %v5246_v27 = vcombine.high %v82_v18, %v86_v19 }
 0x161   :  { %3558 = vmatpush1.bf16.msra.mxu0 %v5531_v45  ;;  %3599 = vmatpush1.bf16.msra.mxu1 %v5659_v48  ;;  %v549_v30 = vld [vmem:[%s8259_s1 + $0xf30] sm:$0xff] }
 0x162   :  { %3559 = vmatprep.subr.bf16.mxu0 %v5540_v49  ;;  %3600 = vmatprep.subr.bf16.mxu1 %v5668_v52  ;;  %v5708_v35 = vcombine.high %v545_v29, %v549_v30  ;;  %v425_v37 = vld [vmem:[%s8259_s1 + $0xb50] sm:$0xff]  ;;  %v5707_v43 = vcombine.low %v545_v29, %v549_v30  ;;  %v94_v29 = vld [vmem:[%s8259_s1 + $0xf8] sm:$0xff] }
 0x163   :  { %v429_v38 = vld [vmem:[%s8259_s1 + $0xb70] sm:$0xff] }
 0x164   :  { %v557_v41 = vld [vmem:[%s8259_s1 + $0xf70] sm:$0xff]  ;;  %v5588_v44 = vcombine.high %v425_v37, %v429_v38  ;;  %v5587_v51 = vcombine.low %v425_v37, %v429_v38 }
 0x165   :  { %3560 = vmatpush1.bf16.msra.mxu0 %v5539_v56  ;;  %3601 = vmatpush1.bf16.msra.mxu1 %v5667_v57  ;;  %v5716_v45 = vcombine.high %v553_v40, %v557_v41  ;;  %v433_v47 = vld [vmem:[%s8259_s1 + $0xb90] sm:$0xff]  ;;  %v5715_v52 = vcombine.low %v553_v40, %v557_v41  ;;  %v230_v41 = vld [vmem:[%s8259_s1 + $0x538] sm:$0xff] }
 0x166   :  { %3561 = vmatprep.subr.bf16.mxu0 %v5548_v60  ;;  %3602 = vmatprep.subr.bf16.mxu1 %v5676_v61  ;;  %v437_v5 = vld [vmem:[%s8259_s1 + $0xbb0] sm:$0xff] }
 0x167   :  { %v561_v48 = vld [vmem:[%s8259_s1 + $0xf90] sm:$0xff]  ;;  %v5596_v9 = vcombine.high %v433_v47, %v437_v5  ;;  %v5595_v60 = vcombine.low %v433_v47, %v437_v5  ;;  %v110_v47 = vld [vmem:[%s8259_s1 + $0x178] sm:$0xff] }
 0x168   :  { %v565_v49 = vld [vmem:[%s8259_s1 + $0xfb0] sm:$0xff] }
 0x169   :  { %3562 = vmatpush1.bf16.msra.mxu0 %v5547_v2  ;;  %3603 = vmatpush1.bf16.msra.mxu1 %v5675_v3  ;;  %v5724_v53 = vcombine.high %v561_v48, %v565_v49  ;;  %v441_v54 = vld [vmem:[%s8259_s1 + $0xbd0] sm:$0xff]  ;;  %v5723_v61 = vcombine.low %v561_v48, %v565_v49  ;;  %v194_v2 = vld [vmem:[%s8259_s1 + $0x418] sm:$0xff] }
 0x16a   :  { %3563 = vmatprep.subr.bf16.mxu0 %v5556_v4  ;;  %3604 = vmatprep.subr.bf16.mxu1 %v5684_v6  ;;  %v445_v55 = vld [vmem:[%s8259_s1 + $0xbf0] sm:$0xff]  ;;  %v198_v3 = vld [vmem:[%s8259_s1 + $0x438] sm:$0xff] }
 0x16b   :  { %v569_v56 = vld [vmem:[%s8259_s1 + $0xfd0] sm:$0xff]  ;;  %v5604_v62 = vcombine.high %v441_v54, %v445_v55  ;;  %v5603_v4 = vcombine.low %v441_v54, %v445_v55  ;;  %v5358_v8 = vcombine.high %v194_v2, %v198_v3  ;;  %v234_v48 = vld [vmem:[%s8259_s1 + $0x558] sm:$0xff] }
 0x16c   :  { %v573_v57 = vld [vmem:[%s8259_s1 + $0xff0] sm:$0xff]  ;;  %v238_v49 = vld [vmem:[%s8259_s1 + $0x578] sm:$0xff] }
 0x16d   :  { %3564 = vmatpush1.bf16.msra.mxu0 %v5555_v12  ;;  %3605 = vmatpush1.bf16.msra.mxu1 %v5683_v13  ;;  %v5732_v63 = vcombine.high %v569_v56, %v573_v57  ;;  %v5731_v6 = vcombine.low %v569_v56, %v573_v57  ;;  %v202_v12 = vld [vmem:[%s8259_s1 + $0x458] sm:$0xff]  ;;  %v5398_v55 = vcombine.high %v234_v48, %v238_v49 }
 0x16e   :  { %3565 = vmatprep.subr.bf16.mxu0 %v5564_v14  ;;  %3606 = vmatprep.subr.bf16.mxu1 %v5692_v15  ;;  %v206_v13 = vld [vmem:[%s8259_s1 + $0x478] sm:$0xff]  ;;  %v5229_v14 = vcombine.low %v66_v0, %v70_v1  ;;  %v5357_v15 = vcombine.low %v194_v2, %v198_v3 }
 0x16f   :  { %v5366_v21 = vcombine.high %v202_v12, %v206_v13  ;;  %v5365_v26 = vcombine.low %v202_v12, %v206_v13  ;;  %v118_v54 = vld [vmem:[%s8259_s1 + $0x1b8] sm:$0xff] }
 0x170   :  { %v242_v56 = vld [vmem:[%s8259_s1 + $0x598] sm:$0xff] }
 0x171   :  { %3566 = vmatpush1.bf16.msra.mxu0 %v5563_v22  ;;  %3607 = vmatpush1.bf16.msra.mxu1 %v5691_v23  ;;  %v210_v22 = vld [vmem:[%s8259_s1 + $0x498] sm:$0xff] }
 0x172   :  { %3567 = vmatprep.subr.bf16.mxu0 %v5572_v24  ;;  %3608 = vmatprep.subr.bf16.mxu1 %v5700_v25  ;;  %v214_v23 = vld [vmem:[%s8259_s1 + $0x4b8] sm:$0xff]  ;;  %v5237_v24 = vcombine.low %v74_v10, %v78_v11 }
 0x173   :  { %v90_v25 = vld [vmem:[%s8259_s1 + $0xd8] sm:$0xff]  ;;  %v5374_v30 = vcombine.high %v210_v22, %v214_v23  ;;  %v5373_v37 = vcombine.low %v210_v22, %v214_v23 }
 0x174   :  { %v5254_v38 = vcombine.high %v90_v25, %v94_v29  ;;  %v246_v57 = vld [vmem:[%s8259_s1 + $0x5b8] sm:$0xff] }
 0x175   :  { %3568 = vmatpush1.bf16.msra.mxu0 %v5571_v32  ;;  %3609 = vmatpush1.bf16.msra.mxu1 %v5699_v33  ;;  %v218_v32 = vld [vmem:[%s8259_s1 + $0x4d8] sm:$0xff]  ;;  %v5406_v1 = vcombine.high %v242_v56, %v246_v57 }
 0x176   :  { %3569 = vmatprep.subr.bf16.mxu0 %v5580_v34  ;;  %3610 = vmatprep.subr.bf16.mxu1 %v5708_v35  ;;  %v222_v33 = vld [vmem:[%s8259_s1 + $0x4f8] sm:$0xff]  ;;  %v5245_v34 = vcombine.low %v82_v18, %v86_v19  ;;  %v5405_v18 = vcombine.low %v242_v56, %v246_v57 }
 0x177   :  { %v98_v35 = vld [vmem:[%s8259_s1 + $0x118] sm:$0xff]  ;;  %v5382_v40 = vcombine.high %v218_v32, %v222_v33 }
 0x178   :  { %v126_v2 = vld [vmem:[%s8259_s1 + $0x1f8] sm:$0xff] }
 0x179   :  { %3570 = vmatpush1.bf16.msra.mxu0 %v5579_v42  ;;  %3611 = vmatpush1.bf16.msra.mxu1 %v5707_v43  ;;  %v5253_v42 = vcombine.low %v90_v25, %v94_v29  ;;  %v106_v43 = vld [vmem:[%s8259_s1 + $0x158] sm:$0xff] }
 0x17a   :  { %3571 = vmatprep.subr.bf16.mxu0 %v5588_v44  ;;  %3612 = vmatprep.subr.bf16.mxu1 %v5716_v45  ;;  %v5381_v44 = vcombine.low %v218_v32, %v222_v33  ;;  %v130_v13 = vld [vmem:[%s8259_s1 + $0x218] sm:$0xff] }
 0x17b   :  { %v258_v22 = vld [vmem:[%s8259_s1 + $0x618] sm:$0xff] }
 0x17c   :  { %v262_v25 = vld [vmem:[%s8259_s1 + $0x638] sm:$0xff] }
 0x17d   :  { %3572 = vmatpush1.bf16.msra.mxu0 %v5587_v51  ;;  %3613 = vmatpush1.bf16.msra.mxu1 %v5715_v52  ;;  %v114_v52 = vld [vmem:[%s8259_s1 + $0x198] sm:$0xff]  ;;  %v5422_v33 = vcombine.high %v258_v22, %v262_v25 }
 0x17e   :  { %3573 = vmatprep.subr.bf16.mxu0 %v5596_v9  ;;  %3614 = vmatprep.subr.bf16.mxu1 %v5724_v53  ;;  %v5270_v53 = vcombine.high %v106_v43, %v110_v47  ;;  %v5277_v12 = vcombine.low %v114_v52, %v118_v54  ;;  %v142_v32 = vld [vmem:[%s8259_s1 + $0x278] sm:$0xff] }
 0x17f   :  { %v290_v57 = vld [vmem:[%s8259_s1 + $0x718] sm:$0xff] }
 0x181   :  { %3574 = vmatpush1.bf16.msra.mxu0 %v5595_v60  ;;  %3615 = vmatpush1.bf16.msra.mxu1 %v5723_v61  ;;  %v5269_v60 = vcombine.low %v106_v43, %v110_v47  ;;  %v5397_v61 = vcombine.low %v234_v48, %v238_v49  ;;  %v278_v43 = vld [vmem:[%s8259_s1 + $0x6b8] sm:$0xff] }
 0x182   :  { %3575 = vmatprep.subr.bf16.mxu0 %v5604_v62  ;;  %3616 = vmatprep.subr.bf16.mxu1 %v5732_v63  ;;  %v5278_v62 = vcombine.high %v114_v52, %v118_v54  ;;  %v122_v63 = vld [vmem:[%s8259_s1 + $0x1d8] sm:$0xff] }
 0x183   :  { %v5286_v19 = vcombine.high %v122_v63, %v126_v2  ;;  %v158_v47 = vld [vmem:[%s8259_s1 + $0x2f8] sm:$0xff] }
 0x184   :  { %v282_v49 = vld [vmem:[%s8259_s1 + $0x6d8] sm:$0xff] }
 0x185   :  { %3576 = vmatpush1.bf16.msra.mxu0 %v5603_v4  ;;  %3617 = vmatpush1.bf16.msra.mxu1 %v5731_v6  ;;  %v250_v6 = vld [vmem:[%s8259_s1 + $0x5d8] sm:$0xff] }
 0x186   :  { %3627 = vmatprep.subr.bf16.mxu0 %v5230_v7  ;;  %3668 = vmatprep.subr.bf16.mxu1 %v5358_v8  ;;  %v254_v7 = vld [vmem:[%s8259_s1 + $0x5f8] sm:$0xff] }
 0x187   :  { %v5413_v29 = vcombine.low %v250_v6, %v254_v7  ;;  %v286_v52 = vld [vmem:[%s8259_s1 + $0x6f8] sm:$0xff] }
 0x188   :  { %3578 = vmatmul.mubr.bf16.vlgmr.msra.gmra.mrb[20].mxu0 %v6542_v36  ;;  %3619 = vmatmul.mubr.bf16.vlgmr.msra.gmra.mrb[20].mxu1 %v6550_v39  ;;  %v166_v54 = vld [vmem:[%s8259_s1 + $0x338] sm:$0xff] }
 0x189   :  { %3628 = vmatpush1.bf16.msra.mxu0 %v5229_v14  ;;  %3669 = vmatpush1.bf16.msra.mxu1 %v5357_v15 }
 0x18a   :  { %3629 = vmatprep.subr.bf16.mxu0 %v5238_v17  ;;  %3670 = vmatprep.subr.bf16.mxu1 %v5366_v21  ;;  %v134_v21 = vld [vmem:[%s8259_s1 + $0x238] sm:$0xff] }
 0x18b   :  { %3659 = vmatprep.mubr.bf16.mxu0 %v6194_v58  ;;  %3700 = vmatprep.mubr.bf16.mxu1 %v6196_v59  ;;  %v102_v58 = vld [vmem:[%s8259_s1 + $0x138] sm:$0xff] }
 0x18c   :  { %v226_v59 = vld [vmem:[%s8259_s1 + $0x518] sm:$0xff]  ;;  %v5262_v45 = vcombine.high %v98_v35, %v102_v58  ;;  %v5261_v51 = vcombine.low %v98_v35, %v102_v58 }
 0x18d   :  { %3630 = vmatpush1.bf16.msra.mxu0 %v5237_v24  ;;  %3671 = vmatpush1.bf16.msra.mxu1 %v5365_v26  ;;  %v5390_v5 = vcombine.high %v226_v59, %v230_v41  ;;  %v5389_v9 = vcombine.low %v226_v59, %v230_v41  ;;  %v5414_v24 = vcombine.high %v250_v6, %v254_v7  ;;  %v270_v35 = vld [vmem:[%s8259_s1 + $0x678] sm:$0xff] }
 0x18e   :  { %3631 = vmatprep.subr.bf16.mxu0 %v5246_v27  ;;  %3672 = vmatprep.subr.bf16.mxu1 %v5374_v30  ;;  %v5285_v26 = vcombine.low %v122_v63, %v126_v2  ;;  %v138_v27 = vld [vmem:[%s8259_s1 + $0x258] sm:$0xff]  ;;  %v5294_v30 = vcombine.high %v130_v13, %v134_v21 }
 0x18f   :  { %v150_v58 = vld [vmem:[%s8259_s1 + $0x2b8] sm:$0xff]  ;;  %v5302_v59 = vcombine.high %v138_v27, %v142_v32 }
 0x190   :  { %v274_v41 = vld [vmem:[%s8259_s1 + $0x698] sm:$0xff] }
 0x191   :  { %3632 = vmatpush1.bf16.msra.mxu0 %v5245_v34  ;;  %3673 = vmatpush1.bf16.msra.mxu1 %v5373_v37  ;;  %v266_v34 = vld [vmem:[%s8259_s1 + $0x658] sm:$0xff]  ;;  %v5293_v37 = vcombine.low %v130_v13, %v134_v21 }
 0x192   :  { %3633 = vmatprep.subr.bf16.mxu0 %v5254_v38  ;;  %3674 = vmatprep.subr.bf16.mxu1 %v5382_v40  ;;  %v146_v38 = vld [vmem:[%s8259_s1 + $0x298] sm:$0xff]  ;;  %v5421_v40 = vcombine.low %v258_v22, %v262_v25 }
 0x193   :  { %v5310_v48 = vcombine.high %v146_v38, %v150_v58  ;;  %v170_v63 = vld [vmem:[%s8259_s1 + $0x358] sm:$0xff] }
 0x194   :  { %v186_v21 = vld [vmem:[%s8259_s1 + $0x3d8] sm:$0xff] }
 0x195   :  { %3634 = vmatpush1.bf16.msra.mxu0 %v5253_v42  ;;  %3675 = vmatpush1.bf16.msra.mxu1 %v5381_v44  ;;  %v5430_v42 = vcombine.high %v266_v34, %v270_v35  ;;  %v5301_v44 = vcombine.low %v138_v27, %v142_v32  ;;  %v190_v22 = vld [vmem:[%s8259_s1 + $0x3f8] sm:$0xff] }
 0x196   :  { %3635 = vmatprep.subr.bf16.mxu0 %v5262_v45  ;;  %3676 = vmatprep.subr.bf16.mxu1 %v5390_v5  ;;  %v154_v45 = vld [vmem:[%s8259_s1 + $0x2d8] sm:$0xff]  ;;  %v5429_v5 = vcombine.low %v266_v34, %v270_v35  ;;  %v5350_v34 = vcombine.high %v186_v21, %v190_v22 }
 0x197   :  { %v5318_v56 = vcombine.high %v154_v45, %v158_v47  ;;  %v314_v25 = vld [vmem:[%s8259_s1 + $0x7d8] sm:$0xff] }
 0x198   :  { %v326_v32 = vld [vmem:[%s8259_s1 + $0x838] sm:$0xff] }
 0x199   :  { %3636 = vmatpush1.bf16.msra.mxu0 %v5261_v51  ;;  %3677 = vmatpush1.bf16.msra.mxu1 %v5389_v9  ;;  %v5438_v51 = vcombine.high %v274_v41, %v278_v43  ;;  %v5309_v9 = vcombine.low %v146_v38, %v150_v58  ;;  %v454_v38 = vld [vmem:[%s8259_s1 + $0xc38] sm:$0xff]  ;;  %v5349_v58 = vcombine.low %v186_v21, %v190_v22 }
 0x19a   :  { %3637 = vmatprep.subr.bf16.mxu0 %v5270_v53  ;;  %3678 = vmatprep.subr.bf16.mxu1 %v5398_v55  ;;  %v162_v53 = vld [vmem:[%s8259_s1 + $0x318] sm:$0xff]  ;;  %v5437_v55 = vcombine.low %v274_v41, %v278_v43 }
 0x19b   :  { %v3333_v0 = vpop.f32.mrb[8].mxu0  ;;  %v3374_v3 = vpop.f32.mrb[8].mxu1  ;;  %v5326_v2 = vcombine.high %v162_v53, %v166_v54  ;;  %v5325_v7 = vcombine.low %v162_v53, %v166_v54  ;;  %v334_v43 = vld [vmem:[%s8259_s1 + $0x878] sm:$0xff] }
 0x19c   :  { %v3335_v4 = vpop.f32.mrb[9].mxu0  ;;  %v7422_v8 = vadd.f32 %v3374_v3, %v3333_v0  ;;  %v3376_v10 = vpop.f32.mrb[9].mxu1  ;;  %v174_v0 = vld [vmem:[%s8259_s1 + $0x378] sm:$0xff] }
 0x19d   :  { %v3337_v11 = vpop.f32.mrb[10].mxu0  ;;  %3638 = vmatpush1.bf16.msra.mxu0 %v5269_v60  ;;  %v7427_v14 = vadd.f32 %v3376_v10, %v3335_v4  ;;  %v3378_v15 = vpop.f32.mrb[10].mxu1  ;;  %3679 = vmatpush1.bf16.msra.mxu1 %v5397_v61  ;;  %v294_v60 = vld [vmem:[%s8259_s1 + $0x738] sm:$0xff]  ;;  %v5446_v61 = vcombine.high %v282_v49, %v286_v52  ;;  %v5334_v13 = vcombine.high %v170_v63, %v174_v0 }
 0x19e   :  { %v3338_v17 = vpop.f32.mrb[11].mxu0  ;;  %3639 = vmatprep.subr.bf16.mxu0 %v5278_v62  ;;  %v3379_v23 = vpop.f32.mrb[11].mxu1  ;;  %3680 = vmatprep.subr.bf16.mxu1 %v5406_v1  ;;  %v5317_v62 = vcombine.low %v154_v45, %v158_v47  ;;  %v5445_v1 = vcombine.low %v282_v49, %v286_v52  ;;  %v298_v3 = vld [vmem:[%s8259_s1 + $0x758] sm:$0xff]  ;;  %v5454_v6 = vcombine.high %v290_v57, %v294_v60 }
 0x19f   :  { %v302_v4 = vld [vmem:[%s8259_s1 + $0x778] sm:$0xff] }
 0x1a0   :  { %v178_v10 = vld [vmem:[%s8259_s1 + $0x398] sm:$0xff]  ;;  %v5461_v23 = vcombine.low %v298_v3, %v302_v4 }
 0x1a1   :  { %3640 = vmatpush1.bf16.msra.mxu0 %v5277_v12  ;;  %3681 = vmatpush1.bf16.msra.mxu1 %v5405_v18  ;;  %v182_v11 = vld [vmem:[%s8259_s1 + $0x3b8] sm:$0xff]  ;;  %v5453_v12 = vcombine.low %v290_v57, %v294_v60  ;;  %v5462_v18 = vcombine.high %v298_v3, %v302_v4 }
 0x1a2   :  { %3641 = vmatprep.subr.bf16.mxu0 %v5286_v19  ;;  %3682 = vmatprep.subr.bf16.mxu1 %v5414_v24  ;;  %v306_v15 = vld [vmem:[%s8259_s1 + $0x798] sm:$0xff]  ;;  %v5333_v19 = vcombine.low %v170_v63, %v174_v0  ;;  %v5342_v24 = vcombine.high %v178_v10, %v182_v11 }
 0x1a3   :  { %v310_v17 = vld [vmem:[%s8259_s1 + $0x7b8] sm:$0xff] }
 0x1a4   :  { %v5470_v27 = vcombine.high %v306_v15, %v310_v17  ;;  %v462_v45 = vld [vmem:[%s8259_s1 + $0xc78] sm:$0xff] }
 0x1a5   :  { %3642 = vmatpush1.bf16.msra.mxu0 %v5285_v26  ;;  %3683 = vmatpush1.bf16.msra.mxu1 %v5413_v29  ;;  %v318_v26 = vld [vmem:[%s8259_s1 + $0x7f8] sm:$0xff]  ;;  %v5341_v29 = vcombine.low %v178_v10, %v182_v11 }
 0x1a6   :  { %3643 = vmatprep.subr.bf16.mxu0 %v5294_v30  ;;  %3684 = vmatprep.subr.bf16.mxu1 %v5422_v33  ;;  %v322_v30 = vld [vmem:[%s8259_s1 + $0x818] sm:$0xff]  ;;  %v5469_v33 = vcombine.low %v306_v15, %v310_v17  ;;  %v5478_v35 = vcombine.high %v314_v25, %v318_v26 }
 0x1a7   :  { %v5485_v47 = vcombine.low %v322_v30, %v326_v32  ;;  %v342_v52 = vld [vmem:[%s8259_s1 + $0x8b8] sm:$0xff] }
 0x1a8   :  { %v470_v53 = vld [vmem:[%s8259_s1 + $0xcb8] sm:$0xff] }
 0x1a9   :  { %3644 = vmatpush1.bf16.msra.mxu0 %v5293_v37  ;;  %3685 = vmatpush1.bf16.msra.mxu1 %v5421_v40  ;;  %v450_v37 = vld [vmem:[%s8259_s1 + $0xc18] sm:$0xff]  ;;  %v5477_v40 = vcombine.low %v314_v25, %v318_v26 }
 0x1aa   :  { %3645 = vmatprep.subr.bf16.mxu0 %v5302_v59  ;;  %3686 = vmatprep.subr.bf16.mxu1 %v5430_v42  ;;  %v5486_v59 = vcombine.high %v322_v30, %v326_v32  ;;  %v5614_v41 = vcombine.high %v450_v37, %v454_v38  ;;  %v330_v42 = vld [vmem:[%s8259_s1 + $0x858] sm:$0xff] }
 0x1ab   :  { %v5493_v54 = vcombine.low %v330_v42, %v334_v43  ;;  %v350_v60 = vld [vmem:[%s8259_s1 + $0x8f8] sm:$0xff] }
 0x1ac   :  { %v486_v3 = vld [vmem:[%s8259_s1 + $0xd38] sm:$0xff] }
 0x1ad   :  { %3646 = vmatpush1.bf16.msra.mxu0 %v5301_v44  ;;  %3687 = vmatpush1.bf16.msra.mxu1 %v5429_v5  ;;  %v458_v44 = vld [vmem:[%s8259_s1 + $0xc58] sm:$0xff]  ;;  %v5613_v5 = vcombine.low %v450_v37, %v454_v38 }
 0x1ae   :  { %3647 = vmatprep.subr.bf16.mxu0 %v5310_v48  ;;  %3688 = vmatprep.subr.bf16.mxu1 %v5438_v51  ;;  %v5494_v48 = vcombine.high %v330_v42, %v334_v43  ;;  %v5622_v49 = vcombine.high %v458_v44, %v462_v45  ;;  %v338_v51 = vld [vmem:[%s8259_s1 + $0x898] sm:$0xff] }
 0x1af   :  { %v362_v11 = vld [vmem:[%s8259_s1 + $0x958] sm:$0xff] }
 0x1b0   :  { %v494_v15 = vld [vmem:[%s8259_s1 + $0xd78] sm:$0xff] }
 0x1b1   :  { %3648 = vmatpush1.bf16.msra.mxu0 %v5309_v9  ;;  %3689 = vmatpush1.bf16.msra.mxu1 %v5437_v55  ;;  %v466_v9 = vld [vmem:[%s8259_s1 + $0xc98] sm:$0xff]  ;;  %v5621_v55 = vcombine.low %v458_v44, %v462_v45 }
 0x1b2   :  { %3649 = vmatprep.subr.bf16.mxu0 %v5318_v56  ;;  %3690 = vmatprep.subr.bf16.mxu1 %v5446_v61  ;;  %v5502_v56 = vcombine.high %v338_v51, %v342_v52  ;;  %v5630_v57 = vcombine.high %v466_v9, %v470_v53  ;;  %v478_v61 = vld [vmem:[%s8259_s1 + $0xcf8] sm:$0xff]  ;;  %v5629_v63 = vcombine.low %v466_v9, %v470_v53 }
 0x1b3   :  { %v370_v22 = vld [vmem:[%s8259_s1 + $0x998] sm:$0xff] }
 0x1b4   :  { %v502_v25 = vld [vmem:[%s8259_s1 + $0xdb8] sm:$0xff] }
 0x1b5   :  { %3650 = vmatpush1.bf16.msra.mxu0 %v5317_v62  ;;  %3691 = vmatpush1.bf16.msra.mxu1 %v5445_v1  ;;  %v5501_v62 = vcombine.low %v338_v51, %v342_v52  ;;  %v390_v52 = vld [vmem:[%s8259_s1 + $0xa38] sm:$0xff] }
 0x1b6   :  { %3651 = vmatprep.subr.bf16.mxu0 %v5326_v2  ;;  %3692 = vmatprep.subr.bf16.mxu1 %v5454_v6  ;;  %v358_v2 = vld [vmem:[%s8259_s1 + $0x938] sm:$0xff] }
 0x1b7   :  { %v514_v9 = vld [vmem:[%s8259_s1 + $0xe18] sm:$0xff] }
 0x1b8   :  { %v518_v53 = vld [vmem:[%s8259_s1 + $0xe38] sm:$0xff] }
 0x1b9   :  { %3652 = vmatpush1.bf16.msra.mxu0 %v5325_v7  ;;  %3693 = vmatpush1.bf16.msra.mxu1 %v5453_v12  ;;  %v366_v12 = vld [vmem:[%s8259_s1 + $0x978] sm:$0xff] }
 0x1ba   :  { %3653 = vmatprep.subr.bf16.mxu0 %v5334_v13  ;;  %3694 = vmatprep.subr.bf16.mxu1 %v5462_v18  ;;  %v490_v13 = vld [vmem:[%s8259_s1 + $0xd58] sm:$0xff]  ;;  %v5525_v26 = vcombine.low %v362_v11, %v366_v12 }
 0x1bb   :  { %v5654_v21 = vcombine.high %v490_v13, %v494_v15 }
 0x1bd   :  { %3654 = vmatpush1.bf16.msra.mxu0 %v5333_v19  ;;  %3695 = vmatpush1.bf16.msra.mxu1 %v5461_v23  ;;  %v5526_v19 = vcombine.high %v362_v11, %v366_v12  ;;  %v374_v23 = vld [vmem:[%s8259_s1 + $0x9b8] sm:$0xff] }
 0x1be   :  { %3655 = vmatprep.subr.bf16.mxu0 %v5342_v24  ;;  %3696 = vmatprep.subr.bf16.mxu1 %v5470_v27  ;;  %v498_v24 = vld [vmem:[%s8259_s1 + $0xd98] sm:$0xff]  ;;  %v5653_v27 = vcombine.low %v490_v13, %v494_v15  ;;  %v5533_v43 = vcombine.low %v370_v22, %v374_v23 }
 0x1bf   :  { %v5662_v32 = vcombine.high %v498_v24, %v502_v25  ;;  %v410_v11 = vld [vmem:[%s8259_s1 + $0xad8] sm:$0xff] }
 0x1c0   :  { %v414_v12 = vld [vmem:[%s8259_s1 + $0xaf8] sm:$0xff] }
 0x1c1   :  { %3656 = vmatpush1.bf16.msra.mxu0 %v5341_v29  ;;  %3697 = vmatpush1.bf16.msra.mxu1 %v5469_v33  ;;  %v5534_v29 = vcombine.high %v370_v22, %v374_v23  ;;  %v378_v33 = vld [vmem:[%s8259_s1 + $0x9d8] sm:$0xff] }
 0x1c2   :  { %3657 = vmatprep.subr.bf16.mxu0 %v5350_v34  ;;  %3698 = vmatprep.subr.bf16.mxu1 %v5478_v35  ;;  %v382_v34 = vld [vmem:[%s8259_s1 + $0x9f8] sm:$0xff] }
 0x1c3   :  { %v538_v13 = vld [vmem:[%s8259_s1 + $0xed8] sm:$0xff] }
 0x1c4   :  { %v542_v15 = vld [vmem:[%s8259_s1 + $0xef8] sm:$0xff] }
 0x1c5   :  { %3658 = vmatpush1.bf16.msra.mxu0 %v5349_v58  ;;  %3699 = vmatpush1.bf16.msra.mxu1 %v5477_v40  ;;  %v506_v58 = vld [vmem:[%s8259_s1 + $0xdd8] sm:$0xff] }
 0x1c6   :  { %3709 = vmatprep.subr.bf16.mxu0 %v5486_v59  ;;  %3750 = vmatprep.subr.bf16.mxu1 %v5614_v41  ;;  %v510_v40 = vld [vmem:[%s8259_s1 + $0xdf8] sm:$0xff] }
 0x1c7   :  { %v5670_v51 = vcombine.high %v506_v58, %v510_v40  ;;  %v418_v22 = vld [vmem:[%s8259_s1 + $0xb18] sm:$0xff] }
 0x1c8   :  { %3660 = vmatmul.mubr.bf16.vlgmr.msra.gmra.mrb[24].mxu0 %v6326_v16  ;;  %3701 = vmatmul.mubr.bf16.vlgmr.msra.gmra.mrb[24].mxu1 %v6337_v20  ;;  %v346_v16 = vld [vmem:[%s8259_s1 + $0x8d8] sm:$0xff] }
 0x1c9   :  { %3710 = vmatpush1.bf16.msra.mxu0 %v5485_v47  ;;  %3751 = vmatpush1.bf16.msra.mxu1 %v5613_v5  ;;  %v474_v20 = vld [vmem:[%s8259_s1 + $0xcd8] sm:$0xff]  ;;  %v5510_v0 = vcombine.high %v346_v16, %v350_v60  ;;  %v5509_v4 = vcombine.low %v346_v16, %v350_v60  ;;  %v5661_v47 = vcombine.low %v498_v24, %v502_v25  ;;  %v3820_v24 = vlaneseq }
 0x1ca   :  { %3711 = vmatprep.subr.bf16.mxu0 %v5494_v48  ;;  %3752 = vmatprep.subr.bf16.mxu1 %v5622_v49  ;;  %v5638_v1 = vcombine.high %v474_v20, %v478_v61  ;;  %v5637_v6 = vcombine.low %v474_v20, %v478_v61  ;;  %v5542_v5 = vcombine.high %v378_v33, %v382_v34  ;;  %v394_v16 = vld [vmem:[%s8259_s1 + $0xa58] sm:$0xff] }
 0x1cb   :  { %3741 = vmatprep.mubr.bf16.mxu0 %v6348_v28  ;;  %3782 = vmatprep.mubr.bf16.mxu1 %v6357_v31  ;;  %v354_v28 = vld [vmem:[%s8259_s1 + $0x918] sm:$0xff] }
 0x1cc   :  { %v482_v31 = vld [vmem:[%s8259_s1 + $0xd18] sm:$0xff]  ;;  %v5518_v7 = vcombine.high %v354_v28, %v358_v2  ;;  %v5517_v17 = vcombine.low %v354_v28, %v358_v2 }
 0x1cd   :  { %3712 = vmatpush1.bf16.msra.mxu0 %v5493_v54  ;;  %3753 = vmatpush1.bf16.msra.mxu1 %v5621_v55  ;;  %v5646_v10 = vcombine.high %v482_v31, %v486_v3  ;;  %v5645_v18 = vcombine.low %v482_v31, %v486_v3  ;;  %v5541_v54 = vcombine.low %v378_v33, %v382_v34  ;;  %v398_v60 = vld [vmem:[%s8259_s1 + $0xa78] sm:$0xff] }
 0x1ce   :  { %3713 = vmatprep.subr.bf16.mxu0 %v5502_v56  ;;  %3754 = vmatprep.subr.bf16.mxu1 %v5630_v57  ;;  %v5669_v55 = vcombine.low %v506_v58, %v510_v40  ;;  %v5678_v57 = vcombine.high %v514_v9, %v518_v53  ;;  %v522_v20 = vld [vmem:[%s8259_s1 + $0xe58] sm:$0xff] }
 0x1cf   :  { %v526_v61 = vld [vmem:[%s8259_s1 + $0xe78] sm:$0xff] }
 0x1d0   :  { %v402_v28 = vld [vmem:[%s8259_s1 + $0xa98] sm:$0xff] }
 0x1d1   :  { %3714 = vmatpush1.bf16.msra.mxu0 %v5501_v62  ;;  %3755 = vmatpush1.bf16.msra.mxu1 %v5629_v63  ;;  %v5677_v63 = vcombine.low %v514_v9, %v518_v53  ;;  %v406_v2 = vld [vmem:[%s8259_s1 + $0xab8] sm:$0xff] }
 0x1d2   :  { %3715 = vmatprep.subr.bf16.mxu0 %v5510_v0  ;;  %3756 = vmatprep.subr.bf16.mxu1 %v5638_v1  ;;  %v5558_v0 = vcombine.high %v394_v16, %v398_v60  ;;  %v5686_v1 = vcombine.high %v522_v20, %v526_v61  ;;  %v530_v31 = vld [vmem:[%s8259_s1 + $0xe98] sm:$0xff] }
 0x1d3   :  { %v534_v3 = vld [vmem:[%s8259_s1 + $0xeb8] sm:$0xff] }
 0x1d4   :  { %v422_v23 = vld [vmem:[%s8259_s1 + $0xb38] sm:$0xff] }
 0x1d5   :  { %3716 = vmatpush1.bf16.msra.mxu0 %v5509_v4  ;;  %3757 = vmatpush1.bf16.msra.mxu1 %v5637_v6  ;;  %v5557_v4 = vcombine.low %v394_v16, %v398_v60  ;;  %v5685_v6 = vcombine.low %v522_v20, %v526_v61  ;;  %v546_v25 = vld [vmem:[%s8259_s1 + $0xf18] sm:$0xff]  ;;  %v5581_v58 = vcombine.low %v418_v22, %v422_v23 }
 0x1d6   :  { %3717 = vmatprep.subr.bf16.mxu0 %v5518_v7  ;;  %3758 = vmatprep.subr.bf16.mxu1 %v5646_v10  ;;  %v5566_v7 = vcombine.high %v402_v28, %v406_v2  ;;  %v5694_v10 = vcombine.high %v530_v31, %v534_v3  ;;  %v426_v33 = vld [vmem:[%s8259_s1 + $0xb58] sm:$0xff] }
 0x1d7   :  { %v430_v34 = vld [vmem:[%s8259_s1 + $0xb78] sm:$0xff] }
 0x1d8   :  { %v442_v53 = vld [vmem:[%s8259_s1 + $0xbd8] sm:$0xff] }
 0x1d9   :  { %3718 = vmatpush1.bf16.msra.mxu0 %v5517_v17  ;;  %3759 = vmatpush1.bf16.msra.mxu1 %v5645_v18  ;;  %v5565_v17 = vcombine.low %v402_v28, %v406_v2  ;;  %v5693_v18 = vcombine.low %v530_v31, %v534_v3  ;;  %v5961_v2 = vld [vmem:[%s8261_s3 + $0x40] sm:$0xff]  }
 0x1da   :  { %3719 = vmatprep.subr.bf16.mxu0 %v5526_v19  ;;  %3760 = vmatprep.subr.bf16.mxu1 %v5654_v21  ;;  %v5574_v19 = vcombine.high %v410_v11, %v414_v12  ;;  %v5702_v21 = vcombine.high %v538_v13, %v542_v15  ;;  %v5962_v31 = vld [vmem:[%s8261_s3 + $0xc0] sm:$0xff]  }
 0x1db   :  { %v3415_v30 = vpop.f32.mrb[12].mxu0  ;;  %v3456_v37 = vpop.f32.mrb[12].mxu1 }
 0x1dc   :  { %v3416_v35 = vadd.f32 %v3415_v30, %v7422_v8  ;;  %v3417_v38 = vpop.f32.mrb[13].mxu0  ;;  %v3458_v41 = vpop.f32.mrb[13].mxu1  ;;  %v5582_v30 = vcombine.high %v418_v22, %v422_v23  ;;  %v5976_v22 = vld [vmem:[%s8261_s3 + $0x98] sm:$0xff]   ;;  %v5977_v23 = vld [vmem:[%s8261_s3 + $0x60] sm:$0xff]  }
 0x1dd   :  { %v3418_v59 = vadd.f32 %v3417_v38, %v7427_v14  ;;  %v3419_v42 = vpop.f32.mrb[14].mxu0  ;;  %3720 = vmatpush1.bf16.msra.mxu0 %v5525_v26  ;;  %v3460_v45 = vpop.f32.mrb[14].mxu1  ;;  %3761 = vmatpush1.bf16.msra.mxu1 %v5653_v27  ;;  %v386_v14 = vld [vmem:[%s8259_s1 + $0xa18] sm:$0xff]  ;;  %v5573_v27 = vcombine.low %v410_v11, %v414_v12  ;;  %v5967_v12 = vld [vmem:[%s8261_s3 + $0x8] sm:$0xff]  }
 0x1de   :  { %v7624_v44 = vadd.f32 %v3456_v37, %v3416_v35  ;;  %v3420_v8 = vpop.f32.mrb[15].mxu0  ;;  %3721 = vmatprep.subr.bf16.mxu0 %v5534_v29  ;;  %v3461_v49 = vpop.f32.mrb[15].mxu1  ;;  %3762 = vmatprep.subr.bf16.mxu1 %v5662_v32  ;;  %v5550_v56 = vcombine.high %v386_v14, %v390_v52  ;;  %v5549_v62 = vcombine.low %v386_v14, %v390_v52  ;;  %v550_v26 = vld [vmem:[%s8259_s1 + $0xf38] sm:$0xff]  ;;  %v7694_v35 = vshrl.u32 %v3820_v24, 7  ;;  %v5978_v24 = vld [vmem:[%s8261_s3 + $0xe0] sm:$0xff]  }
 0x1df   :  { %v7626_v48 = vadd.f32 %v3458_v41, %v3418_v59  ;;  %v5701_v29 = vcombine.low %v538_v13, %v542_v15  ;;  %v5710_v32 = vcombine.high %v546_v25, %v550_v26  ;;  %v554_v37 = vld [vmem:[%s8259_s1 + $0xf58] sm:$0xff]  ;;  %v5709_v40 = vcombine.low %v546_v25, %v550_v26  ;;  %v5969_v13 = vld [vmem:[%s8261_s3 + $0x50] sm:$0xff]   ;;  %v5979_v25 = vld [vmem:[%s8261_s3 + $0x20] sm:$0xff]  }
 0x1e0   :  { %v558_v38 = vld [vmem:[%s8259_s1 + $0xf78] sm:$0xff]  ;;  %v5590_v59 = vcombine.high %v426_v33, %v430_v34  ;;  %v3826_v45 = vsub.s32 1, %v7694_v35  ;;  %v3834_v49 = vsub.s32 3, %v7694_v35  ;;  %v5971_v15 = vld [vmem:[%s8261_s3 + $0x10] sm:$0xff]   ;;  %v3822_v26 = vsub.s32 0, %v7694_v35 }
 0x1e1   :  { %3722 = vmatpush1.bf16.msra.mxu0 %v5533_v43  ;;  %3763 = vmatpush1.bf16.msra.mxu1 %v5661_v47  ;;  %v5718_v41 = vcombine.high %v554_v37, %v558_v38  ;;  %v434_v42 = vld [vmem:[%s8259_s1 + $0xb98] sm:$0xff]  ;;  %v5717_v14 = vcombine.low %v554_v37, %v558_v38  ;;  %v5984_v37 = vld [vmem:[%s8261_s3 + $0xa8] sm:$0xff]   ;;  %v5985_v38 = vld [vmem:[%s8261_s3 + $0x70] sm:$0xff]  }
 0x1e2   :  { %3723 = vmatprep.subr.bf16.mxu0 %v5542_v5  ;;  %3764 = vmatprep.subr.bf16.mxu1 %v5670_v51  ;;  %v438_v43 = vld [vmem:[%s8259_s1 + $0xbb8] sm:$0xff]  ;;  %v7718_v5 = vld [vmem:[%s8262_s2] sm:$0xff]  ;;  %v5589_v51 = vcombine.low %v426_v33, %v430_v34  ;;  %v5983_v33 = vld [vmem:[%s8261_s3 + $0x28] sm:$0xff]  }
 0x1e3   :  { %v562_v8 = vld [vmem:[%s8259_s1 + $0xf98] sm:$0xff]  ;;  %v5598_v52 = vcombine.high %v434_v42, %v438_v43  ;;  %v3835_v16 = vrot.slane %v7718_v5, %v3834_v49  ;;  %v5597_v60 = vcombine.low %v434_v42, %v438_v43  ;;  %v3823_v34 = vrot.slane %v7718_v5, %v3822_v26 }
 0x1e4   :  { %v566_v47 = vld [vmem:[%s8259_s1 + $0xfb8] sm:$0xff] }
 0x1e5   :  { %3724 = vmatpush1.bf16.msra.mxu0 %v5541_v54  ;;  %3765 = vmatpush1.bf16.msra.mxu1 %v5669_v55  ;;  %v5726_v9 = vcombine.high %v562_v8, %v566_v47  ;;  %v446_v54 = vld [vmem:[%s8259_s1 + $0xbf8] sm:$0xff]  ;;  %v3827_v55 = vrot.slane %v7718_v5, %v3826_v45  ;;  %v5725_v20 = vcombine.low %v562_v8, %v566_v47 }
 0x1e6   :  { %3725 = vmatprep.subr.bf16.mxu0 %v5550_v56  ;;  %3766 = vmatprep.subr.bf16.mxu1 %v5678_v57  ;;  %v570_v56 = vld [vmem:[%s8259_s1 + $0xfd8] sm:$0xff]  ;;  %v5606_v61 = vcombine.high %v442_v53, %v446_v54 }
 0x1e7   :  { %v574_v57 = vld [vmem:[%s8259_s1 + $0xff8] sm:$0xff] }
 0x1e8   :  { %v5733_v28 = vcombine.low %v570_v56, %v574_v57 }
 0x1e9   :  { %3726 = vmatpush1.bf16.msra.mxu0 %v5549_v62  ;;  %3767 = vmatpush1.bf16.msra.mxu1 %v5677_v63  ;;  %v5734_v62 = vcombine.high %v570_v56, %v574_v57  ;;  %v3861_v63 = vadd.f32 %v3827_v55, %v7224_v50  ;;  %v5963_v50 = vld [vmem:[%s8261_s3] sm:$0xff]   ;;  %v5989_v55 = vld [vmem:[%s8261_s3 + $0x78] sm:$0xff]  }
 0x1ea   :  { %3727 = vmatprep.subr.bf16.mxu0 %v5558_v0  ;;  %3768 = vmatprep.subr.bf16.mxu1 %v5686_v1  ;;  %v3863_v0 = vadd.f32 %v3835_v16, %v7626_v48  ;;  %v5605_v1 = vcombine.low %v442_v53, %v446_v54  ;;  %v5964_v48 = vld [vmem:[%s8261_s3 + $0x80] sm:$0xff]   ;;  %v5988_v54 = vld [vmem:[%s8261_s3 + $0xb0] sm:$0xff]   ;;  %v5991_v16 = vld [vmem:[%s8261_s3 + $0x38] sm:$0xff]  }
 0x1eb   :  { %v7747_v3 = vmax.f32 %v3861_v63, 0.0  ;;  %v5994_v63 = vld [vmem:[%s8261_s3 + $0x100] sm:$0xff]  }
 0x1ed   :  { %3728 = vmatpush1.bf16.msra.mxu0 %v5557_v4  ;;  %3769 = vmatpush1.bf16.msra.mxu1 %v5685_v6  ;;  %v7749_v4 = vmax.f32 %v3863_v0, 0.0  ;;  %v5965_v6 = vld [vmem:[%s8261_s3 + $0x48] sm:$0xff]  }
 0x1ee   :  { %3729 = vmatprep.subr.bf16.mxu0 %v5566_v7  ;;  %3770 = vmatprep.subr.bf16.mxu1 %v5694_v10  ;;  %v3877_v7 = vpack.c.bf16 %v7747_v3, %v7747_v3  ;;  %v5966_v10 = vld [vmem:[%s8261_s3 + $0xc8] sm:$0xff]  }
 0x1ef   :  { %v3879_v11 = vpack.c.bf16 %v7749_v4, %v7749_v4 }
 0x1f1   :  { %3730 = vmatpush1.bf16.msra.mxu0 %v5565_v17  ;;  %3771 = vmatpush1.bf16.msra.mxu1 %v5693_v18  ;;  %v5972_v17 = vld [vmem:[%s8261_s3 + $0x90] sm:$0xff]   ;;  %v5973_v18 = vld [vmem:[%s8261_s3 + $0x58] sm:$0xff]  }
 0x1f2   :  { %3731 = vmatprep.subr.bf16.mxu0 %v5574_v19  ;;  %3772 = vmatprep.subr.bf16.mxu1 %v5702_v21  ;;  %v5974_v19 = vld [vmem:[%s8261_s3 + $0xd8] sm:$0xff]  }
 0x1f3   :  { %v5975_v21 = vld [vmem:[%s8261_s3 + $0x18] sm:$0xff]  }
 0x1f5   :  { %3732 = vmatpush1.bf16.msra.mxu0 %v5573_v27  ;;  %3773 = vmatpush1.bf16.msra.mxu1 %v5701_v29  ;;  %v5980_v27 = vld [vmem:[%s8261_s3 + $0xa0] sm:$0xff]   ;;  %v5981_v29 = vld [vmem:[%s8261_s3 + $0x68] sm:$0xff]  }
 0x1f6   :  { %3733 = vmatprep.subr.bf16.mxu0 %v5582_v30  ;;  %3774 = vmatprep.subr.bf16.mxu1 %v5710_v32  ;;  %v3830_v30 = vsub.s32 2, %v7694_v35  ;;  %v5982_v32 = vld [vmem:[%s8261_s3 + $0xe8] sm:$0xff]  }
 0x1f9   :  { %3734 = vmatpush1.bf16.msra.mxu0 %v5581_v58  ;;  %3775 = vmatpush1.bf16.msra.mxu1 %v5709_v40  ;;  %v3831_v58 = vrot.slane %v7718_v5, %v3830_v30 }
 0x1fa   :  { %3735 = vmatprep.subr.bf16.mxu0 %v5590_v59  ;;  %3776 = vmatprep.subr.bf16.mxu1 %v5718_v41  ;;  %v5986_v59 = vld [vmem:[%s8261_s3 + $0xf0] sm:$0xff]  }
 0x1fb   :  { %v3862_v56 = vadd.f32 %v3831_v58, %v7624_v44  ;;  %v5993_v44 = vld [vmem:[%s8261_s3 + $0x140] sm:$0xff]  }
 0x1fd   :  { %3736 = vmatpush1.bf16.msra.mxu0 %v5589_v51  ;;  %3777 = vmatpush1.bf16.msra.mxu1 %v5717_v14  ;;  %v5987_v51 = vld [vmem:[%s8261_s3 + $0x30] sm:$0xff]   ;;  %v3860_v14 = vadd.f32 %v3823_v34, %v7222_v46  ;;  %v5990_v46 = vld [vmem:[%s8261_s3 + $0xf8] sm:$0xff]  }
 0x1fe   :  { %3737 = vmatprep.subr.bf16.mxu0 %v5598_v52  ;;  %3778 = vmatprep.subr.bf16.mxu1 %v5726_v9 }
 0x201   :  { %3738 = vmatpush1.bf16.msra.mxu0 %v5597_v60  ;;  %3779 = vmatpush1.bf16.msra.mxu1 %v5725_v20  ;;  %v7858_v60 = vmax.f32 %v3860_v14, 0.0  ;;  %v5992_v20 = vld [vmem:[%s8261_s3 + $0xb8] sm:$0xff]  }
 0x202   :  { %3739 = vmatprep.subr.bf16.mxu0 %v5606_v61  ;;  %3780 = vmatprep.subr.bf16.mxu1 %v5734_v62  ;;  %v7866_v61 = vmax.f32 %v3862_v56, 0.0  ;;  %v6009_v62 = vld [vmem:[%s8261_s3 + $0x1c0] sm:$0xff]   ;;  %v6022_v56 = vld [vmem:[%s8261_s3 + $0x1b0] sm:$0xff]  }
 0x203   :  { %v3876_v0 = vpack.c.bf16 %v7858_v60, %v7858_v60 }
 0x205   :  { %3740 = vmatpush1.bf16.msra.mxu0 %v5605_v1  ;;  %3781 = vmatpush1.bf16.msra.mxu1 %v5733_v28  ;;  %v5995_v1 = vld [vmem:[%s8261_s3 + $0x148] sm:$0xff]   ;;  %v6010_v28 = vld [vmem:[%s8261_s3 + $0x180] sm:$0xff]  }
 0x206   :  { %5872 = vmatprep.subr.bf16.mxu0 %v5961_v2  ;;  %5894 = vmatprep.subr.bf16.mxu1 %v5962_v31  ;;  %v3878_v2 = vpack.c.bf16 %v7866_v61, %v7866_v61  ;;  %v6011_v31 = vld [vmem:[%s8261_s3 + $0x1c8] sm:$0xff]  }
 0x208   :  { %3742 = vmatmul.mubr.bf16.vlgmr.msra.gmra.mrb[28].mxu0 %v6542_v36  ;;  %3783 = vmatmul.mubr.bf16.vlgmr.msra.gmra.mrb[28].mxu1 %v6550_v39  ;;  %v5968_v36 = vld [vmem:[%s8261_s3 + $0x88] sm:$0xff]   ;;  %v5970_v39 = vld [vmem:[%s8261_s3 + $0xd0] sm:$0xff]  }
 0x209   :  { %5873 = vmatpush3.bf16.msra.mxu0 %v5963_v50  ;;  %4435 = vmatprep.mubr.bf16.mxu0 %v3877_v7  ;;  %v5996_v50 = vld [vmem:[%s8261_s3 + $0x108] sm:$0xff]   ;;  %v6013_v7 = vld [vmem:[%s8261_s3 + $0x1d0] sm:$0xff]  }
 0x20a   :  { %5895 = vmatpush3.bf16.msra.mxu1 %v5964_v48  ;;  %4475 = vmatprep.mubr.bf16.mxu1 %v3879_v11  ;;  %v5997_v48 = vld [vmem:[%s8261_s3 + $0x150] sm:$0xff]   ;;  %v5999_v11 = vld [vmem:[%s8261_s3 + $0x158] sm:$0xff]  }
 0x20b   :  { %5874 = vmatprep.subr.bf16.mxu0 %v5965_v6  ;;  %5896 = vmatprep.subr.bf16.mxu1 %v5966_v10  ;;  %v6012_v6 = vld [vmem:[%s8261_s3 + $0x188] sm:$0xff]   ;;  %v5998_v10 = vld [vmem:[%s8261_s3 + $0x110] sm:$0xff]  }
 0x20d   :  { %5875 = vmatpush3.bf16.msra.mxu0 %v5967_v12  ;;  %v6014_v12 = vld [vmem:[%s8261_s3 + $0x190] sm:$0xff]  }
 0x20e   :  { %5897 = vmatpush3.bf16.msra.mxu1 %v5968_v36  ;;  %5876 = vmatprep.subr.bf16.mxu0 %v5969_v13  ;;  %v6015_v36 = vld [vmem:[%s8261_s3 + $0x1d8] sm:$0xff]  }
 0x20f   :  { %5898 = vmatprep.subr.bf16.mxu1 %v5970_v39  ;;  %v6000_v13 = vld [vmem:[%s8261_s3 + $0x118] sm:$0xff]   ;;  %v6001_v39 = vld [vmem:[%s8261_s3 + $0x160] sm:$0xff]  }
 0x211   :  { %5877 = vmatpush3.bf16.msra.mxu0 %v5971_v15  ;;  %v6016_v15 = vld [vmem:[%s8261_s3 + $0x198] sm:$0xff]  }
 0x212   :  { %5899 = vmatpush3.bf16.msra.mxu1 %v5972_v17  ;;  %5878 = vmatprep.subr.bf16.mxu0 %v5973_v18  ;;  %v6017_v17 = vld [vmem:[%s8261_s3 + $0x1e0] sm:$0xff]  }
 0x213   :  { %5900 = vmatprep.subr.bf16.mxu1 %v5974_v19  ;;  %v6002_v18 = vld [vmem:[%s8261_s3 + $0x120] sm:$0xff]   ;;  %v6003_v19 = vld [vmem:[%s8261_s3 + $0x168] sm:$0xff]  }
 0x215   :  { %5879 = vmatpush3.bf16.msra.mxu0 %v5975_v21  ;;  %v6018_v21 = vld [vmem:[%s8261_s3 + $0x1a0] sm:$0xff]  }
 0x216   :  { %5901 = vmatpush3.bf16.msra.mxu1 %v5976_v22  ;;  %5880 = vmatprep.subr.bf16.mxu0 %v5977_v23  ;;  %v6004_v22 = vld [vmem:[%s8261_s3 + $0x128] sm:$0xff]   ;;  %v6005_v23 = vld [vmem:[%s8261_s3 + $0x170] sm:$0xff]  }
 0x217   :  { %5902 = vmatprep.subr.bf16.mxu1 %v5978_v24  ;;  %v6006_v24 = vld [vmem:[%s8261_s3 + $0x130] sm:$0xff]  }
 0x219   :  { %5881 = vmatpush3.bf16.msra.mxu0 %v5979_v25  ;;  %v6007_v25 = vld [vmem:[%s8261_s3 + $0x178] sm:$0xff]  }
 0x21a   :  { %5903 = vmatpush3.bf16.msra.mxu1 %v5980_v27  ;;  %5882 = vmatprep.subr.bf16.mxu0 %v5981_v29  ;;  %v6008_v27 = vld [vmem:[%s8261_s3 + $0x138] sm:$0xff]   ;;  %v3838_v29 = vsub.s32 4, %v7694_v35 }
 0x21b   :  { %v3497_v40 = vpop.f32.mrb[16].mxu0  ;;  %5904 = vmatprep.subr.bf16.mxu1 %v5982_v32  ;;  %v3538_v41 = vpop.f32.mrb[16].mxu1  ;;  %v3842_v32 = vsub.s32 5, %v7694_v35 }
 0x21c   :  { %v3499_v42 = vpop.f32.mrb[17].mxu0  ;;  %v7837_v43 = vadd.f32 %v3538_v41, %v3497_v40  ;;  %v3540_v8 = vpop.f32.mrb[17].mxu1  ;;  %v6019_v40 = vld [vmem:[%s8261_s3 + $0x1e8] sm:$0xff]  }
 0x21d   :  { %v3501_v47 = vpop.f32.mrb[18].mxu0  ;;  %5883 = vmatpush3.bf16.msra.mxu0 %v5983_v33  ;;  %v7843_v52 = vadd.f32 %v3540_v8, %v3499_v42  ;;  %v3542_v9 = vpop.f32.mrb[18].mxu1  ;;  %v3843_v42 = vrot.slane %v7718_v5, %v3842_v32 }
 0x21e   :  { %5905 = vmatpush3.bf16.msra.mxu1 %v5984_v37  ;;  %v3502_v53 = vpop.f32.mrb[19].mxu0  ;;  %5884 = vmatprep.subr.bf16.mxu0 %v5985_v38  ;;  %v3543_v57 = vpop.f32.mrb[19].mxu1  ;;  %v3839_v38 = vrot.slane %v7718_v5, %v3838_v29 }
 0x21f   :  { %5906 = vmatprep.subr.bf16.mxu1 %v5986_v59 }
 0x221   :  { %5885 = vmatpush3.bf16.msra.mxu0 %v5987_v51 }
 0x222   :  { %5907 = vmatpush3.bf16.msra.mxu1 %v5988_v54  ;;  %5886 = vmatprep.subr.bf16.mxu0 %v5989_v55 }
 0x223   :  { %5908 = vmatprep.subr.bf16.mxu1 %v5990_v46 }
 0x225   :  { %5887 = vmatpush3.bf16.msra.mxu0 %v5991_v16  ;;  %v6023_v16 = vld [vmem:[%s8261_s3 + $0x1f8] sm:$0xff]  }
 0x226   :  { %5909 = vmatpush3.bf16.msra.mxu1 %v5992_v20  ;;  %5916 = vmatprep.subr.bf16.mxu0 %v5993_v44  ;;  %v6024_v20 = vld [vmem:[%s8261_s3 + $0x1b8] sm:$0xff]  }
 0x227   :  { %5938 = vmatprep.subr.bf16.mxu1 %v6009_v62 }
 0x228   :  { %4436 = vmatmul.mubr.bf16.vlgmr.msra.gmra.mrb[32].mxu0 %v3876_v0 }
 0x229   :  { %4476 = vmatmul.mubr.bf16.vlgmr.msra.gmra.mrb[32].mxu1 %v3878_v2  ;;  %5917 = vmatpush3.bf16.msra.mxu0 %v5994_v63 }
 0x22a   :  { %5918 = vmatprep.subr.bf16.mxu0 %v5995_v1  ;;  %5939 = vmatpush3.bf16.msra.mxu1 %v6010_v28 }
 0x22b   :  { %5940 = vmatprep.subr.bf16.mxu1 %v6011_v31 }
 0x22d   :  { %5919 = vmatpush3.bf16.msra.mxu0 %v5996_v50 }
 0x22e   :  { %5920 = vmatprep.subr.bf16.mxu0 %v5997_v48  ;;  %5941 = vmatpush3.bf16.msra.mxu1 %v6012_v6 }
 0x22f   :  { %5942 = vmatprep.subr.bf16.mxu1 %v6013_v7 }
 0x231   :  { %5921 = vmatpush3.bf16.msra.mxu0 %v5998_v10  ;;  %v4565_v10 = vld [vmem:[%s8263_s5] sm:$0xff] }
 0x232   :  { %5922 = vmatprep.subr.bf16.mxu0 %v5999_v11  ;;  %5943 = vmatpush3.bf16.msra.mxu1 %v6014_v12  ;;  %v4569_v11 = vld [vmem:[%s8263_s5 + $0x20] sm:$0xff]  ;;  %v7992_v12 = vld [vmem:[%s8263_s5 + $0x8] sm:$0xff] }
 0x233   :  { %5944 = vmatprep.subr.bf16.mxu1 %v6015_v36  ;;  %v5800_v36 = vcombine.low %v4565_v10, %v4569_v11 }
 0x235   :  { %5923 = vmatpush3.bf16.msra.mxu0 %v6000_v13  ;;  %v5801_v13 = vcombine.high %v4565_v10, %v4569_v11 }
 0x236   :  { %5924 = vmatprep.subr.bf16.mxu0 %v6001_v39  ;;  %5945 = vmatpush3.bf16.msra.mxu1 %v6016_v15  ;;  %v7997_v39 = vld [vmem:[%s8263_s5 + $0x28] sm:$0xff]  ;;  %v4573_v15 = vld [vmem:[%s8263_s5 + $0x40] sm:$0xff] }
 0x237   :  { %5946 = vmatprep.subr.bf16.mxu1 %v6017_v17  ;;  %v4577_v17 = vld [vmem:[%s8263_s5 + $0x60] sm:$0xff] }
 0x239   :  { %5925 = vmatpush3.bf16.msra.mxu0 %v6002_v18  ;;  %v5803_v18 = vcombine.high %v7992_v12, %v7997_v39 }
 0x23a   :  { %5926 = vmatprep.subr.bf16.mxu0 %v6003_v19  ;;  %5947 = vmatpush3.bf16.msra.mxu1 %v6018_v21  ;;  %v5809_v19 = vcombine.high %v4573_v15, %v4577_v17  ;;  %v4581_v21 = vld [vmem:[%s8263_s5 + $0x80] sm:$0xff] }
 0x23b   :  { %5948 = vmatprep.subr.bf16.mxu1 %v6019_v40 }
 0x23d   :  { %5927 = vmatpush3.bf16.msra.mxu0 %v6004_v22  ;;  %v4585_v22 = vld [vmem:[%s8263_s5 + $0xa0] sm:$0xff] }
 0x23e   :  { %5928 = vmatprep.subr.bf16.mxu0 %v6005_v23  ;;  %v5808_v23 = vcombine.low %v4573_v15, %v4577_v17 }
 0x241   :  { %5929 = vmatpush3.bf16.msra.mxu0 %v6006_v24  ;;  %v5817_v24 = vcombine.high %v4581_v21, %v4585_v22 }
 0x242   :  { %5930 = vmatprep.subr.bf16.mxu0 %v6007_v25  ;;  %v4589_v25 = vld [vmem:[%s8263_s5 + $0xc0] sm:$0xff] }
 0x245   :  { %5931 = vmatpush3.bf16.msra.mxu0 %v6008_v27  ;;  %v4593_v27 = vld [vmem:[%s8263_s5 + $0xe0] sm:$0xff] }
 0x246   :  { %4991 = vmatprep.subr.bf16.mxu0 %v5801_v13  ;;  %v4586_v13 = vld [vmem:[%s8263_s5 + $0xa8] sm:$0xff] }
 0x25b   :  { %v3579_v33 = vpop.f32.mrb[20].mxu0  ;;  %v3620_v37 = vpop.f32.mrb[20].mxu1 }
 0x25c   :  { %v3580_v34 = vadd.f32 %v3579_v33, %v7837_v43  ;;  %v3581_v58 = vpop.f32.mrb[21].mxu0  ;;  %v3622_v41 = vpop.f32.mrb[21].mxu1  ;;  %v6020_v43 = vld [vmem:[%s8261_s3 + $0x1a8] sm:$0xff]   ;;  %v5816_v33 = vcombine.low %v4581_v21, %v4585_v22 }
 0x25d   :  { %v3582_v59 = vadd.f32 %v3581_v58, %v7843_v52  ;;  %v3583_v8 = vpop.f32.mrb[22].mxu0  ;;  %v3624_v51 = vpop.f32.mrb[22].mxu1  ;;  %5949 = vmatpush3.bf16.msra.mxu1 %v6020_v43  ;;  %v6021_v52 = vld [vmem:[%s8261_s3 + $0x1f0] sm:$0xff]   ;;  %v5824_v58 = vcombine.low %v4589_v25, %v4593_v27  ;;  %v4598_v21 = vld [vmem:[%s8263_s5 + $0x108] sm:$0xff] }
 0x25e   :  { %v3621_v47 = vadd.f32 %v3620_v37, %v3580_v34  ;;  %v3584_v14 = vpop.f32.mrb[23].mxu0  ;;  %v3625_v53 = vpop.f32.mrb[23].mxu1  ;;  %5950 = vmatprep.subr.bf16.mxu1 %v6021_v52  ;;  %v5825_v34 = vcombine.high %v4589_v25, %v4593_v27  ;;  %v4597_v37 = vld [vmem:[%s8263_s5 + $0x100] sm:$0xff]  ;;  %v3850_v51 = vsub.s32 7, %v7694_v35  ;;  %v4602_v22 = vld [vmem:[%s8263_s5 + $0x128] sm:$0xff] }
 0x25f   :  { %v3623_v9 = vadd.f32 %v3622_v41, %v3582_v59  ;;  %v4605_v59 = vld [vmem:[%s8263_s5 + $0x140] sm:$0xff]  ;;  %v4606_v25 = vld [vmem:[%s8263_s5 + $0x148] sm:$0xff] }
 0x260   :  { %v3864_v54 = vadd.f32 %v3839_v38, %v3621_v47  ;;  %v4601_v38 = vld [vmem:[%s8263_s5 + $0x120] sm:$0xff]  ;;  %v3846_v47 = vsub.s32 6, %v7694_v35  ;;  %v4610_v27 = vld [vmem:[%s8263_s5 + $0x168] sm:$0xff] }
 0x261   :  { %v3865_v55 = vadd.f32 %v3843_v42, %v3623_v9  ;;  %5951 = vmatpush3.bf16.msra.mxu1 %v6022_v56  ;;  %v5833_v40 = vcombine.high %v4597_v37, %v4601_v38  ;;  %v4609_v41 = vld [vmem:[%s8263_s5 + $0x160] sm:$0xff]  ;;  %v5832_v42 = vcombine.low %v4597_v37, %v4601_v38  ;;  %v5842_v37 = vcombine.low %v4606_v25, %v4610_v27 }
 0x262   :  { %v7969_v57 = vmax.f32 %v3864_v54, 0.0  ;;  %5952 = vmatprep.subr.bf16.mxu1 %v6023_v16  ;;  %v5841_v8 = vcombine.high %v4605_v59, %v4609_v41  ;;  %v5840_v43 = vcombine.low %v4605_v59, %v4609_v41  ;;  %v3847_v54 = vrot.slane %v7718_v5, %v3846_v47 }
 0x263   :  { %v7971_v46 = vmax.f32 %v3865_v55, 0.0  ;;  %v3851_v16 = vrot.slane %v7718_v5, %v3850_v51  ;;  %v4578_v5 = vld [vmem:[%s8263_s5 + $0x68] sm:$0xff] }
 0x264   :  { %v3880_v62 = vpack.c.bf16 %v7969_v57, %v7969_v57 }
 0x265   :  { %v3881_v44 = vpack.c.bf16 %v7971_v46, %v7971_v46  ;;  %5953 = vmatpush3.bf16.msra.mxu1 %v6024_v20 }
 0x266   :  { %5032 = vmatprep.subr.bf16.mxu1 %v5803_v18 }
 0x267   :  { %4515 = vmatprep.mubr.bf16.mxu0 %v3881_v44 }
 0x268   :  { %4516 = vmatmul.mubr.bf16.vlgmr.msra.gmra.mrb[36].mxu0 %v3880_v62 }
 0x269   :  { %4992 = vmatpush1.bf16.msra.mxu0 %v5800_v36  ;;  %v4582_v36 = vld [vmem:[%s8263_s5 + $0x88] sm:$0xff] }
 0x26a   :  { %4993 = vmatprep.subr.bf16.mxu0 %v5809_v19  ;;  %v5819_v17 = vcombine.high %v4582_v36, %v4586_v13  ;;  %v5818_v18 = vcombine.low %v4582_v36, %v4586_v13  ;;  %v4626_v13 = vld [vmem:[%s8263_s5 + $0x1e8] sm:$0xff] }
 0x26d   :  { %4994 = vmatpush1.bf16.msra.mxu0 %v5808_v23 }
 0x26e   :  { %4995 = vmatprep.subr.bf16.mxu0 %v5817_v24  ;;  %v5835_v24 = vcombine.high %v4598_v21, %v4602_v22 }
 0x271   :  { %4996 = vmatpush1.bf16.msra.mxu0 %v5816_v33  ;;  %v5834_v33 = vcombine.low %v4598_v21, %v4602_v22  ;;  %v6057_v21 = vmov 0  }
 0x272   :  { %4997 = vmatprep.subr.bf16.mxu0 %v5825_v34  ;;  %v5843_v34 = vcombine.high %v4606_v25, %v4610_v27  ;;  %5023 = vmatprep.mubr.bf16.mxu0 %v6057_v21 }
 0x275   :  { %4998 = vmatpush1.bf16.msra.mxu0 %v5824_v58 }
 0x276   :  { %4999 = vmatprep.subr.bf16.mxu0 %v5833_v40  ;;  %v5735_v40 = vld [vmem:[%s8264_s4] ss:$0 sm:$0xff] }
 0x279   :  { %5000 = vmatpush1.bf16.msra.mxu0 %v5832_v42 }
 0x27a   :  { %5001 = vmatprep.subr.bf16.mxu0 %v5841_v8 }
 0x27d   :  { %5002 = vmatpush1.bf16.msra.mxu0 %v5840_v43 }
 0x29b   :  { %v3661_v63 = vpop.f32.mrb[24].mxu0  ;;  %v3702_v0 = vpop.f32.mrb[24].mxu1 }
 0x29c   :  { %v3663_v1 = vpop.f32.mrb[25].mxu0  ;;  %v3703_v28 = vadd.f32 %v3702_v0, %v3661_v63  ;;  %v3704_v2 = vpop.f32.mrb[25].mxu1 }
 0x29d   :  { %v3665_v31 = vpop.f32.mrb[26].mxu0  ;;  %v3705_v50 = vadd.f32 %v3704_v2, %v3663_v1  ;;  %v3706_v48 = vpop.f32.mrb[26].mxu1 }
 0x29e   :  { %v3666_v6 = vpop.f32.mrb[27].mxu0  ;;  %v3707_v7 = vpop.f32.mrb[27].mxu1 }
 0x29f   :  { %v5802_v7 = vcombine.low %v7992_v12, %v7997_v39  ;;  %v4590_v12 = vld [vmem:[%s8263_s5 + $0xc8] sm:$0xff] }
 0x2a0   :  { %v4594_v39 = vld [vmem:[%s8263_s5 + $0xe8] sm:$0xff] }
 0x2a1   :  { %v5827_v19 = vcombine.high %v4590_v12, %v4594_v39  ;;  %v5826_v23 = vcombine.low %v4590_v12, %v4594_v39  ;;  %v4567_v39 = vld [vmem:[%s8263_s5 + $0x10] sm:$0xff] }
 0x2db   :  { %v3743_v14 = vpop.f32.mrb[28].mxu0  ;;  %v3784_v53 = vpop.f32.mrb[28].mxu1 }
 0x2dc   :  { %v3744_v9 = vadd.f32 %v3743_v14, %v3703_v28  ;;  %v3745_v52 = vpop.f32.mrb[29].mxu0  ;;  %v3786_v56 = vpop.f32.mrb[29].mxu1 }
 0x2dd   :  { %v3746_v55 = vadd.f32 %v3745_v52, %v3705_v50  ;;  %v3747_v20 = vpop.f32.mrb[30].mxu0  ;;  %v3788_v62 = vpop.f32.mrb[30].mxu1  ;;  %v4574_v50 = vld [vmem:[%s8263_s5 + $0x48] sm:$0xff] }
 0x2de   :  { %v3785_v44 = vadd.f32 %v3784_v53, %v3744_v9  ;;  %v3748_v63 = vpop.f32.mrb[31].mxu0  ;;  %v3789_v1 = vpop.f32.mrb[31].mxu1  ;;  %v5811_v11 = vcombine.high %v4574_v50, %v4578_v5  ;;  %v5810_v15 = vcombine.low %v4574_v50, %v4578_v5  ;;  %v4614_v20 = vld [vmem:[%s8263_s5 + $0x188] sm:$0xff] }
 0x2df   :  { %v3787_v0 = vadd.f32 %v3786_v56, %v3746_v55  ;;  %v4613_v56 = vld [vmem:[%s8263_s5 + $0x180] sm:$0xff]  ;;  %v4618_v63 = vld [vmem:[%s8263_s5 + $0x1a8] sm:$0xff] }
 0x2e0   :  { %v3866_v2 = vadd.f32 %v3847_v54, %v3785_v44  ;;  %v5851_v50 = vcombine.high %v4614_v20, %v4618_v63 }
 0x2e1   :  { %v3867_v28 = vadd.f32 %v3851_v16, %v3787_v0  ;;  %v4617_v16 = vld [vmem:[%s8263_s5 + $0x1a0] sm:$0xff] }
 0x2e2   :  { %v8039_v31 = vmax.f32 %v3866_v2, 0.0  ;;  %v5849_v62 = vcombine.high %v4613_v56, %v4617_v16  ;;  %v5848_v2 = vcombine.low %v4613_v56, %v4617_v16  ;;  %v4588_v56 = vld [vmem:[%s8263_s5 + $0xb8] sm:$0xff] }
 0x2e3   :  { %v8041_v48 = vmax.f32 %v3867_v28, 0.0  ;;  %v5850_v28 = vcombine.low %v4614_v20, %v4618_v63  ;;  %v4591_v63 = vld [vmem:[%s8263_s5 + $0xd0] sm:$0xff] }
 0x2e4   :  { %v3882_v10 = vpack.c.bf16 %v8039_v31, %v8039_v31  ;;  %5003 = vmatprep.subr.bf16.mxu0 %v5849_v62 }
 0x2e5   :  { %v3883_v6 = vpack.c.bf16 %v8041_v48, %v8041_v48  ;;  %5004 = vmatpush1.bf16.msra.mxu0 %v5848_v2  ;;  %v4596_v2 = vld [vmem:[%s8263_s5 + $0xf8] sm:$0xff] }
 0x2e7   :  { %4555 = vmatprep.mubr.bf16.mxu1 %v3883_v6 }
 0x2e8   :  { %4556 = vmatmul.mubr.bf16.vlgmr.msra.gmra.mrb[36].mxu1 %v3882_v10  ;;  %v4625_v10 = vld [vmem:[%s8263_s5 + $0x1e0] sm:$0xff] }
 0x2e9   :  { %5033 = vmatpush1.bf16.msra.mxu1 %v5802_v7  ;;  %v4621_v7 = vld [vmem:[%s8263_s5 + $0x1c0] sm:$0xff]  ;;  %5064 = vmatprep.mubr.bf16.mxu1 %v6057_v21 }
 0x2ea   :  { %5034 = vmatprep.subr.bf16.mxu1 %v5811_v11  ;;  %v4622_v11 = vld [vmem:[%s8263_s5 + $0x1c8] sm:$0xff]  ;;  %v5857_v36 = vcombine.high %v4621_v7, %v4625_v10 }
 0x2eb   :  { %v5859_v12 = vcombine.high %v4622_v11, %v4626_v13 }
 0x2ec   :  { %5005 = vmatprep.subr.bf16.mxu0 %v5857_v36  ;;  %v4604_v36 = vld [vmem:[%s8263_s5 + $0x138] sm:$0xff] }
 0x2ed   :  { %5035 = vmatpush1.bf16.msra.mxu1 %v5810_v15  ;;  %v5856_v15 = vcombine.low %v4621_v7, %v4625_v10  ;;  %v4599_v7 = vld [vmem:[%s8263_s5 + $0x110] sm:$0xff] }
 0x2ee   :  { %5036 = vmatprep.subr.bf16.mxu1 %v5819_v17  ;;  %v5858_v17 = vcombine.low %v4622_v11, %v4626_v13  ;;  %v4603_v10 = vld [vmem:[%s8263_s5 + $0x130] sm:$0xff]  ;;  %v4600_v11 = vld [vmem:[%s8263_s5 + $0x118] sm:$0xff] }
 0x2ef   :  { %5006 = vmatpush1.bf16.msra.mxu0 %v5856_v15 }
 0x2f1   :  { %5037 = vmatpush1.bf16.msra.mxu1 %v5818_v18  ;;  %v4571_v18 = vld [vmem:[%s8263_s5 + $0x30] sm:$0xff] }
 0x2f2   :  { %5038 = vmatprep.subr.bf16.mxu1 %v5827_v19  ;;  %v4568_v19 = vld [vmem:[%s8263_s5 + $0x18] sm:$0xff]  ;;  %v5804_v22 = vcombine.low %v4567_v39, %v4571_v18 }
 0x2f5   :  { %5039 = vmatpush1.bf16.msra.mxu1 %v5826_v23  ;;  %v5805_v23 = vcombine.high %v4567_v39, %v4571_v18  ;;  %v4607_v39 = vld [vmem:[%s8263_s5 + $0x150] sm:$0xff] }
 0x2f6   :  { %5040 = vmatprep.subr.bf16.mxu1 %v5835_v24  ;;  %v4572_v24 = vld [vmem:[%s8263_s5 + $0x38] sm:$0xff]  ;;  %v4611_v18 = vld [vmem:[%s8263_s5 + $0x170] sm:$0xff] }
 0x2f7   :  { %v5806_v25 = vcombine.low %v4568_v19, %v4572_v24  ;;  %v5807_v27 = vcombine.high %v4568_v19, %v4572_v24  ;;  %5073 = vmatprep.subr.bf16.mxu0 %v5805_v23  ;;  %v4608_v19 = vld [vmem:[%s8263_s5 + $0x158] sm:$0xff]  ;;  %v5838_v23 = vcombine.low %v4600_v11, %v4604_v36  ;;  %v5845_v24 = vcombine.high %v4607_v39, %v4611_v18 }
 0x2f9   :  { %5041 = vmatpush1.bf16.msra.mxu1 %v5834_v33 }
 0x2fa   :  { %5042 = vmatprep.subr.bf16.mxu1 %v5843_v34 }
 0x2fb   :  { %v5888_v38 = vpop.f32.mrb[32].mxu0 }
 0x2fc   :  { %v5910_v58 = vpop.f32.mrb[32].mxu1  ;;  %v5889_v59 = vpop.f32.mrb[33].mxu0 }
 0x2fd   :  { %v5890_v41 = vadd.f32 %v5889_v59, %v5888_v38  ;;  %v5911_v42 = vpop.f32.mrb[33].mxu1  ;;  %v5891_v8 = vpop.f32.mrb[34].mxu0  ;;  %5043 = vmatpush1.bf16.msra.mxu1 %v5842_v37  ;;  %v4575_v59 = vld [vmem:[%s8263_s5 + $0x50] sm:$0xff] }
 0x2fe   :  { %v5912_v43 = vadd.f32 %v5911_v42, %v5910_v58  ;;  %v5913_v14 = vpop.f32.mrb[34].mxu1  ;;  %v5892_v9 = vpop.f32.mrb[35].mxu0  ;;  %5044 = vmatprep.subr.bf16.mxu1 %v5851_v50  ;;  %v4576_v42 = vld [vmem:[%s8263_s5 + $0x58] sm:$0xff] }
 0x2ff   :  { %v4438_v53 = vadd.f32 %v5890_v41, %v5735_v40  ;;  %v5914_v54 = vpop.f32.mrb[35].mxu1  ;;  %v4579_v41 = vld [vmem:[%s8263_s5 + $0x70] sm:$0xff]  ;;  %v4580_v8 = vld [vmem:[%s8263_s5 + $0x78] sm:$0xff] }
 0x300   :  { %v5813_v9 = vcombine.high %v4575_v59, %v4579_v41  ;;  %v4583_v54 = vld [vmem:[%s8263_s5 + $0x90] sm:$0xff]  ;;  %v5812_v16 = vcombine.low %v4575_v59, %v4579_v41  ;;  %v5814_v20 = vcombine.low %v4576_v42, %v4580_v8 }
 0x301   :  { %v4478_v52 = vadd.f32 %v5912_v43, %v4438_v53  ;;  %5045 = vmatpush1.bf16.msra.mxu1 %v5850_v28  ;;  %v5815_v53 = vcombine.high %v4576_v42, %v4580_v8  ;;  %v4623_v41 = vld [vmem:[%s8263_s5 + $0x1d0] sm:$0xff]  ;;  %v4624_v8 = vld [vmem:[%s8263_s5 + $0x1d8] sm:$0xff] }
 0x302   :  { %5046 = vmatprep.subr.bf16.mxu1 %v5859_v12  ;;  %v5839_v12 = vcombine.high %v4600_v11, %v4604_v36  ;;  %v4627_v42 = vld [vmem:[%s8263_s5 + $0x1f0] sm:$0xff] }
 0x305   :  { %5047 = vmatpush1.bf16.msra.mxu1 %v5858_v17  ;;  %v5837_v17 = vcombine.high %v4599_v7, %v4603_v10 }
 0x306   :  { %5114 = vmatprep.subr.bf16.mxu1 %v5807_v27  ;;  %v4615_v27 = vld [vmem:[%s8263_s5 + $0x190] sm:$0xff] }
 0x33b   :  { %v5932_v55 = vpop.f32.mrb[36].mxu0 }
 0x33c   :  { %v5933_v44 = vpop.f32.mrb[37].mxu0 }
 0x33d   :  { %v5934_v0 = vadd.f32 %v5933_v44, %v5932_v55  ;;  %v5935_v1 = vpop.f32.mrb[38].mxu0  ;;  %v4584_v55 = vld [vmem:[%s8263_s5 + $0x98] sm:$0xff] }
 0x33e   :  { %v5936_v5 = vpop.f32.mrb[39].mxu0  ;;  %v5823_v62 = vcombine.high %v4584_v55, %v4588_v56  ;;  %v4592_v1 = vld [vmem:[%s8263_s5 + $0xd8] sm:$0xff]  ;;  %v5822_v50 = vcombine.low %v4584_v55, %v4588_v56  ;;  %v5860_v55 = vcombine.low %v4623_v41, %v4627_v42 }
 0x33f   :  { %v4518_v6 = vadd.f32 %v5934_v0, %v4478_v52  ;;  %v4587_v52 = vld [vmem:[%s8263_s5 + $0xb0] sm:$0xff]  ;;  %v5830_v15 = vcombine.low %v4592_v1, %v4596_v2 }
 0x340   :  { %v5821_v44 = vcombine.high %v4583_v54, %v4587_v52  ;;  %v4595_v0 = vld [vmem:[%s8263_s5 + $0xf0] sm:$0xff]  ;;  %v5820_v28 = vcombine.low %v4583_v54, %v4587_v52  ;;  %v5861_v54 = vcombine.high %v4623_v41, %v4627_v42 }
 0x341   :  { %v5829_v5 = vcombine.high %v4591_v63, %v4595_v0  ;;  %v5828_v13 = vcombine.low %v4591_v63, %v4595_v0 }
 0x3bb   :  { %v5954_v33 = vpop.f32.mrb[36].mxu1 }
 0x3bc   :  { %v5955_v34 = vpop.f32.mrb[37].mxu1 }
 0x3bd   :  { %v5956_v37 = vadd.f32 %v5955_v34, %v5954_v33  ;;  %v5957_v38 = vpop.f32.mrb[38].mxu1  ;;  %v4619_v33 = vld [vmem:[%s8263_s5 + $0x1b0] sm:$0xff]  ;;  %v4616_v34 = vld [vmem:[%s8263_s5 + $0x198] sm:$0xff] }
 0x3be   :  { %v5958_v58 = vpop.f32.mrb[39].mxu1  ;;  %v5844_v38 = vcombine.low %v4607_v39, %v4611_v18 }
 0x3bf   :  { %v4558_v40 = vadd.f32 %v5956_v37, %v4518_v6  ;;  %v5831_v6 = vcombine.high %v4592_v1, %v4596_v2  ;;  %v4620_v37 = vld [vmem:[%s8263_s5 + $0x1b8] sm:$0xff] }
 0x3c0   :  { %v5855_v59 = vcombine.high %v4616_v34, %v4620_v37 }
 0x3c1   :  { %v4563_v43 = vmax.f32 %v4558_v40, 0.0  ;;  %v5853_v40 = vcombine.high %v4615_v27, %v4619_v33 }
 0x3c3   :  { %v8130_v14 = vpack.c.bf16 %v4563_v43, %v4563_v43  ;;  %v4628_v43 = vld [vmem:[%s8263_s5 + $0x1f8] sm:$0xff] }
 0x3c4   :  { %v5863_v52 = vcombine.high %v4624_v8, %v4628_v43  ;;  %v5862_v56 = vcombine.low %v4624_v8, %v4628_v43 }
 0x3c5   :  { %5024 = vmatmul.mubr.bf16.vlgmr.msra.gmra.mrb[40].mxu0 %v8130_v14  ;;  %5065 = vmatmul.mubr.bf16.vlgmr.msra.gmra.mrb[40].mxu1 %v8130_v14 }
 0x3c6   :  { %5074 = vmatpush1.bf16.msra.mxu0 %v5804_v22  ;;  %5115 = vmatpush1.bf16.msra.mxu1 %v5806_v25  ;;  %v5836_v22 = vcombine.low %v4599_v7, %v4603_v10 }
 0x3c7   :  { %5075 = vmatprep.subr.bf16.mxu0 %v5813_v9  ;;  %5116 = vmatprep.subr.bf16.mxu1 %v5815_v53  ;;  %v5852_v9 = vcombine.low %v4615_v27, %v4619_v33  ;;  %v5854_v53 = vcombine.low %v4616_v34, %v4620_v37 }
 0x3c8   :  { %5105 = vmatprep.mubr.bf16.mxu0 %v6057_v21  ;;  %5146 = vmatprep.mubr.bf16.mxu1 %v6057_v21  ;;  %v4612_v21 = vld [vmem:[%s8263_s5 + $0x178] sm:$0xff] }
 0x3c9   :  { %v5847_v25 = vcombine.high %v4608_v19, %v4612_v21  ;;  %v5846_v58 = vcombine.low %v4608_v19, %v4612_v21 }
 0x3ca   :  { %5076 = vmatpush1.bf16.msra.mxu0 %v5812_v16  ;;  %5117 = vmatpush1.bf16.msra.mxu1 %v5814_v20  ;;  %v4629_v16 = vld [vmem:[%s8265_s6] sm:$0xff] }
 0x3cb   :  { %5077 = vmatprep.subr.bf16.mxu0 %v5821_v44  ;;  %5118 = vmatprep.subr.bf16.mxu1 %v5823_v62  ;;  %v4634_v20 = vrot.slane %v4629_v16, %v3822_v26  ;;  %v4642_v44 = vrot.slane %v4629_v16, %v3830_v30  ;;  %v4638_v62 = vrot.slane %v4629_v16, %v3826_v45 }
 0x3cc   :  { %v4646_v63 = vrot.slane %v4629_v16, %v3834_v49  ;;  %v4658_v27 = vrot.slane %v4629_v16, %v3846_v47  ;;  %v4654_v37 = vrot.slane %v4629_v16, %v3842_v32 }
 0x3ce   :  { %5078 = vmatpush1.bf16.msra.mxu0 %v5820_v28  ;;  %5119 = vmatpush1.bf16.msra.mxu1 %v5822_v50 }
 0x3cf   :  { %5079 = vmatprep.subr.bf16.mxu0 %v5829_v5  ;;  %5120 = vmatprep.subr.bf16.mxu1 %v5831_v6 }
 0x3d2   :  { %5080 = vmatpush1.bf16.msra.mxu0 %v5828_v13  ;;  %5121 = vmatpush1.bf16.msra.mxu1 %v5830_v15 }
 0x3d3   :  { %5081 = vmatprep.subr.bf16.mxu0 %v5837_v17  ;;  %5122 = vmatprep.subr.bf16.mxu1 %v5839_v12 }
 0x3d6   :  { %5082 = vmatpush1.bf16.msra.mxu0 %v5836_v22  ;;  %5123 = vmatpush1.bf16.msra.mxu1 %v5838_v23 }
 0x3d7   :  { %5083 = vmatprep.subr.bf16.mxu0 %v5845_v24  ;;  %5124 = vmatprep.subr.bf16.mxu1 %v5847_v25  ;;  %v4650_v25 = vrot.slane %v4629_v16, %v3838_v29 }
 0x3da   :  { %5084 = vmatpush1.bf16.msra.mxu0 %v5844_v38  ;;  %5125 = vmatpush1.bf16.msra.mxu1 %v5846_v58  ;;  %v4662_v38 = vrot.slane %v4629_v16, %v3850_v51 }
 0x3db   :  { %5085 = vmatprep.subr.bf16.mxu0 %v5853_v40  ;;  %5126 = vmatprep.subr.bf16.mxu1 %v5855_v59 }
 0x3de   :  { %5086 = vmatpush1.bf16.msra.mxu0 %v5852_v9  ;;  %5127 = vmatpush1.bf16.msra.mxu1 %v5854_v53 }
 0x3df   :  { %5087 = vmatprep.subr.bf16.mxu0 %v5861_v54  ;;  %5128 = vmatprep.subr.bf16.mxu1 %v5863_v52 }
 0x3e2   :  { %5088 = vmatpush1.bf16.msra.mxu0 %v5860_v55  ;;  %5129 = vmatpush1.bf16.msra.mxu1 %v5862_v56 }
 0x3e5   :  { %5106 = vmatmul.mubr.bf16.vlgmr.msra.gmra.mrb[44].mxu0 %v8130_v14  ;;  %5147 = vmatmul.mubr.bf16.vlgmr.msra.gmra.mrb[44].mxu1 %v8130_v14 }
 0x498   :  { %v5025_v0 = vpop.f32.mrb[40].mxu0  ;;  %v5066_v1 = vpop.f32.mrb[40].mxu1 }
 0x499   :  { %v5026_v2 = vadd.f32 %v5025_v0, %v4634_v20  ;;  %v5067_v14 = vadd.f32 %v5066_v1, %v4642_v44  ;;  %v5027_v28 = vpop.f32.mrb[41].mxu0  ;;  %v5068_v50 = vpop.f32.mrb[41].mxu1 }
 0x49a   :  { %v5028_v5 = vadd.f32 %v5027_v28, %v4638_v62  ;;  %v5069_v6 = vadd.f32 %v5068_v50, %v4646_v63  ;;  %v5029_v7 = vpop.f32.mrb[42].mxu0  ;;  %v5070_v10 = vpop.f32.mrb[42].mxu1 }
 0x49b   :  { %v5864_v26 = vmul.f32 -1.442695, %v5026_v2  ;;  %v5866_v11 = vmul.f32 -1.442695, %v5067_v14  ;;  %v5030_v36 = vpop.f32.mrb[43].mxu0  ;;  %v5071_v30 = vpop.f32.mrb[43].mxu1 }
 0x49c   :  { %v5865_v13 = vmul.f32 -1.442695, %v5028_v5  ;;  %v5867_v15 = vmul.f32 -1.442695, %v5069_v6 }
 0x49d   :  { %6025 = vpow2.f32 %v5864_v26 }
 0x49e   :  { %6027 = vpow2.f32 %v5866_v11 }
 0x49f   :  { %6029 = vpow2.f32 %v5865_v13 }
 0x4a0   :  { %6031 = vpow2.f32 %v5867_v15 }
 0x4a7   :  { %v6026_v45 = vpop.eup %6025 }
 0x4a8   :  { %v6028_v49 = vpop.eup %6027  ;;  %v5179_v17 = vadd.f32 1.0, %v6026_v45 }
 0x4a9   :  { %v6030_v12 = vpop.eup %6029  ;;  %v5181_v39 = vadd.f32 1.0, %v6028_v49 }
 0x4aa   :  { %v6032_v18 = vpop.eup %6031  ;;  %6033 = vrcp.f32 %v5179_v17  ;;  %v5180_v19 = vadd.f32 1.0, %v6030_v12 }
 0x4ab   :  { %6035 = vrcp.f32 %v5181_v39  ;;  %v5182_v21 = vadd.f32 1.0, %v6032_v18 }
 0x4ac   :  { %6037 = vrcp.f32 %v5180_v19 }
 0x4ad   :  { %6039 = vrcp.f32 %v5182_v21 }
 0x4b4   :  { %v6034_v22 = vpop.eup %6033 }
 0x4b5   :  { %v6036_v23 = vpop.eup %6035  ;;  %v5203_v24 = vmul.f32 %v6034_v22, %v7858_v60 }
 0x4b6   :  { %v6038_v33 = vpop.eup %6037  ;;  %v5205_v34 = vmul.f32 %v6036_v23, %v7866_v61 }
 0x4b7   :  { %v6040_v58 = vpop.eup %6039  ;;  %5211 = vst [vmem:[%s8266_s7] sm:$0xff] %v5203_v24  ;;  %v5204_v60 = vmul.f32 %v6038_v33, %v7747_v3 }
 0x4b8   :  { %5213 = vst [vmem:[%s8266_s7 + $0x10] sm:$0xff] %v5205_v34  ;;  %v5206_v29 = vmul.f32 %v6040_v58, %v7749_v4  ;;  %v5107_v61 = vpop.f32.mrb[44].mxu0  ;;  %v5148_v47 = vpop.f32.mrb[44].mxu1 }
 0x4b9   :  { %5212 = vst [vmem:[%s8266_s7 + $0x8] sm:$0xff] %v5204_v60  ;;  %v5108_v35 = vadd.f32 %v5107_v61, %v4650_v25  ;;  %v5149_v32 = vadd.f32 %v5148_v47, %v4658_v27  ;;  %v5109_v51 = vpop.f32.mrb[45].mxu0  ;;  %v5150_v40 = vpop.f32.mrb[45].mxu1 }
 0x4ba   :  { %5214 = vst [vmem:[%s8266_s7 + $0x18] sm:$0xff] %v5206_v29  ;;  %v5110_v3 = vadd.f32 %v5109_v51, %v4654_v37  ;;  %v5151_v59 = vadd.f32 %v5150_v40, %v4662_v38  ;;  %v5111_v41 = vpop.f32.mrb[46].mxu0  ;;  %v5152_v42 = vpop.f32.mrb[46].mxu1 }
 0x4bb   :  { %v5868_v8 = vmul.f32 -1.442695, %v5108_v35  ;;  %v5870_v4 = vmul.f32 -1.442695, %v5149_v32  ;;  %v5112_v43 = vpop.f32.mrb[47].mxu0  ;;  %v5153_v9 = vpop.f32.mrb[47].mxu1 }
 0x4bc   :  { %v5869_v53 = vmul.f32 -1.442695, %v5110_v3  ;;  %v5871_v54 = vmul.f32 -1.442695, %v5151_v59 }
 0x4bd   :  { %6041 = vpow2.f32 %v5868_v8 }
 0x4be   :  { %6043 = vpow2.f32 %v5870_v4 }
 0x4bf   :  { %6045 = vpow2.f32 %v5869_v53 }
 0x4c0   :  { %6047 = vpow2.f32 %v5871_v54 }
 0x4c7   :  { %v6042_v52 = vpop.eup %6041 }
 0x4c8   :  { %v6044_v55 = vpop.eup %6043  ;;  %v5183_v56 = vadd.f32 1.0, %v6042_v52 }
 0x4c9   :  { %v6046_v16 = vpop.eup %6045  ;;  %v5185_v20 = vadd.f32 1.0, %v6044_v55 }
 0x4ca   :  { %v6048_v44 = vpop.eup %6047  ;;  %6049 = vrcp.f32 %v5183_v56  ;;  %v5184_v62 = vadd.f32 1.0, %v6046_v16 }
 0x4cb   :  { %6051 = vrcp.f32 %v5185_v20  ;;  %v5186_v63 = vadd.f32 1.0, %v6048_v44 }
 0x4cc   :  { %6053 = vrcp.f32 %v5184_v62 }
 0x4cd   :  { %6055 = vrcp.f32 %v5186_v63 }
 0x4d4   :  { %v6050_v0 = vpop.eup %6049 }
 0x4d5   :  { %v6052_v1 = vpop.eup %6051  ;;  %v5207_v2 = vmul.f32 %v6050_v0, %v7969_v57 }
 0x4d6   :  { %v6054_v14 = vpop.eup %6053  ;;  %v5209_v28 = vmul.f32 %v6052_v1, %v8039_v31 }
 0x4d7   :  { %v6056_v50 = vpop.eup %6055  ;;  %5215 = vst [vmem:[%s8266_s7 + $0x20] sm:$0xff] %v5207_v2  ;;  %v5208_v5 = vmul.f32 %v6054_v14, %v7971_v46 }
 0x4d8   :  { %5217 = vst [vmem:[%s8266_s7 + $0x30] sm:$0xff] %v5209_v28  ;;  %v5210_v6 = vmul.f32 %v6056_v50, %v8041_v48 }
 0x4d9   :  { %5216 = vst [vmem:[%s8266_s7 + $0x28] sm:$0xff] %v5208_v5 }
 0x4da   :  { %5218 = vst [vmem:[%s8266_s7 + $0x38] sm:$0xff] %v5210_v6 }

</bundles_post_ra>
